<compile_context>
chip_gen: v7x
topology: tpu7x:2x2x1
jax: 0.10.0
libtpu: 0.0.40
codegen_flags: <defaults>
</compile_context>

<pallas_src>
import functools
import math

import jax
import jax.numpy as jnp
import numpy as np
from jax import lax
from jax.experimental import pallas as pl
from jax.experimental.pallas import tpu as pltpu


def _pos_embed_sine_kernel(coefs_ref, yx_ref, out_ref):
    # coefs_ref : [2F, 8]   columns: 0 = coef_y, 1 = coef_x, 2 = phase, rest 0
    # yx_ref    : [1, 8, T] rows:    0 = y_flat, 1 = x_flat, 2 = ones,  rest 0
    # out_ref   : [1, 2F, T]
    #
    # arg[c, p] = coef_y[c]*y_flat[p] + coef_x[c]*x_flat[p] + phase[c]
    # computed on the MXU (vex slot) so the VPU is free for the sin polynomial.
    arg = jnp.dot(coefs_ref[...], yx_ref[0],
                  preferred_element_type=jnp.float32,
                  precision=lax.Precision.HIGHEST)
    out_ref[0] = jnp.sin(arg).astype(out_ref.dtype)


def _choose_tile(hw: int) -> int:
    """Lane-tile size: multiple of 128, at most 1024 (bounds VMEM on all chips)."""
    if hw <= 1024:
        return ((hw + 127) // 128) * 128
    return 1024


def position_embedding_sine(x, mask=None, *, num_pos_feats=64, temperature=10000,
                            normalize=False, scale=None, out_dtype=jnp.float32):
    if scale is not None and not normalize:
        raise ValueError("normalize should be True if scale is passed")
    if scale is None:
        scale = 2.0 * math.pi

    B, _, H, W = x.shape
    F = num_pos_feats
    HW = H * W
    eps = 1e-6

    # --- cheap O(HW) preprocessing in the wrapper (XLA) --------------------------
    if mask is None:
        not_mask = jnp.ones((B, H, W), jnp.float32)
    else:
        not_mask = jnp.logical_not(mask).astype(jnp.float32)

    y_embed = jnp.cumsum(not_mask, axis=1)
    x_embed = jnp.cumsum(not_mask, axis=2)
    if normalize:
        y_embed = y_embed / (y_embed[:, -1:, :] + eps) * scale
        x_embed = x_embed / (x_embed[:, :, -1:] + eps) * scale

    y_flat = y_embed.reshape(B, HW)
    x_flat = x_embed.reshape(B, HW)

    # Lane tiling: pad HW up to a multiple of the tile so every block is full.
    T = _choose_tile(HW)
    HWp = ((HW + T - 1) // T) * T

    # Packed per-position input [B, 8, HWp]: rows 0=y, 1=x, 2=ones (padded columns
    # just evaluate sin(phase); they are cropped off after the kernel).
    yx = jnp.zeros((B, 8, HWp), jnp.float32)
    yx = yx.at[:, 0, :HW].set(y_flat)
    yx = yx.at[:, 1, :HW].set(x_flat)
    yx = yx.at[:, 2, :].set(1.0)

    # Grid-invariant per-channel constants, merged into one [2F, 8] tile:
    #   dim_t[i] = temperature ** (2 * (i // 2) / F)
    #   channels [0, F) = pos_y block, [F, 2F) = pos_x block
    #   even channel (within each half) -> sin, odd -> cos == sin(. + pi/2)
    i = np.arange(F)
    inv_dim_t = (1.0 / (temperature ** (2.0 * (i // 2) / F))).astype(np.float32)
    phase_half = np.where(i % 2 == 0, 0.0, np.pi / 2.0).astype(np.float32)
    coefs_np = np.zeros((2 * F, 8), np.float32)
    coefs_np[:F, 0] = inv_dim_t        # pos_y block multiplies y_flat
    coefs_np[F:, 1] = inv_dim_t        # pos_x block multiplies x_flat
    coefs_np[:F, 2] = phase_half       # + phase (times the ones row)
    coefs_np[F:, 2] = phase_half
    coefs = jnp.asarray(coefs_np)

    grid = (B, HWp // T)
    out = pl.pallas_call(
        _pos_embed_sine_kernel,
        out_shape=jax.ShapeDtypeStruct((B, 2 * F, HWp), out_dtype),
        grid_spec=pltpu.PrefetchScalarGridSpec(
            num_scalar_prefetch=0,
            grid=grid,
            in_specs=[
                # Constant coef tile: same block every step -> stays resident.
                pl.BlockSpec((2 * F, 8), lambda b, t: (0, 0)),
                # Per-(batch, tile) packed y/x/ones slab.
                pl.BlockSpec((1, 8, T), lambda b, t: (b, 0, t)),
            ],
            out_specs=pl.BlockSpec((1, 2 * F, T), lambda b, t: (b, 0, t)),
        ),
        compiler_params=pltpu.CompilerParams(
            dimension_semantics=("parallel", "parallel")),
    )(coefs, yx)

    # Crop the lane padding and split the trailing dim: [B, 2F, HWp] -> [B, 2F, H, W].
    return out[:, :, :HW].reshape(B, 2 * F, H, W)


def _reference(x, mask=None, *, num_pos_feats=64, temperature=10000,
               normalize=False, scale=None):
    """Pure-JAX port of the PyTorch forward, for verification."""
    if scale is None:
        scale = 2.0 * math.pi
    B, _, H, W = x.shape
    if mask is None:
        mask = jnp.zeros((B, H, W), dtype=bool)
    not_mask = jnp.logical_not(mask)
    y_embed = jnp.cumsum(not_mask.astype(jnp.float32), axis=1)
    x_embed = jnp.cumsum(not_mask.astype(jnp.float32), axis=2)
    if normalize:
        eps = 1e-6
        y_embed = y_embed / (y_embed[:, -1:, :] + eps) * scale
        x_embed = x_embed / (x_embed[:, :, -1:] + eps) * scale
    i = jnp.arange(num_pos_feats, dtype=jnp.float32)
    dim_t = temperature ** (2.0 * jnp.floor(i / 2.0) / num_pos_feats)
    pos_x = x_embed[:, :, :, None] / dim_t
    pos_y = y_embed[:, :, :, None] / dim_t
    pos_x = jnp.stack((jnp.sin(pos_x[..., 0::2]), jnp.cos(pos_x[..., 1::2])),
                      axis=4).reshape(B, H, W, num_pos_feats)
    pos_y = jnp.stack((jnp.sin(pos_y[..., 0::2]), jnp.cos(pos_y[..., 1::2])),
                      axis=4).reshape(B, H, W, num_pos_feats)
    return jnp.concatenate((pos_y, pos_x), axis=3).transpose(0, 3, 1, 2)


if __name__ == "__main__":
    B, C, H, W = 2, 4, 16, 16
    num_pos_feats = 64

    rng = jax.random.PRNGKey(0)
    kx, km = jax.random.split(rng)
    x = jax.random.normal(kx, (B, C, H, W), jnp.float32)
    mask = jax.random.uniform(km, (B, H, W)) < 0.3     # True = padding

    # Case 1: defaults (mask=None, normalize=False).
    out1 = jax.block_until_ready(
        position_embedding_sine(x, None, num_pos_feats=num_pos_feats))
    ref1 = _reference(x, None, num_pos_feats=num_pos_feats)
    assert out1.shape == (B, 2 * num_pos_feats, H, W)
    assert jnp.allclose(out1, ref1, atol=1e-4, rtol=1e-4), "mismatch (default)"

    # Case 2: normalize=True with a padding mask.
    out2 = jax.block_until_ready(
        position_embedding_sine(x, mask, num_pos_feats=num_pos_feats, normalize=True))
    ref2 = _reference(x, mask, num_pos_feats=num_pos_feats, normalize=True)
    assert jnp.allclose(out2, ref2, atol=1e-4, rtol=1e-4), "mismatch (normalize+mask)"

    print("KERNEL_OK")
</pallas_src>

<mosaic_0001>
module attributes {stable_mosaic.version = 11 : i64} {
  func.func @_pos_embed_sine_kernel(%arg0: i32, %arg1: i32, %arg2: memref<128x8xf32, #tpu.memory_space<vmem>>, %arg3: memref<1x8x256xf32, #tpu.memory_space<vmem>>, %arg4: memref<1x128x256xf32, #tpu.memory_space<vmem>>) attributes {dimension_semantics = [#tpu.dimension_semantics<parallel>, #tpu.dimension_semantics<parallel>], iteration_bounds = array<i64: 2, 1>, scalar_prefetch = 0 : i64, scratch_operands = 0 : i64, tpu.core_type = #tpu.core_type<tc>, window_params = [{pipeline_mode = #tpu.pipeline_mode<synchronous>, transform_indices = @transform_0, window_bounds = array<i64: 128, 8>}, {transform_indices = @transform_1, window_bounds = array<i64: 1, 8, 256>}, {transform_indices = @transform_2, window_bounds = array<i64: 1, 128, 256>}]} {
    %c0 = arith.constant 0 : index
    %c0_0 = arith.constant 0 : index
    %0 = vector.load %arg2[%c0, %c0_0] : memref<128x8xf32, #tpu.memory_space<vmem>>, vector<128x8xf32>
    %c0_1 = arith.constant 0 : index
    %c0_2 = arith.constant 0 : index
    %c0_3 = arith.constant 0 : index
    %1 = vector.load %arg3[%c0_1, %c0_2, %c0_3] : memref<1x8x256xf32, #tpu.memory_space<vmem>>, vector<1x8x256xf32>
    %2 = vector.shape_cast %1 : vector<1x8x256xf32> to vector<8x256xf32>
    %cst = arith.constant dense<0.000000e+00> : vector<128x256xf32>
    %3 = tpu.matmul %0, %2, %cst {dimension_numbers = #tpu.dot_dimension_numbers<[1], [0], [0], [1], [0, 0, 1, 1], [], []>, precision = #tpu.contract_precision<fp32>} : vector<128x8xf32>, vector<8x256xf32>, vector<128x256xf32> -> vector<128x256xf32>
    %4 = math.sin %3 : vector<128x256xf32>
    %c0_4 = arith.constant 0 : index
    %c0_5 = arith.constant 0 : index
    %c0_6 = arith.constant 0 : index
    %5 = vector.load %arg4[%c0_4, %c0_5, %c0_6] : memref<1x128x256xf32, #tpu.memory_space<vmem>>, vector<1x128x256xf32>
    %6 = vector.shape_cast %5 : vector<1x128x256xf32> to vector<128x256xf32>
    %7 = vector.shape_cast %4 : vector<128x256xf32> to vector<1x128x256xf32>
    tpu.vector_store %arg4[%c0_4, %c0_5, %c0_6], %7 {strides = array<i32>} : memref<1x128x256xf32, #tpu.memory_space<vmem>>, vector<1x128x256xf32>,
    return
  }
  func.func @transform_0(%arg0: i32, %arg1: i32) -> (i32, i32) {
    %c0_i32 = arith.constant 0 : i32
    %c0_i32_0 = arith.constant 0 : i32
    %c0_i32_1 = arith.constant 0 : i32
    return %c0_i32, %c0_i32_0 : i32, i32
  }
  func.func @transform_1(%arg0: i32, %arg1: i32) -> (i32, i32, i32) {
    %c0_i32 = arith.constant 0 : i32
    %c0_i32_0 = arith.constant 0 : i32
    return %arg0, %c0_i32, %arg1 : i32, i32, i32
  }
  func.func @transform_2(%arg0: i32, %arg1: i32) -> (i32, i32, i32) {
    %c0_i32 = arith.constant 0 : i32
    %c0_i32_0 = arith.constant 0 : i32
    return %arg0, %c0_i32, %arg1 : i32, i32, i32
  }
}

</mosaic_0001>

<bundles_post_ra>
// kernel: tpu_custom_call.1
= control target key start
LH: loop header
LB: loop body
LE: loop exit
PB: predicated region body
PF: predicated region fallthrough
CT: control target
= control target key end

     0   :  { %7 = vsyncpa [#allocation3], 0  ;;  %s8804_s0 = inlined_call_operand.vmem [shape: f32[128,8], index: 0, kind: input, shape index: {}]   ;;  %s8805_s1 = inlined_call_operand.vmem [shape: f32[2,8,256], index: 1, kind: input, shape index: {}]   ;;  %s8806_s2 = inlined_call_operand.hbm [shape: f32[2,128,256], index: 2, kind: output, shape index: {}]  }
   0x1   :  { %9 = vsyncpa [#allocation3 + $0x1], 0  ;;  %s5623_s9 = smov 0   ;;  %s5625_s10 = smov 0  }
   0x2   :  { %s5627_s11 = smov 0   ;;  %s5629_s12 = smov 0  }
   0x3   :  { %s5631_s13 = smov 0   ;;  %s5633_s14 = smov 0  }
   0x4 LB: > { %s4895_s15 = sadd.s32 4294967295, %s5596_s14   ;;  %s4896_s16 = sadd.s32 4294967294, %s5596_s14   ;;  %s5596_s14 = sphi %s5633_s14, %s15_s14   ;;  %s5592_s13 = sphi %s5631_s13, %s8873_s13   ;;  %s5588_s12 = sphi %s5629_s12, %s8872_s12   ;;  %s5584_s11 = sphi %s5627_s11, %s8871_s11   ;;  %s5580_s10 = sphi %s5625_s10, %s8870_s10   ;;  %s5576_s9 = sphi %s5623_s9, %s8869_s9  }
   0x5   : > { %s27_s17 = sadd.s32 1, %s5592_s13  ;;  %s85_s18 = sadd.s32 1, %s5584_s11 }
   0x6   : > { %p29_p0 = scmp.ge.s32.totalorder %s27_s17, 2  ;;  %p95_p1 = scmp.ne.s32.totalorder %s5584_s11, %s5580_s10 }
   0x7   : > { %p96_p2 = scmp.eq.s32.totalorder %s4895_s15, 1  ;;  %p101_p3 = scmp.ne.s32.totalorder %s5580_s10, %s5576_s9 }
   0x8   : > { %s8875_s17 = smov (%p29_p0, %s27_s17), 0  ;;  %p102_p5 = scmp.eq.s32.totalorder %s4896_s16, 1 }
   0x9   : > { %p5663_p4 = por %p96_p2, %p95_p1  ;;  %s80_s20 = ssub.s32 %s5592_s13, %s8875_s17 }
   0xa   : > { %p4899_p6 = scmp.ge.s32.totalorder %s5596_s14, 1  ;;  %p83_p7 = scmp.eq.s32.totalorder %s80_s20, 0 }
   0xb   : > { %p5670_p8 = por %p102_p5, %p101_p3  ;;  %p136_p9 = scmp.lt.s32.totalorder %s5596_s14, 3 }
   0xc   : > { %s5676_s22 = scalar_select %p83_p7, %s5584_s11, %s85_s18  }
   0xd   : > { %p137_p10 = pnand %p4899_p6, %p136_p9 }
   0xe   : > { %p163_p11 = scmp.lt.s32.totalorder (!%p137_p10), %s5588_s12, 1  ;;  %v173_v0 = vld [vmem:[%s8804_s0] sm:$0xff] (!%p137_p10)  ;;  %vm191_vm0 = vcmask (!%p137_p10), 64512   ;;  %v174_v1 = vld [vmem:[%s8804_s0 + $0x8] sm:$0xff] (!%p137_p10)  ;;  %v175_v2 = vld [vmem:[%s8804_s0 + $0x10] sm:$0xff] (!%p137_p10)  ;;  %v5598_v3 = vmov (!%p137_p10), 0.0  }
   0xf   : > { %140 = sbr.rel (%p137_p10) target bundleno = 1217 (0x4c1), region = 28  ;;  %933 = vmatprep.mubr.f32.mxu0 (!%p137_p10), %v5598_v3  ;;  %306 = vmatprep.mubr.f32.mxu1 (!%p137_p10), %v5598_v3  ;;  %v193_v4 = vsel (!%p137_p10), %vm191_vm0, %v173_v0, 0  ;;  %v196_v5 = vsel (!%p137_p10), %vm191_vm0, %v174_v1, 0  ;;  %v199_v6 = vsel (!%p137_p10), %vm191_vm0, %v175_v2, 0  ;;  %v176_v7 = vld [vmem:[%s8804_s0 + $0x18] sm:$0xff] (!%p137_p10)  ;;  %v177_v8 = vld [vmem:[%s8804_s0 + $0x20] sm:$0xff] (!%p137_p10) }
  0x10   : > { %v5700_v9 = vand.u32 (!%p137_p10), 4294901760, %v193_v4  ;;  %v5702_v10 = vand.u32 (!%p137_p10), 4294901760, %v196_v5  ;;  %v5704_v11 = vand.u32 (!%p137_p10), 4294901760, %v199_v6  ;;  %v202_v12 = vsel (!%p137_p10), %vm191_vm0, %v176_v7, 0  ;;  %v178_v18 = vld [vmem:[%s8804_s0 + $0x28] sm:$0xff] (!%p137_p10)  ;;  %v179_v34 = vld [vmem:[%s8804_s0 + $0x30] sm:$0xff] (!%p137_p10) }
  0x11   : > { %v5707_v13 = vand.u32 (!%p137_p10), 4294901760, %v202_v12  ;;  %v205_v17 = vsel (!%p137_p10), %vm191_vm0, %v177_v8, 0  ;;  %v208_v26 = vsel (!%p137_p10), %vm191_vm0, %v178_v18, 0  ;;  %v211_v44 = vsel (!%p137_p10), %vm191_vm0, %v179_v34, 0  ;;  %v180_v45 = vld [vmem:[%s8804_s0 + $0x38] sm:$0xff] (!%p137_p10)  ;;  %v181_v54 = vld [vmem:[%s8804_s0 + $0x40] sm:$0xff] (!%p137_p10) }
  0x12   : > { %v5710_v14 = vsub.f32 (!%p137_p10), %v193_v4, %v5700_v9  ;;  %v5713_v15 = vsub.f32 (!%p137_p10), %v196_v5, %v5702_v10  ;;  %v5716_v16 = vsub.f32 (!%p137_p10), %v199_v6, %v5704_v11  ;;  %v5729_v25 = vand.u32 (!%p137_p10), 4294901760, %v205_v17  ;;  %v182_v61 = vld [vmem:[%s8804_s0 + $0x48] sm:$0xff] (!%p137_p10)  ;;  %v183_v4 = vld [vmem:[%s8804_s0 + $0x50] sm:$0xff] (!%p137_p10)  ;;  %s159_s24 = sand.u32 (!%p137_p10), 1, %s5580_s10   ;;  %s5037_s27 = sshll.u32 (!%p137_p10), %s5588_s12, 12 }
  0x13   : > { %v5736_v30 = vsub.f32 (!%p137_p10), %v202_v12, %v5707_v13  ;;  %v5747_v37 = vand.u32 (!%p137_p10), 4294901760, %v208_v26  ;;  %v5767_v52 = vand.u32 (!%p137_p10), 4294901760, %v211_v44  ;;  %v214_v53 = vsel (!%p137_p10), %vm191_vm0, %v180_v45, 0  ;;  %s4900_s25 = sshll.u32 (!%p137_p10), %s159_s24, 8  ;;  %s8750_s3 = scalar_lea.hbm (!%p137_p10), %s8806_s2, %s5037_s27 }
  0x14   : > { %v309_v21 = vand.u32 (!%p137_p10), 4294901760, %v5710_v14  ;;  %v320_v22 = vand.u32 (!%p137_p10), 4294901760, %v5713_v15  ;;  %v331_v29 = vand.u32 (!%p137_p10), 4294901760, %v5716_v16  ;;  %v5753_v41 = vsub.f32 (!%p137_p10), %v205_v17, %v5729_v25  ;;  %s6348_s26 = scalar_lea.vmem (!%p137_p10), [#allocation2], %s4900_s25 }
  0x15   : > { %v342_v40 = vand.u32 (!%p137_p10), 4294901760, %v5736_v30  ;;  %v5762_v48 = vsub.f32 (!%p137_p10), %v208_v26, %v5747_v37  ;;  %v5778_v58 = vsub.f32 (!%p137_p10), %v211_v44, %v5767_v52  ;;  %v5780_v59 = vand.u32 (!%p137_p10), 4294901760, %v214_v53  ;;  %s4816_s28 = sshll.u32 (!%p137_p10), %s6348_s26, 4  ;;  %s8752_s28 = int_to_ptr.vmem [resolvable:$true] %s4816_s28 }
  0x16   : > { %s164_s5 = scalar_select %p163_p11, %s5588_s12, 1  ;;  %v310_v27 = vsub.f32 %v5710_v14, %v309_v21  ;;  %v321_v28 = vsub.f32 %v5713_v15, %v320_v22  ;;  %v332_v39 = vsub.f32 %v5716_v16, %v331_v29  ;;  %v353_v51 = vand.u32 4294901760, %v5753_v41 }
  0x17   : > { %v343_v50 = vsub.f32 %v5736_v30, %v342_v40  ;;  %v364_v55 = vand.u32 4294901760, %v5762_v48  ;;  %v217_v60 = vsel %vm191_vm0, %v181_v54, 0  ;;  %v375_v0 = vand.u32 4294901760, %v5778_v58  ;;  %s8758_s12 = scalar_lea.sflag [#allocation3], %s159_s24  ;;  %s5518_s4 = scalar_lea.vmem %s8752_s28, 4096 }
  0x18   : > { %s5036_s6 = sshll.u32 %s164_s5, 4  ;;  %v311_v33 = vand.u32 4294901760, %v310_v27  ;;  %v322_v38 = vand.u32 4294901760, %v321_v28  ;;  %v333_v49 = vand.u32 4294901760, %v332_v39  ;;  %v354_v57 = vsub.f32 %v5753_v41, %v353_v51  ;;  %v185_v28 = vld [vmem:[%s8804_s0 + $0x60] sm:$0xff]  ;;  %p5519_p12 = scmp.ne.s32.totalorder %s8752_s28, %s5518_s4 }
  0x19   : > { %s170_s18 = scalar_lea.vmem %s8805_s1, %s5036_s6  ;;  %v344_v56 = vand.u32 4294901760, %v343_v50  ;;  %v365_v62 = vsub.f32 %v5762_v48, %v364_v55  ;;  %v5791_v1 = vsub.f32 %v214_v53, %v5780_v59  ;;  %v5793_v2 = vand.u32 4294901760, %v217_v60  ;;  %s5605_s5 = smov [#allocation2]  }
  0x1a   : > { %v190_v19 = vld [vmem:[%s170_s18 + $0x8] sm:$0xff]  ;;  %v189_v20 = vld [vmem:[%s170_s18] sm:$0xff]  ;;  %v355_v63 = vand.u32 4294901760, %v354_v57  ;;  %v220_v5 = vsel %vm191_vm0, %v182_v61, 0  ;;  %v223_v7 = vsel %vm191_vm0, %v183_v4, 0  ;;  %v376_v8 = vsub.f32 %v5778_v58, %v375_v0  ;;  %p5520_p13 = pnand %p5519_p12, %p5663_p4  ;;  %s5522_s6 = sshll.u32 %s5605_s5, 4  ;;  %s5523_s6 = int_to_ptr.vmem [resolvable:$false] %s5522_s6 }
  0x1b   : > { %v240_v23 = vand.u32 4294901760, %v190_v19  ;;  %v5727_v24 = vand.u32 4294901760, %v189_v20  ;;  %v366_v6 = vand.u32 4294901760, %v365_v62  ;;  %v386_v12 = vand.u32 4294901760, %v5791_v1  ;;  %s5524_s7 = scalar_lea.vmem %s5523_s6, 8192  ;;  %p5525_p1 = scmp.lt.s32.totalorder %s8752_s28, %s5523_s6 }
  0x1c   : > { %v5805_v17 = vsub.f32 %v217_v60, %v5793_v2  ;;  %v5807_v18 = vand.u32 4294901760, %v220_v5  ;;  %p5521_p0 = pneg %p5520_p13  ;;  %p5526_p2 = scmp.lt.s32.totalorder %s5524_s7, %s5518_s4 }
  0x1d   : > { %868 = vmatprep.subr.mxu0 %v240_v23  ;;  %241 = vmatprep.subr.mxu1 %v240_v23  ;;  %v5739_v31 = vsub.f32 %v189_v20, %v5727_v24  ;;  %v484_v32 = vsub.f32 %v190_v19, %v240_v23  ;;  %v184_v19 = vld [vmem:[%s8804_s0 + $0x58] sm:$0xff]  ;;  %v5813_v20 = vand.u32 4294901760, %v223_v7 }
  0x1e   : > { %870 = vmatpush1.msra.mxu0 %v5727_v24  ;;  %243 = vmatpush1.msra.mxu1 %v5727_v24  ;;  %v397_v26 = vand.u32 4294901760, %v5805_v17  ;;  %v5820_v27 = vsub.f32 %v220_v5, %v5807_v18  ;;  %p5527_p3 = por %p5526_p2, %p5525_p1 }
  0x1f   : > { %937 = vmatmul.mubr.f32.vlgmr.msra.gmra.mrb[0].mxu0 %v309_v21  ;;  %v485_v35 = vand.u32 4294901760, %v484_v32  ;;  %v491_v36 = vand.u32 4294901760, %v5739_v31  ;;  %312 = vmatmul.mubr.f32.vlgmr.msra.gmra.mrb[0].mxu1 %v311_v33  ;;  %v226_v21 = vsel %vm191_vm0, %v184_v19, 0 }
  0x20   : > { %942 = vmatprep.mubr.f32.mxu0 %v5598_v3  ;;  %317 = vmatprep.mubr.f32.mxu1 %v5598_v3  ;;  %v398_v34 = vsub.f32 %v5805_v17, %v397_v26  ;;  %p5528_p5 = pnand %p5527_p3, %p5521_p0 }
  0x21   : > { %v486_v42 = vsub.f32 %v484_v32, %v485_v35  ;;  %1081 = vmatprep.subr.mxu0 %v485_v35  ;;  %v492_v43 = vsub.f32 %v5739_v31, %v491_v36  ;;  %v408_v35 = vand.u32 4294901760, %v5820_v27 }
  0x22   : > { %1085 = vmatpush1.msra.mxu0 %v491_v36  ;;  %v5833_v36 = vsub.f32 %v223_v7, %v5813_v20 }
  0x23   : > { %946 = vmatmul.mubr.f32.gmra.mrb[2].mxu0 %v320_v22  ;;  %v487_v46 = vand.u32 4294901760, %v486_v42  ;;  %v493_v47 = vand.u32 4294901760, %v492_v43  ;;  %1262 = vmatprep.subr.mxu0 %v240_v23  ;;  %v377_v22 = vand.u32 4294901760, %v376_v8  ;;  %v387_v23 = vsub.f32 %v5791_v1, %v386_v12 }
  0x24   : > { %323 = vmatmul.mubr.f32.gmra.mrb[2].mxu1 %v322_v38  ;;  %951 = vmatprep.mubr.f32.mxu0 %v5598_v3  ;;  %v186_v38 = vld [vmem:[%s8804_s0 + $0x68] sm:$0xff]  ;;  %v409_v42 = vsub.f32 %v5820_v27, %v408_v35  ;;  %v419_v43 = vand.u32 4294901760, %v5833_v36 }
  0x25   : > { %488 = vmatprep.subr.mxu1 %v487_v46  ;;  %328 = vmatprep.mubr.f32.mxu1 %v5598_v3  ;;  %v388_v33 = vand.u32 4294901760, %v387_v23  ;;  %v232_v45 = vsel %vm191_vm0, %v186_v38, 0  ;;  %v187_v46 = vld [vmem:[%s8804_s0 + $0x70] sm:$0xff] }
  0x26   : > { %494 = vmatpush1.msra.mxu1 %v493_v47  ;;  %v420_v50 = vsub.f32 %v5833_v36, %v419_v43  ;;  %v5858_v53 = vand.u32 4294901760, %v232_v45  ;;  %v235_v54 = vsel %vm191_vm0, %v187_v46, 0 }
  0x27   : > { %955 = vmatmul.mubr.f32.gmra.mrb[4].mxu0 %v331_v29  ;;  %672 = vmatprep.subr.mxu1 %v484_v32  ;;  %v5826_v29 = vand.u32 4294901760, %v226_v21  ;;  %v229_v32 = vsel %vm191_vm0, %v185_v28, 0  ;;  %v5871_v62 = vand.u32 4294901760, %v235_v54 }
  0x28   : > { %334 = vmatmul.mubr.f32.gmra.mrb[4].mxu1 %v333_v49  ;;  %960 = vmatprep.mubr.f32.mxu0 %v5598_v3  ;;  %v5839_v39 = vand.u32 4294901760, %v229_v32  ;;  %v410_v49 = vand.u32 4294901760, %v409_v42  ;;  %v421_v57 = vand.u32 4294901760, %v420_v50  ;;  %v5869_v61 = vsub.f32 %v232_v45, %v5858_v53 }
  0x29   : > { %339 = vmatprep.mubr.f32.mxu1 %v5598_v3  ;;  %v5845_v44 = vsub.f32 %v226_v21, %v5826_v29 }
  0x2a   : > { %v5853_v47 = vsub.f32 %v229_v32, %v5839_v39  ;;  %v452_v5 = vand.u32 4294901760, %v5869_v61 }
  0x2b   : > { %964 = vmatmul.mubr.f32.gmra.mrb[6].mxu0 %v342_v40  ;;  %v399_v40 = vand.u32 4294901760, %v398_v34 }
  0x2c   : > { %345 = vmatmul.mubr.f32.gmra.mrb[6].mxu1 %v344_v56  ;;  %969 = vmatprep.mubr.f32.mxu0 %v5598_v3  ;;  %v441_v56 = vand.u32 4294901760, %v5853_v47 }
  0x2d   : > { %350 = vmatprep.mubr.f32.mxu1 %v5598_v3 }
  0x2f   : > { %973 = vmatmul.mubr.f32.gmra.mrb[8].mxu0 %v353_v51  ;;  %v430_v51 = vand.u32 4294901760, %v5845_v44 }
  0x30   : > { %356 = vmatmul.mubr.f32.gmra.mrb[8].mxu1 %v355_v63  ;;  %978 = vmatprep.mubr.f32.mxu0 %v5598_v3 }
  0x31   : > { %361 = vmatprep.mubr.f32.mxu1 %v5598_v3  ;;  %v431_v60 = vsub.f32 %v5845_v44, %v430_v51 }
  0x33   : > { %982 = vmatmul.mubr.f32.gmra.mrb[10].mxu0 %v364_v55  ;;  %v188_v55 = vld [vmem:[%s8804_s0 + $0x78] sm:$0xff]  ;;  %v432_v4 = vand.u32 4294901760, %v431_v60 }
  0x34   : > { %367 = vmatmul.mubr.f32.gmra.mrb[10].mxu1 %v366_v6  ;;  %987 = vmatprep.mubr.f32.mxu0 %v5598_v3  ;;  %v238_v63 = vsel %vm191_vm0, %v188_v55, 0  ;;  %v5879_v6 = vsub.f32 %v235_v54, %v5871_v62 }
  0x35   : > { %372 = vmatprep.mubr.f32.mxu1 %v5598_v3  ;;  %v5881_v7 = vand.u32 4294901760, %v238_v63 }
  0x36   : > { %v463_v19 = vand.u32 4294901760, %v5879_v6 }
  0x37   : > { %991 = vmatmul.mubr.f32.gmra.mrb[12].mxu0 %v375_v0  ;;  %v442_v0 = vsub.f32 %v5853_v47, %v441_v56  ;;  %v5888_v21 = vsub.f32 %v238_v63, %v5881_v7 }
  0x38   : > { %378 = vmatmul.mubr.f32.gmra.mrb[12].mxu1 %v377_v22  ;;  %996 = vmatprep.mubr.f32.mxu0 %v5598_v3  ;;  %v464_v23 = vsub.f32 %v5879_v6, %v463_v19 }
  0x39   : > { %383 = vmatprep.mubr.f32.mxu1 %v5598_v3  ;;  %v443_v8 = vand.u32 4294901760, %v442_v0 }
  0x3a   : > { %v465_v28 = vand.u32 4294901760, %v464_v23 }
  0x3b   : > { %1000 = vmatmul.mubr.f32.gmra.mrb[14].mxu0 %v386_v12  ;;  %v453_v12 = vsub.f32 %v5869_v61, %v452_v5 }
  0x3c   : > { %389 = vmatmul.mubr.f32.gmra.mrb[14].mxu1 %v388_v33  ;;  %1005 = vmatprep.mubr.f32.mxu0 %v5598_v3 }
  0x3d   : > { %394 = vmatprep.mubr.f32.mxu1 %v5598_v3  ;;  %v454_v22 = vand.u32 4294901760, %v453_v12  ;;  %v5602_v12 = vmov 2102212464  }
  0x3f   : > { %1009 = vmatmul.mubr.f32.gmra.mrb[16].mxu0 %v397_v26  ;;  %v474_v26 = vand.u32 4294901760, %v5888_v21 }
  0x40   : > { %400 = vmatmul.mubr.f32.gmra.mrb[16].mxu1 %v399_v40  ;;  %1014 = vmatprep.mubr.f32.mxu0 %v5598_v3 }
  0x41   : > { %405 = vmatprep.mubr.f32.mxu1 %v5598_v3  ;;  %v475_v32 = vsub.f32 %v5888_v21, %v474_v26 }
  0x43   : > { %1018 = vmatmul.mubr.f32.gmra.mrb[18].mxu0 %v408_v35  ;;  %v476_v33 = vand.u32 4294901760, %v475_v32 }
  0x44   : > { %411 = vmatmul.mubr.f32.gmra.mrb[18].mxu1 %v410_v49  ;;  %1023 = vmatprep.mubr.f32.mxu0 %v5598_v3 }
  0x45   : > { %416 = vmatprep.mubr.f32.mxu1 %v5598_v3 }
  0x47   : > { %1027 = vmatmul.mubr.f32.gmra.mrb[20].mxu0 %v419_v43 }
  0x48   : > { %422 = vmatmul.mubr.f32.gmra.mrb[20].mxu1 %v421_v57  ;;  %1032 = vmatprep.mubr.f32.mxu0 %v5598_v3 }
  0x49   : > { %427 = vmatprep.mubr.f32.mxu1 %v5598_v3 }
  0x4b   : > { %1036 = vmatmul.mubr.f32.gmra.mrb[22].mxu0 %v430_v51 }
  0x4c   : > { %433 = vmatmul.mubr.f32.gmra.mrb[22].mxu1 %v432_v4  ;;  %1041 = vmatprep.mubr.f32.mxu0 %v5598_v3 }
  0x4d   : > { %438 = vmatprep.mubr.f32.mxu1 %v5598_v3 }
  0x4f   : > { %1045 = vmatmul.mubr.f32.gmra.mrb[24].mxu0 %v441_v56 }
  0x50   : > { %444 = vmatmul.mubr.f32.gmra.mrb[24].mxu1 %v443_v8  ;;  %1050 = vmatprep.mubr.f32.mxu0 %v5598_v3 }
  0x51   : > { %449 = vmatprep.mubr.f32.mxu1 %v5598_v3 }
  0x53   : > { %1054 = vmatmul.mubr.f32.gmra.mrb[26].mxu0 %v452_v5  ;;  %v5600_v5 = vmov 2475754826  }
  0x54   : > { %455 = vmatmul.mubr.f32.gmra.mrb[26].mxu1 %v454_v22  ;;  %1059 = vmatprep.mubr.f32.mxu0 %v5598_v3 }
  0x55   : > { %460 = vmatprep.mubr.f32.mxu1 %v5598_v3 }
  0x57   : > { %1063 = vmatmul.mubr.f32.gmra.mrb[28].mxu0 %v463_v19 }
  0x58   : > { %466 = vmatmul.mubr.f32.gmra.mrb[28].mxu1 %v465_v28  ;;  %1068 = vmatprep.mubr.f32.mxu0 %v5598_v3 }
  0x59   : > { %471 = vmatprep.mubr.f32.mxu1 %v5598_v3 }
  0x5b   : > { %1072 = vmatmul.mubr.f32.gmra.mrb[30].mxu0 %v474_v26 }
  0x5c   : > { %477 = vmatmul.mubr.f32.gmra.mrb[30].mxu1 %v476_v33  ;;  %1148 = vmatprep.mubr.f32.mxu0 %v5598_v3 }
  0x5d   : > { %557 = vmatprep.mubr.f32.mxu1 %v5598_v3 }
  0x5f   : > { %1150 = vmatmul.mubr.f32.vlgmr.msra.gmra.mrb[0].mxu0 %v5700_v9 }
  0x60   : > { %559 = vmatmul.mubr.f32.vlgmr.msra.gmra.mrb[0].mxu1 %v5700_v9  ;;  %1155 = vmatprep.mubr.f32.mxu0 %v5598_v3 }
  0x61   : > { %564 = vmatprep.mubr.f32.mxu1 %v5598_v3  ;;  %675 = vmatpush1.msra.mxu1 %v5739_v31 }
  0x62   : > { %1264 = vmatpush1.msra.mxu0 %v5727_v24 }
  0x63   : > { %1157 = vmatmul.mubr.f32.gmra.mrb[2].mxu0 %v5702_v10 }
  0x64   : > { %566 = vmatmul.mubr.f32.gmra.mrb[2].mxu1 %v5702_v10  ;;  %1162 = vmatprep.mubr.f32.mxu0 %v5598_v3 }
  0x65   : > { %571 = vmatprep.mubr.f32.mxu1 %v5598_v3 }
  0x67   : > { %1164 = vmatmul.mubr.f32.gmra.mrb[4].mxu0 %v5704_v11 }
  0x68   : > { %573 = vmatmul.mubr.f32.gmra.mrb[4].mxu1 %v5704_v11  ;;  %1169 = vmatprep.mubr.f32.mxu0 %v5598_v3 }
  0x69   : > { %578 = vmatprep.mubr.f32.mxu1 %v5598_v3 }
  0x6b   : > { %1171 = vmatmul.mubr.f32.gmra.mrb[6].mxu0 %v5707_v13 }
  0x6c   : > { %580 = vmatmul.mubr.f32.gmra.mrb[6].mxu1 %v5707_v13  ;;  %1176 = vmatprep.mubr.f32.mxu0 %v5598_v3 }
  0x6d   : > { %585 = vmatprep.mubr.f32.mxu1 %v5598_v3 }
  0x6f   : > { %1178 = vmatmul.mubr.f32.gmra.mrb[8].mxu0 %v5729_v25 }
  0x70   : > { %587 = vmatmul.mubr.f32.gmra.mrb[8].mxu1 %v5729_v25  ;;  %1183 = vmatprep.mubr.f32.mxu0 %v5598_v3 }
  0x71   : > { %592 = vmatprep.mubr.f32.mxu1 %v5598_v3 }
  0x73   : > { %1185 = vmatmul.mubr.f32.gmra.mrb[10].mxu0 %v5747_v37 }
  0x74   : > { %594 = vmatmul.mubr.f32.gmra.mrb[10].mxu1 %v5747_v37  ;;  %1190 = vmatprep.mubr.f32.mxu0 %v5598_v3 }
  0x75   : > { %599 = vmatprep.mubr.f32.mxu1 %v5598_v3 }
  0x77   : > { %1192 = vmatmul.mubr.f32.gmra.mrb[12].mxu0 %v5767_v52 }
  0x78   : > { %601 = vmatmul.mubr.f32.gmra.mrb[12].mxu1 %v5767_v52  ;;  %1197 = vmatprep.mubr.f32.mxu0 %v5598_v3 }
  0x79   : > { %606 = vmatprep.mubr.f32.mxu1 %v5598_v3 }
  0x7b   : > { %1199 = vmatmul.mubr.f32.gmra.mrb[14].mxu0 %v5780_v59 }
  0x7c   : > { %608 = vmatmul.mubr.f32.gmra.mrb[14].mxu1 %v5780_v59  ;;  %1204 = vmatprep.mubr.f32.mxu0 %v5598_v3 }
  0x7d   : > { %613 = vmatprep.mubr.f32.mxu1 %v5598_v3 }
  0x7f   : > { %1206 = vmatmul.mubr.f32.gmra.mrb[16].mxu0 %v5793_v2 }
  0x80   : > { %615 = vmatmul.mubr.f32.gmra.mrb[16].mxu1 %v5793_v2  ;;  %1211 = vmatprep.mubr.f32.mxu0 %v5598_v3 }
  0x81   : > { %620 = vmatprep.mubr.f32.mxu1 %v5598_v3 }
  0x83   : > { %1213 = vmatmul.mubr.f32.gmra.mrb[18].mxu0 %v5807_v18 }
  0x84   : > { %622 = vmatmul.mubr.f32.gmra.mrb[18].mxu1 %v5807_v18  ;;  %1218 = vmatprep.mubr.f32.mxu0 %v5598_v3 }
  0x85   : > { %627 = vmatprep.mubr.f32.mxu1 %v5598_v3 }
  0x87   : > { %1220 = vmatmul.mubr.f32.gmra.mrb[20].mxu0 %v5813_v20 }
  0x88   : > { %629 = vmatmul.mubr.f32.gmra.mrb[20].mxu1 %v5813_v20  ;;  %1225 = vmatprep.mubr.f32.mxu0 %v5598_v3 }
  0x89   : > { %634 = vmatprep.mubr.f32.mxu1 %v5598_v3 }
  0x8b   : > { %1227 = vmatmul.mubr.f32.gmra.mrb[22].mxu0 %v5826_v29 }
  0x8c   : > { %636 = vmatmul.mubr.f32.gmra.mrb[22].mxu1 %v5826_v29  ;;  %1232 = vmatprep.mubr.f32.mxu0 %v5598_v3 }
  0x8d   : > { %641 = vmatprep.mubr.f32.mxu1 %v5598_v3 }
  0x8f   : > { %1234 = vmatmul.mubr.f32.gmra.mrb[24].mxu0 %v5839_v39 }
  0x90   : > { %643 = vmatmul.mubr.f32.gmra.mrb[24].mxu1 %v5839_v39  ;;  %1239 = vmatprep.mubr.f32.mxu0 %v5598_v3 }
  0x91   : > { %648 = vmatprep.mubr.f32.mxu1 %v5598_v3 }
  0x93   : > { %1241 = vmatmul.mubr.f32.gmra.mrb[26].mxu0 %v5858_v53 }
  0x94   : > { %650 = vmatmul.mubr.f32.gmra.mrb[26].mxu1 %v5858_v53  ;;  %1246 = vmatprep.mubr.f32.mxu0 %v5598_v3 }
  0x95   : > { %655 = vmatprep.mubr.f32.mxu1 %v5598_v3 }
  0x97   : > { %1248 = vmatmul.mubr.f32.gmra.mrb[28].mxu0 %v5871_v62 }
  0x98   : > { %657 = vmatmul.mubr.f32.gmra.mrb[28].mxu1 %v5871_v62  ;;  %1253 = vmatprep.mubr.f32.mxu0 %v5598_v3 }
  0x99   : > { %662 = vmatprep.mubr.f32.mxu1 %v5598_v3 }
  0x9b   : > { %1255 = vmatmul.mubr.f32.gmra.mrb[30].mxu0 %v5881_v7 }
  0x9c   : > { %664 = vmatmul.mubr.f32.gmra.mrb[30].mxu1 %v5881_v7  ;;  %1327 = vmatprep.mubr.f32.mxu0 %v5598_v3 }
  0x9d   : > { %738 = vmatprep.mubr.f32.mxu1 %v5598_v3 }
  0x9f   : > { %1329 = vmatmul.mubr.f32.vlgmr.msra.gmra.mrb[0].mxu0 %v5700_v9 }
  0xa0   : > { %741 = vmatmul.mubr.f32.vlgmr.msra.gmra.mrb[0].mxu1 %v5710_v14  ;;  %1334 = vmatprep.mubr.f32.mxu0 %v5598_v3 }
  0xa1   : > { %746 = vmatprep.mubr.f32.mxu1 %v5598_v3 }
  0xa3   : > { %1336 = vmatmul.mubr.f32.gmra.mrb[2].mxu0 %v5702_v10 }
  0xa4   : > { %749 = vmatmul.mubr.f32.gmra.mrb[2].mxu1 %v5713_v15  ;;  %1341 = vmatprep.mubr.f32.mxu0 %v5598_v3 }
  0xa5   : > { %754 = vmatprep.mubr.f32.mxu1 %v5598_v3 }
  0xa7   : > { %1343 = vmatmul.mubr.f32.gmra.mrb[4].mxu0 %v5704_v11 }
  0xa8   : > { %757 = vmatmul.mubr.f32.gmra.mrb[4].mxu1 %v5716_v16  ;;  %1348 = vmatprep.mubr.f32.mxu0 %v5598_v3 }
  0xa9   : > { %762 = vmatprep.mubr.f32.mxu1 %v5598_v3 }
  0xab   : > { %1350 = vmatmul.mubr.f32.gmra.mrb[6].mxu0 %v5707_v13 }
  0xac   : > { %765 = vmatmul.mubr.f32.gmra.mrb[6].mxu1 %v5736_v30  ;;  %1355 = vmatprep.mubr.f32.mxu0 %v5598_v3 }
  0xad   : > { %770 = vmatprep.mubr.f32.mxu1 %v5598_v3 }
  0xaf   : > { %1357 = vmatmul.mubr.f32.gmra.mrb[8].mxu0 %v5729_v25 }
  0xb0   : > { %773 = vmatmul.mubr.f32.gmra.mrb[8].mxu1 %v5753_v41  ;;  %1362 = vmatprep.mubr.f32.mxu0 %v5598_v3 }
  0xb1   : > { %778 = vmatprep.mubr.f32.mxu1 %v5598_v3 }
  0xb3   : > { %1364 = vmatmul.mubr.f32.gmra.mrb[10].mxu0 %v5747_v37 }
  0xb4   : > { %781 = vmatmul.mubr.f32.gmra.mrb[10].mxu1 %v5762_v48  ;;  %1369 = vmatprep.mubr.f32.mxu0 %v5598_v3 }
  0xb5   : > { %786 = vmatprep.mubr.f32.mxu1 %v5598_v3 }
  0xb7   : > { %1371 = vmatmul.mubr.f32.gmra.mrb[12].mxu0 %v5767_v52 }
  0xb8   : > { %789 = vmatmul.mubr.f32.gmra.mrb[12].mxu1 %v5778_v58  ;;  %1376 = vmatprep.mubr.f32.mxu0 %v5598_v3 }
  0xb9   : > { %794 = vmatprep.mubr.f32.mxu1 %v5598_v3 }
  0xbb   : > { %1378 = vmatmul.mubr.f32.gmra.mrb[14].mxu0 %v5780_v59 }
  0xbc   : > { %797 = vmatmul.mubr.f32.gmra.mrb[14].mxu1 %v5791_v1  ;;  %1383 = vmatprep.mubr.f32.mxu0 %v5598_v3 }
  0xbd   : > { %802 = vmatprep.mubr.f32.mxu1 %v5598_v3 }
  0xbf   : > { %1385 = vmatmul.mubr.f32.gmra.mrb[16].mxu0 %v5793_v2 }
  0xc0   : > { %805 = vmatmul.mubr.f32.gmra.mrb[16].mxu1 %v5805_v17  ;;  %1390 = vmatprep.mubr.f32.mxu0 %v5598_v3 }
  0xc1   : > { %810 = vmatprep.mubr.f32.mxu1 %v5598_v3 }
  0xc3   : > { %1392 = vmatmul.mubr.f32.gmra.mrb[18].mxu0 %v5807_v18 }
  0xc4   : > { %813 = vmatmul.mubr.f32.gmra.mrb[18].mxu1 %v5820_v27  ;;  %1397 = vmatprep.mubr.f32.mxu0 %v5598_v3 }
  0xc5   : > { %818 = vmatprep.mubr.f32.mxu1 %v5598_v3 }
  0xc7   : > { %1399 = vmatmul.mubr.f32.gmra.mrb[20].mxu0 %v5813_v20 }
  0xc8   : > { %821 = vmatmul.mubr.f32.gmra.mrb[20].mxu1 %v5833_v36  ;;  %1404 = vmatprep.mubr.f32.mxu0 %v5598_v3 }
  0xc9   : > { %826 = vmatprep.mubr.f32.mxu1 %v5598_v3 }
  0xcb   : > { %1406 = vmatmul.mubr.f32.gmra.mrb[22].mxu0 %v5826_v29 }
  0xcc   : > { %829 = vmatmul.mubr.f32.gmra.mrb[22].mxu1 %v5845_v44  ;;  %1411 = vmatprep.mubr.f32.mxu0 %v5598_v3 }
  0xcd   : > { %834 = vmatprep.mubr.f32.mxu1 %v5598_v3 }
  0xcf   : > { %1413 = vmatmul.mubr.f32.gmra.mrb[24].mxu0 %v5839_v39 }
  0xd0   : > { %837 = vmatmul.mubr.f32.gmra.mrb[24].mxu1 %v5853_v47  ;;  %1418 = vmatprep.mubr.f32.mxu0 %v5598_v3 }
  0xd1   : > { %842 = vmatprep.mubr.f32.mxu1 %v5598_v3 }
  0xd3   : > { %1420 = vmatmul.mubr.f32.gmra.mrb[26].mxu0 %v5858_v53 }
  0xd4   : > { %845 = vmatmul.mubr.f32.gmra.mrb[26].mxu1 %v5869_v61  ;;  %1425 = vmatprep.mubr.f32.mxu0 %v5598_v3 }
  0xd5   : > { %850 = vmatprep.mubr.f32.mxu1 %v5598_v3 }
  0xd7   : > { %1427 = vmatmul.mubr.f32.gmra.mrb[28].mxu0 %v5871_v62  ;;  %v5599_v62 = vmov 683565275  }
  0xd8   : > { %853 = vmatmul.mubr.f32.gmra.mrb[28].mxu1 %v5879_v6  ;;  %1432 = vmatprep.mubr.f32.mxu0 %v5598_v3 }
  0xd9   : > { %858 = vmatprep.mubr.f32.mxu1 %v5598_v3 }
  0xdb   : > { %1434 = vmatmul.mubr.f32.gmra.mrb[30].mxu0 %v5881_v7  ;;  %v5601_v7 = vmov 2131351028  }
  0xdc   : > { %861 = vmatmul.mubr.f32.gmra.mrb[30].mxu1 %v5888_v21  ;;  %v5603_v21 = vmov 920167782  }
 0x172   : > { %v1330_v9 = vpop.f32.mrb[0].mxu0 }
 0x173   : > { %v742_v10 = vpop.f32.mrb[0].mxu1  ;;  %v1332_v11 = vpop.f32.mrb[1].mxu0 }
 0x174   : > { %v6030_v13 = vadd.f32 %v1330_v9, %v742_v10  ;;  %v744_v14 = vpop.f32.mrb[1].mxu1  ;;  %v5604_v9 = vmov 1326507024  }
 0x175   : > { %v6032_v15 = vadd.f32 %v1332_v11, %v744_v14 }
 0x176   : > { %v1440_v16 = vand.u32 2147483647, %v6030_v13  ;;  %v1443_v24 = vand.u32 2139095040, %v6030_v13  ;;  %v1337_v25 = vpop.f32.mrb[2].mxu0  ;;  %vm1442_vm14 = vcmp.lt.s32.totalorder %v6030_v13, 0 }
 0x177   : > { %v1544_v30 = vand.u32 2147483647, %v6032_v15  ;;  %v1547_v3 = vand.u32 2139095040, %v6032_v15  ;;  %v750_v31 = vpop.f32.mrb[2].mxu1  ;;  %v1339_v37 = vpop.f32.mrb[3].mxu0  ;;  %vm1546_vm0 = vcmp.lt.s32.totalorder %v6032_v15, 0 }
 0x178   : > { %v1444_v41 = vshrl.u32 %v1443_v24, 23  ;;  %v1447_v48 = vand.u32 8388607, %v1440_v16  ;;  %v6040_v52 = vadd.f32 %v1337_v25, %v750_v31  ;;  %v752_v58 = vpop.f32.mrb[3].mxu1  ;;  %vm6181_vm15 = vcmp.le.f32.partialorder %v1440_v16, 0.7853982 }
 0x179   : > { %v1548_v59 = vshrl.u32 %v1547_v3, 23  ;;  %v1551_v1 = vand.u32 8388607, %v1544_v30  ;;  %v6044_v2 = vadd.f32 %v1339_v37, %v752_v58 }
 0x17a   : > { %v4903_v17 = vadd.s32 4294967169, %v1444_v41  ;;  %v6046_v18 = vpop.f32.mrb[4].mxu0  ;;  %v1651_v27 = vand.u32 2139095040, %v6040_v52  ;;  %v1448_v35 = vor.u32 8388608, %v1447_v48  ;;  %v1648_v40 = vand.u32 2147483647, %v6040_v52 }
 0x17b   : > { %v4907_v20 = vadd.s32 4294967169, %v1548_v59  ;;  %v6049_v29 = vpop.f32.mrb[4].mxu1  ;;  %v6051_v34 = vpop.f32.mrb[5].mxu0  ;;  %v1552_v38 = vor.u32 8388608, %v1551_v1 }
 0x17c   : > { %v1450_v36 = vadd.s32 1, %v4903_v17  ;;  %v1652_v42 = vshrl.u32 %v1651_v27, 23  ;;  %v6054_v43 = vpop.f32.mrb[5].mxu1  ;;  %v6064_v55 = vshll.u32 %v1448_v35, 8  ;;  %v6072_v60 = vand.u32 8388607, %v1648_v40 }
 0x17d   : > { %v1554_v39 = vadd.s32 1, %v4907_v20  ;;  %v6068_v57 = vshll.u32 %v1552_v38, 8 }
 0x17e   : > { %vm1451_vm1 = vcmp.gt.s32.totalorder %v1450_v36, 0  ;;  %v6056_v44 = vpop.f32.mrb[6].mxu0  ;;  %v4911_v46 = vadd.s32 4294967169, %v1652_v42 }
 0x17f   : > { %v1452_v45 = vsel %vm1451_vm1, %v1450_v36, 0  ;;  %vm1555_vm2 = vcmp.gt.s32.totalorder %v1554_v39, 0  ;;  %v6058_v47 = vpop.f32.mrb[6].mxu1  ;;  %v6060_v53 = vpop.f32.mrb[7].mxu0 }
 0x180   : > { %v1453_v49 = vshrl.u32 %v1452_v45, 5  ;;  %v1454_v50 = vand.u32 31, %v1452_v45  ;;  %v1556_v51 = vsel %vm1555_vm2, %v1554_v39, 0  ;;  %v6062_v54 = vpop.f32.mrb[7].mxu1  ;;  %v6075_v4 = vadd.s32 1, %v4911_v46 }
 0x181   : > { %v6066_v56 = vshrl.u32 %v1556_v51, 5  ;;  %v1558_v0 = vand.u32 31, %v1556_v51 }
 0x182   : > { %v1455_v61 = vsub.s32 32, %v1454_v50  ;;  %v1457_v63 = vshll.u32 %v5599_v62, %v1454_v50  ;;  %v1460_v6 = vshll.u32 %v5600_v5, %v1454_v50  ;;  %v1463_v8 = vshll.u32 %v5601_v7, %v1454_v50 }
 0x183   : > { %v1466_v19 = vshll.u32 %v5602_v12, %v1454_v50  ;;  %v1469_v22 = vshll.u32 %v5603_v21, %v1454_v50  ;;  %vm1472_vm3 = vcmp.lt.s32.totalorder %v1453_v49, 1  ;;  %vm1473_vm4 = vcmp.lt.s32.totalorder %v1453_v49, 2 }
 0x184   : > { %v1458_v23 = vshrl.u32 %v5600_v5, %v1455_v61  ;;  %v1461_v26 = vshrl.u32 %v5601_v7, %v1455_v61  ;;  %v1464_v28 = vshrl.u32 %v5602_v12, %v1455_v61  ;;  %v1456_v32 = vshrl.u32 %v5599_v62, %v1455_v61 }
 0x185   : > { %v1467_v33 = vshrl.u32 %v5603_v21, %v1455_v61  ;;  %v1470_v10 = vshrl.u32 %v5604_v9, %v1455_v61  ;;  %v1559_v25 = vsub.s32 32, %v1558_v0  ;;  %vm1474_vm5 = vcmp.lt.s32.totalorder %v1453_v49, 3 }
 0x186   : > { %v1459_v11 = vor.u32 %v1458_v23, %v1457_v63  ;;  %v1462_v14 = vor.u32 %v1461_v26, %v1460_v6  ;;  %v1465_v24 = vor.u32 %v1464_v28, %v1463_v8  ;;  %vm1475_vm6 = vcmp.lt.s32.totalorder %v1453_v49, 4 }
 0x187   : > { %v1468_v3 = vor.u32 %v1467_v33, %v1466_v19  ;;  %v1471_v31 = vor.u32 %v1470_v10, %v1469_v22  ;;  %v1561_v20 = vshll.u32 %v5599_v62, %v1558_v0  ;;  %v1562_v36 = vshrl.u32 %v5600_v5, %v1559_v25 }
 0x188   : > { %v1476_v37 = vsel %vm1472_vm3, %v1456_v32, %v1459_v11  ;;  %v1477_v41 = vsel %vm1475_vm6, %v1465_v24, 2102212464  ;;  %v1480_v48 = vsel %vm1472_vm3, %v1459_v11, %v1462_v14  ;;  %v1484_v58 = vsel %vm1472_vm3, %v1462_v14, %v1465_v24 }
 0x189   : > { %v1478_v59 = vsel %vm1474_vm5, %v1462_v14, %v1477_v41  ;;  %v1481_v1 = vsel %vm1475_vm6, %v1468_v3, 920167782  ;;  %v1485_v17 = vsel %vm1475_vm6, %v1471_v31, 1326507024  ;;  %v1564_v38 = vshll.u32 %v5600_v5, %v1558_v0 }
 0x18a   : > { %v1482_v27 = vsel %vm1474_vm5, %v1465_v24, %v1481_v1  ;;  %v1486_v35 = vsel %vm1474_vm5, %v1468_v3, %v1485_v17  ;;  %v1479_v39 = vsel %vm1473_vm4, %v1476_v37, %v1478_v59  ;;  %v1565_v46 = vshrl.u32 %v5601_v7, %v1559_v25 }
 0x18b   : > { %v1483_v42 = vsel %vm1473_vm4, %v1480_v48, %v1482_v27  ;;  %v1487_v45 = vsel %vm1473_vm4, %v1484_v58, %v1486_v35  ;;  %v1563_v6 = vor.u32 %v1562_v36, %v1561_v20  ;;  %v1567_v19 = vshll.u32 %v5601_v7, %v1558_v0  ;;  %v6123_v20 = vpop.f32.mrb[8].mxu0 }
 0x18c   : > { %v6098_v50 = vmul.u32.u64.low %v6064_v55, %v1487_v45  ;;  %v6099_v51 = vmul.u32.u64.high %v6064_v55, %v1487_v45, %v6098_v50  ;;  %v6102_v61 = vmul.u32.u64.low %v6064_v55, %v1483_v42  ;;  %v6103_v63 = vmul.u32.u64.high %v6064_v55, %v1483_v42, %v6102_v61 }
 0x18d   : > { %v1566_v8 = vor.u32 %v1565_v46, %v1564_v38  ;;  %v1568_v22 = vshrl.u32 %v5602_v12, %v1559_v25  ;;  %v1560_v23 = vshrl.u32 %v5599_v62, %v1559_v25  ;;  %v1570_v49 = vshll.u32 %v5602_v12, %v1558_v0 }
 0x18e   : > { %v1571_v26 = vshrl.u32 %v5603_v21, %v1559_v25  ;;  %v1574_v28 = vshrl.u32 %v5604_v9, %v1559_v25  ;;  %v1495_v32 = vmul.u32 %v6064_v55, %v1479_v39  ;;  %v1573_v10 = vshll.u32 %v5603_v21, %v1558_v0  ;;  %v6132_v39 = vpop.f32.mrb[8].mxu1 }
 0x18f   : > { %v1569_v33 = vor.u32 %v1568_v22, %v1567_v19  ;;  %vm1576_vm7 = vcmp.lt.s32.totalorder %v6066_v56, 1  ;;  %vm1497_vm8 = vc.u32 %v6099_v51, %v6102_v61  ;;  %v1498_v11 = vadd.s32 1, %v6103_v63 }
 0x190   : > { %v1572_v14 = vor.u32 %v1571_v26, %v1570_v49  ;;  %vm1577_vm9 = vcmp.lt.s32.totalorder %v6066_v56, 2  ;;  %v1575_v24 = vor.u32 %v1574_v28, %v1573_v10  ;;  %vm1578_vm10 = vcmp.lt.s32.totalorder %v6066_v56, 3 }
 0x191   : > { %vm1579_vm11 = vcmp.lt.s32.totalorder %v6066_v56, 4  ;;  %v1584_v25 = vsel %vm1576_vm7, %v1563_v6, %v1566_v8  ;;  %v1499_v55 = vsel %vm1497_vm8, %v1498_v11, %v6103_v63  ;;  %v1588_v0 = vsel %vm1576_vm7, %v1566_v8, %v1569_v33 }
 0x192   : > { %v1581_v3 = vsel %vm1579_vm11, %v1569_v33, 2102212464  ;;  %v1585_v31 = vsel %vm1579_vm11, %v1572_v14, 920167782  ;;  %v1500_v37 = vadd.s32 %v1499_v55, %v1495_v32  ;;  %v1580_v41 = vsel %vm1576_vm7, %v1560_v23, %v1563_v6 }
 0x193   : > { %v1586_v48 = vsel %vm1578_vm10, %v1569_v33, %v1585_v31  ;;  %v1589_v58 = vsel %vm1579_vm11, %v1575_v24, 1326507024  ;;  %v1582_v59 = vsel %vm1578_vm10, %v1566_v8, %v1581_v3  ;;  %vm1659_vm12 = vcmp.gt.s32.totalorder %v6075_v4, 0 }
 0x194   : > { %v1587_v1 = vsel %vm1577_vm9, %v1584_v25, %v1586_v48  ;;  %v1590_v17 = vsel %vm1578_vm10, %v1572_v14, %v1589_v58  ;;  %v1501_v27 = vadd.s32 536870912, %v1500_v37  ;;  %v1660_v46 = vsel %vm1659_vm12, %v6075_v4, 0 }
 0x195   : > { %v1591_v35 = vsel %vm1577_vm9, %v1588_v0, %v1590_v17  ;;  %v6128_v36 = vmul.u32.u64.low %v6068_v57, %v1587_v1  ;;  %v6129_v38 = vmul.u32.u64.high %v6068_v57, %v1587_v1, %v6128_v36  ;;  %v1583_v63 = vsel %vm1577_vm9, %v1580_v41, %v1582_v59 }
 0x196   : > { %v6135_v42 = vmul.u32.u64.low %v6068_v57, %v1591_v35  ;;  %v6136_v45 = vmul.u32.u64.high %v6068_v57, %v1591_v35, %v6135_v42  ;;  %v1502_v50 = vshrl.u32 %v1501_v27, 30  ;;  %v1662_v6 = vand.u32 31, %v1660_v46 }
 0x197   : > { %v1755_v8 = vand.u32 2139095040, %v6044_v2  ;;  %v6144_v19 = vadd.f32 %v6046_v18, %v6049_v29  ;;  %v6148_v22 = vadd.f32 %v6051_v34, %v6054_v43  ;;  %v1602_v49 = vadd.s32 1, %v6129_v38 }
 0x198   : > { %v1503_v23 = vshll.u32 %v1502_v50, 30  ;;  %v1656_v4 = vor.u32 8388608, %v6072_v60  ;;  %v1599_v26 = vmul.u32 %v6068_v57, %v1583_v63  ;;  %vm1601_vm13 = vc.u32 %v6136_v45, %v6128_v36 }
 0x199   : > { %v1663_v56 = vsub.s32 32, %v1662_v6  ;;  %v1603_v18 = vsel %vm1601_vm13, %v1602_v49, %v6129_v38  ;;  %v1756_v29 = vshrl.u32 %v1755_v8, 23  ;;  %v1752_v43 = vand.u32 2147483647, %v6044_v2 }
 0x19a   : > { %v6155_v28 = vsub.s32 %v1500_v37, %v1503_v23  ;;  %v1604_v34 = vadd.s32 %v1603_v18, %v1599_v26  ;;  %v1496_v32 = vadd.s32 %v6102_v61, %v6099_v51  ;;  %v6162_v33 = vshrl.u32 %v1660_v46, 5 }
 0x19b   : > { %v6164_v57 = vshll.u32 %v1656_v4, 8  ;;  %v1526_v10 = vsub.s32 4, %v1502_v50  ;;  %v1666_v14 = vshrl.u32 %v5600_v5, %v1663_v56  ;;  %v1669_v24 = vshrl.u32 %v5601_v7, %v1663_v56 }
 0x19c   : > { %v1506_v60 = vsub.s32 0, %v6155_v28  ;;  %v1605_v11 = vadd.s32 536870912, %v1604_v34  ;;  %v1672_v55 = vshrl.u32 %v5602_v12, %v1663_v56  ;;  %v1675_v3 = vshrl.u32 %v5603_v21, %v1663_v56 }
 0x19d   : > { %v6171_v31 = vadd.s32 4294967169, %v1756_v29  ;;  %v1665_v61 = vshll.u32 %v5599_v62, %v1662_v6  ;;  %v1668_v0 = vshll.u32 %v5600_v5, %v1662_v6  ;;  %v6177_v37 = vand.u32 8388607, %v1752_v43 }
 0x19e   : > { %v4904_v25 = vmin.u32 %v1506_v60, %v6155_v28  ;;  %v1606_v51 = vshrl.u32 %v1605_v11, 30  ;;  %v1671_v58 = vshll.u32 %v5601_v7, %v1662_v6  ;;  %v1674_v59 = vshll.u32 %v5602_v12, %v1662_v6 }
 0x19f   : > { %v1678_v1 = vshrl.u32 %v5604_v9, %v1663_v56  ;;  %v1527_v17 = vsel %vm1442_vm14, %v1526_v10, %v1502_v50  ;;  %v1667_v35 = vor.u32 %v1666_v14, %v1665_v61  ;;  %v1670_v38 = vor.u32 %v1669_v24, %v1668_v0 }
 0x1a0   : > { %v1508_v48 = vclz %v4904_v25  ;;  %v1607_v27 = vshll.u32 %v1606_v51, 30  ;;  %v1673_v16 = vor.u32 %v1672_v55, %v1671_v58  ;;  %v1676_v46 = vor.u32 %v1675_v3, %v1674_v59 }
 0x1a1   : > { %v1677_v63 = vshll.u32 %v5603_v21, %v1662_v6  ;;  %v1630_v23 = vsub.s32 4, %v1606_v51  ;;  %v1664_v49 = vshrl.u32 %v5599_v62, %v1663_v56  ;;  %vm1680_vm1 = vcmp.lt.s32.totalorder %v6162_v33, 1 }
 0x1a2   : > { %v4905_v42 = vadd.s32 4294967294, %v1508_v48  ;;  %v6192_v8 = vsub.s32 %v1604_v34, %v1607_v27  ;;  %vm1681_vm3 = vcmp.lt.s32.totalorder %v6162_v33, 2  ;;  %vm1682_vm4 = vcmp.lt.s32.totalorder %v6162_v33, 3 }
 0x1a3   : > { %v1679_v4 = vor.u32 %v1678_v1, %v1677_v63  ;;  %vm6200_vm5 = vcmp.le.f32.partialorder %v1544_v30, 0.7853982  ;;  %vm1683_vm6 = vcmp.lt.s32.totalorder %v6162_v33, 4  ;;  %v1688_v56 = vsel %vm1680_vm1, %v1667_v35, %v1670_v38 }
 0x1a4   : > { %vm4906_vm2 = vcmp.lt.s32.totalorder %v4905_v42, 0  ;;  %v1610_v6 = vsub.s32 0, %v6192_v8  ;;  %v1685_v34 = vsel %vm1683_vm6, %v1673_v16, 2102212464  ;;  %v1689_v60 = vsel %vm1683_vm6, %v1676_v46, 920167782 }
 0x1a5   : > { %v1511_v50 = vsel %vm4906_vm2, 0, %v4905_v42  ;;  %v1690_v30 = vsel %vm1682_vm4, %v1673_v16, %v1689_v60  ;;  %v1692_v14 = vsel %vm1680_vm1, %v1670_v38, %v1673_v16  ;;  %v1693_v3 = vsel %vm1683_vm6, %v1679_v4, 1326507024  ;;  %v6246_v60 = vpop.f32.mrb[9].mxu0 }
 0x1a6   : > { %v1512_v18 = vsub.s32 32, %v1511_v50  ;;  %v1516_v29 = vsub.s32 4294967266, %v1511_v50  ;;  %v1513_v10 = vshll.u32 %v6155_v28, %v1511_v50  ;;  %v4908_v11 = vmin.u32 %v1610_v6, %v6192_v8 }
 0x1a7   : > { %v1691_v55 = vsel %vm1681_vm3, %v1688_v56, %v1690_v30  ;;  %v1529_v61 = vsel %vm6181_vm15, 0, %v1527_v17  ;;  %v1684_v28 = vsel %vm1680_vm1, %v1664_v49, %v1667_v35  ;;  %v1686_v48 = vsel %vm1682_vm4, %v1670_v38, %v1685_v34 }
 0x1a8   : > { %v1514_v24 = vshrl.u32 %v1496_v32, %v1512_v18  ;;  %v1517_v25 = vadd.s32 127, %v1516_v29  ;;  %v1612_v0 = vclz %v4908_v11  ;;  %v1631_v32 = vsel %vm1546_vm0, %v1630_v23, %v1606_v51 }
 0x1a9   : > { %v1694_v1 = vsel %vm1682_vm4, %v1676_v46, %v1693_v3  ;;  %v6229_v17 = vmul.u32.u64.low %v6164_v57, %v1691_v55  ;;  %v6230_v16 = vmul.u32.u64.high %v6164_v57, %v1691_v55, %v6229_v17  ;;  %v1687_v38 = vsel %vm1681_vm3, %v1684_v28, %v1686_v48 }
 0x1aa   : > { %v1515_v58 = vor.u32 %v1514_v24, %v1513_v10  ;;  %v1518_v59 = vshll.u32 %v1517_v25, 23  ;;  %v4909_v27 = vadd.s32 4294967294, %v1612_v0  ;;  %v1695_v42 = vsel %vm1681_vm3, %v1692_v14, %v1694_v1 }
 0x1ab   : > { %v6236_v63 = vmul.u32.u64.low %v6164_v57, %v1695_v42  ;;  %v6237_v49 = vmul.u32.u64.high %v6164_v57, %v1695_v42, %v6236_v63  ;;  %v1533_v51 = vadd.s32 3, %v1529_v61  ;;  %v1600_v46 = vadd.s32 %v6128_v36, %v6136_v45  ;;  %v6251_v45 = vpop.f32.mrb[9].mxu1 }
 0x1ac   : > { %v1519_v35 = vor.u32 4788187, %v1518_v59  ;;  %vm4910_vm7 = vcmp.lt.s32.totalorder %v4909_v27, 0  ;;  %v1762_v23 = vadd.s32 1, %v6171_v31  ;;  %v1522_v50 = vcvt.s32.f32 %v1515_v58 }
 0x1ad   : > { %v1615_v6 = vsel %vm4910_vm7, 0, %v4909_v27  ;;  %v1633_v56 = vsel %vm6200_vm5, 0, %v1631_v32  ;;  %v1703_v29 = vmul.u32 %v6164_v57, %v1687_v38  ;;  %v1706_v34 = vadd.s32 1, %v6230_v16 }
 0x1ae   : > { %v1520_v4 = vand.u32 2147483647, %v1519_v35  ;;  %v1616_v18 = vsub.s32 32, %v1615_v6  ;;  %v1620_v33 = vsub.s32 4294967266, %v1615_v6  ;;  %v1617_v36 = vshll.u32 %v6192_v8, %v1615_v6 }
 0x1af   : > { %vm1705_vm8 = vc.u32 %v6237_v49, %v6229_v17  ;;  %vm1763_vm9 = vcmp.gt.s32.totalorder %v1762_v23, 0  ;;  %v1637_v57 = vadd.s32 3, %v1633_v56  ;;  %v6259_v58 = vand.u32 3, %v1533_v51 }
 0x1b0   : > { %v1523_v10 = vmul.f32 %v1522_v50, %v1520_v4  ;;  %v1618_v31 = vshrl.u32 %v1600_v46, %v1616_v18  ;;  %v1621_v11 = vadd.s32 127, %v1620_v33  ;;  %v1707_v30 = vsel %vm1705_vm8, %v1706_v34, %v6230_v16 }
 0x1b1   : > { %v1764_v14 = vsel %vm1763_vm9, %v1762_v23, 0  ;;  %v1708_v25 = vadd.s32 %v1707_v30, %v1703_v29  ;;  %vm1650_vm10 = vcmp.lt.s32.totalorder %v6040_v52, 0  ;;  %v6262_v32 = vand.u32 3, %v1637_v57 }
 0x1b2   : > { %v1524_v24 = vxor.u32 2147483648, %v1523_v10  ;;  %v1766_v55 = vand.u32 31, %v1764_v14  ;;  %v1619_v3 = vor.u32 %v1618_v31, %v1617_v36  ;;  %v1622_v61 = vshll.u32 %v1621_v11, 23 }
 0x1b3   : > { %v1709_v0 = vadd.s32 536870912, %v1708_v25  ;;  %v1760_v27 = vor.u32 8388608, %v6177_v37  ;;  %v1859_v35 = vand.u32 2139095040, %v6144_v19  ;;  %vm6268_vm11 = vcmp.le.f32.partialorder %v1648_v40, 0.7853982 }
 0x1b4   : > { %v1525_v8 = vsel %vm1442_vm14, %v1524_v24, %v1523_v10  ;;  %v1767_v28 = vsub.s32 32, %v1766_v55  ;;  %v1623_v59 = vor.u32 4788187, %v1622_v61  ;;  %v1626_v16 = vcvt.s32.f32 %v1619_v3 }
 0x1b5   : > { %v1528_v48 = vsel %vm6181_vm15, %v6030_v13, %v1525_v8  ;;  %v1710_v1 = vshrl.u32 %v1709_v0, 30  ;;  %v6272_v63 = vshrl.u32 %v1764_v14, 5  ;;  %v1778_v4 = vshll.u32 %v5602_v12, %v1766_v55 }
 0x1b6   : > { %5390 = vcosq.f32 %v1528_v48  ;;  %v1624_v42 = vand.u32 2147483647, %v1623_v59  ;;  %v1770_v51 = vshrl.u32 %v5600_v5, %v1767_v28  ;;  %v1773_v46 = vshrl.u32 %v5601_v7, %v1767_v28 }
 0x1b7   : > { %5392 = vsinq.f32 %v1528_v48  ;;  %v1711_v38 = vshll.u32 %v1710_v1, 30  ;;  %v1776_v37 = vshrl.u32 %v5602_v12, %v1767_v28  ;;  %v1779_v50 = vshrl.u32 %v5603_v21, %v1767_v28 }
 0x1b8   : > { %v1627_v23 = vmul.f32 %v1626_v16, %v1624_v42  ;;  %vm1539_vm12 = vcmp.eq.s32.totalorder %v6259_v58, 2  ;;  %v1734_v6 = vsub.s32 4, %v1710_v1  ;;  %v1769_v56 = vshll.u32 %v5599_v62, %v1766_v55 }
 0x1b9   : > { %v6280_v40 = vsub.s32 %v1708_v25, %v1711_v38  ;;  %v1772_v18 = vshll.u32 %v5600_v5, %v1766_v55  ;;  %vm1536_vm13 = vcmp.eq.s32.totalorder %v6259_v58, 0  ;;  %v1775_v29 = vshll.u32 %v5601_v7, %v1766_v55 }
 0x1ba   : > { %v1628_v33 = vxor.u32 2147483648, %v1627_v23  ;;  %v1780_v34 = vor.u32 %v1779_v50, %v1778_v4  ;;  %v1782_v10 = vshrl.u32 %v5604_v9, %v1767_v28  ;;  %vm1535_vm14 = vcmp.lt.s32.totalorder %v6259_v58, 2 }
 0x1bb   : > { %v1704_v36 = vadd.s32 %v6229_v17, %v6237_v49  ;;  %v1714_v31 = vsub.s32 0, %v6280_v40  ;;  %v1771_v11 = vor.u32 %v1770_v51, %v1769_v56  ;;  %v1774_v30 = vor.u32 %v1773_v46, %v1772_v18 }
 0x1bc   : > { %vm1532_vm15 = vweird.f32 %v6030_v13  ;;  %v1629_v14 = vsel %vm1546_vm0, %v1628_v33, %v1627_v23  ;;  %v1777_v24 = vor.u32 %v1776_v37, %v1775_v29  ;;  %v1781_v57 = vshll.u32 %v5603_v21, %v1766_v55 }
 0x1bd   : > { %v6295_v25 = vshll.u32 %v1760_v27, 8  ;;  %v1632_v17 = vsel %vm6200_vm5, %v6032_v15, %v1629_v14  ;;  %v4912_v49 = vmin.u32 %v1714_v31, %v6280_v40  ;;  %v1735_v3 = vsel %vm1650_vm10, %v1734_v6, %v1710_v1 }
 0x1be   : > { %vm1787_vm1 = vcmp.lt.s32.totalorder %v6272_v63, 4  ;;  %5394 = vcosq.f32 %v1632_v17  ;;  %v1783_v61 = vor.u32 %v1782_v10, %v1781_v57  ;;  %vm1784_vm0 = vcmp.lt.s32.totalorder %v6272_v63, 1  ;;  %v6339_v10 = vpop.f32.mrb[10].mxu0 }
 0x1bf   : > { %v1793_v55 = vsel %vm1787_vm1, %v1780_v34, 920167782  ;;  %5396 = vsinq.f32 %v1632_v17  ;;  %v1716_v0 = vclz %v4912_v49  ;;  %vm1786_vm2 = vcmp.lt.s32.totalorder %v6272_v63, 3 }
 0x1c0   : > { %v5391_v8 = vpop.eup %5390  ;;  %v1792_v26 = vsel %vm1784_vm0, %v1771_v11, %v1774_v30  ;;  %v1737_v1 = vsel %vm6268_vm11, 0, %v1735_v3  ;;  %v1768_v27 = vshrl.u32 %v5599_v62, %v1767_v28  ;;  %v1794_v42 = vsel %vm1786_vm2, %v1777_v24, %v1793_v55 }
 0x1c1   : > { %v5393_v48 = vpop.eup %5392  ;;  %v1540_v59 = vxor.u32 2147483648, %v5391_v8  ;;  %v4913_v38 = vadd.s32 4294967294, %v1716_v0  ;;  %vm1785_vm3 = vcmp.lt.s32.totalorder %v6272_v63, 2  ;;  %v1789_v51 = vsel %vm1787_vm1, %v1777_v24, 2102212464 }
 0x1c2   : > { %v1537_v16 = vxor.u32 2147483648, %v5393_v48  ;;  %v1795_v23 = vsel %vm1785_vm3, %v1792_v26, %v1794_v42  ;;  %v1796_v37 = vsel %vm1784_vm0, %v1774_v30, %v1777_v24  ;;  %v1797_v28 = vsel %vm1787_vm1, %v1783_v61, 1326507024 }
 0x1c3   : > { %v1541_v46 = vsel %vm1539_vm12, %v1540_v59, %v5393_v48  ;;  %vm4914_vm4 = vcmp.lt.s32.totalorder %v4913_v38, 0  ;;  %v1798_v50 = vsel %vm1786_vm2, %v1780_v34, %v1797_v28  ;;  %v1860_v6 = vshrl.u32 %v1859_v35, 23  ;;  %v6346_v35 = vpop.f32.mrb[10].mxu1 }
 0x1c4   : > { %v1538_v4 = vsel %vm1536_vm13, %v5391_v8, %v1537_v16  ;;  %v1719_v18 = vsel %vm4914_vm4, 0, %v4913_v38  ;;  %v1788_v33 = vsel %vm1784_vm0, %v1768_v27, %v1771_v11  ;;  %v1799_v29 = vsel %vm1785_vm3, %v1796_v37, %v1798_v50 }
 0x1c5   : > { %v1542_v56 = vsel %vm1535_vm14, %v1538_v4, %v1541_v46  ;;  %vm1636_vm5 = vweird.f32 %v6032_v15  ;;  %v1720_v14 = vsub.s32 32, %v1719_v18  ;;  %v1724_v34 = vsub.s32 4294967266, %v1719_v18 }
 0x1c6   : > { %v1543_v31 = vsel %vm1532_vm15, nan, %v1542_v56  ;;  %v1790_v58 = vsel %vm1786_vm2, %v1774_v30, %v1789_v51  ;;  %v6352_v11 = vmul.u32.u64.low %v6295_v25, %v1799_v29  ;;  %v6353_v24 = vmul.u32.u64.high %v6295_v25, %v1799_v29, %v6352_v11 }
 0x1c7   : > { %4768 = vst [vmem:[%s6348_s26] sm:$0xff] %v1543_v31  ;;  %v6356_v13 = vmul.u32.u64.low %v6295_v25, %v1795_v23  ;;  %v6357_v57 = vmul.u32.u64.high %v6295_v25, %v1795_v23, %v6356_v13  ;;  %v1721_v17 = vshll.u32 %v6280_v40, %v1719_v18  ;;  %v1722_v49 = vshrl.u32 %v1704_v36, %v1720_v14 }
 0x1c8   : > { %v1725_v3 = vadd.s32 127, %v1724_v34  ;;  %v4919_v30 = vadd.s32 4294967169, %v1860_v6  ;;  %v5395_v61 = vpop.eup %5394  ;;  %vm1639_vm6 = vcmp.lt.s32.totalorder %v6262_v32, 2  ;;  %vm1640_vm7 = vcmp.eq.s32.totalorder %v6262_v32, 0 }
 0x1c9   : > { %vm1643_vm8 = vcmp.eq.s32.totalorder %v6262_v32, 2  ;;  %v1791_v55 = vsel %vm1785_vm3, %v1788_v33, %v1790_v58  ;;  %v5397_v8 = vpop.eup %5396  ;;  %v1644_v0 = vxor.u32 2147483648, %v5395_v61  ;;  %v1723_v26 = vor.u32 %v1722_v49, %v1721_v17 }
 0x1ca   : > { %v1726_v48 = vshll.u32 %v1725_v3, 23  ;;  %v1866_v59 = vadd.s32 1, %v4919_v30  ;;  %v1641_v27 = vxor.u32 2147483648, %v5397_v8  ;;  %v1741_v40 = vadd.s32 3, %v1737_v1 }
 0x1cb   : > { %vm1809_vm9 = vc.u32 %v6353_v24, %v6356_v13  ;;  %v1810_v36 = vadd.s32 1, %v6357_v57  ;;  %v1645_v42 = vsel %vm1643_vm8, %v1644_v0, %v5397_v8  ;;  %v1807_v38 = vmul.u32 %v6295_v25, %v1791_v55 }
 0x1cc   : > { %v1727_v16 = vor.u32 4788187, %v1726_v48  ;;  %vm1867_vm12 = vcmp.gt.s32.totalorder %v1866_v59, 0  ;;  %v1642_v63 = vsel %vm1640_vm7, %v5395_v61, %v1641_v27  ;;  %v1856_v46 = vand.u32 2147483647, %v6144_v19 }
 0x1cd   : > { %v1811_v51 = vsel %vm1809_vm9, %v1810_v36, %v6357_v57  ;;  %v1868_v23 = vsel %vm1867_vm12, %v1866_v59, 0  ;;  %v1646_v1 = vsel %vm1639_vm6, %v1642_v63, %v1645_v42  ;;  %v1730_v28 = vcvt.s32.f32 %v1723_v26 }
 0x1ce   : > { %v1728_v37 = vand.u32 2147483647, %v1727_v16  ;;  %v1812_v4 = vadd.s32 %v1811_v51, %v1807_v38  ;;  %v1647_v50 = vsel %vm1636_vm5, nan, %v1646_v1  ;;  %v1870_v6 = vand.u32 31, %v1868_v23 }
 0x1cf   : > { %4769 = vst [vmem:[%s6348_s26 + $0x8] sm:$0xff] %v1647_v50  ;;  %v6379_v56 = vand.u32 3, %v1741_v40  ;;  %v1863_v33 = vand.u32 8388607, %v1856_v46  ;;  %v1869_v29 = vshrl.u32 %v1868_v23, 5  ;;  %v1963_v32 = vand.u32 2139095040, %v6148_v22 }
 0x1d0   : > { %v1731_v25 = vmul.f32 %v1730_v28, %v1728_v37  ;;  %v1813_v18 = vadd.s32 536870912, %v1812_v4  ;;  %v1871_v31 = vsub.s32 32, %v1870_v6  ;;  %v1873_v58 = vshll.u32 %v5599_v62, %v1870_v6 }
 0x1d1   : > { %v1876_v15 = vshll.u32 %v5600_v5, %v1870_v6  ;;  %v1879_v17 = vshll.u32 %v5601_v7, %v1870_v6  ;;  %v1882_v61 = vshll.u32 %v5602_v12, %v1870_v6  ;;  %v1864_v27 = vor.u32 8388608, %v1863_v33 }
 0x1d2   : > { %v1732_v14 = vxor.u32 2147483648, %v1731_v25  ;;  %v6384_v34 = vshrl.u32 %v1813_v18, 30  ;;  %v1874_v11 = vshrl.u32 %v5600_v5, %v1871_v31  ;;  %v1877_v57 = vshrl.u32 %v5601_v7, %v1871_v31 }
 0x1d3   : > { %v1880_v49 = vshrl.u32 %v5602_v12, %v1871_v31  ;;  %v1883_v55 = vshrl.u32 %v5603_v21, %v1871_v31  ;;  %v1885_v36 = vshll.u32 %v5603_v21, %v1870_v6  ;;  %v1886_v42 = vshrl.u32 %v5604_v9, %v1871_v31 }
 0x1d4   : > { %v1733_v3 = vsel %vm1650_vm10, %v1732_v14, %v1731_v25  ;;  %v1815_v30 = vshll.u32 %v6384_v34, 30  ;;  %v1875_v0 = vor.u32 %v1874_v11, %v1873_v58  ;;  %v1878_v26 = vor.u32 %v1877_v57, %v1876_v15 }
 0x1d5   : > { %v1736_v8 = vsel %vm6268_vm11, %v6040_v52, %v1733_v3  ;;  %v1881_v48 = vor.u32 %v1880_v49, %v1879_v17  ;;  %v1884_v40 = vor.u32 %v1883_v55, %v1882_v61  ;;  %v1964_v16 = vshrl.u32 %v1963_v32, 23 }
 0x1d6   : > { %5398 = vcosq.f32 %v1736_v8  ;;  %v6400_v59 = vsub.s32 %v1812_v4, %v1815_v30  ;;  %vm1754_vm10 = vcmp.lt.s32.totalorder %v6044_v2, 0  ;;  %vm1888_vm13 = vcmp.lt.s32.totalorder %v1869_v29, 1 }
 0x1d7   : > { %5400 = vsinq.f32 %v1736_v8  ;;  %vm1890_vm11 = vcmp.lt.s32.totalorder %v1869_v29, 3  ;;  %vm1891_vm14 = vcmp.lt.s32.totalorder %v1869_v29, 4  ;;  %v1887_v41 = vor.u32 %v1886_v42, %v1885_v36  ;;  %v6440_v8 = vpop.f32.mrb[11].mxu0 }
 0x1d8   : > { %v1818_v38 = vsub.s32 0, %v6400_v59  ;;  %v1893_v63 = vsel %vm1891_vm14, %v1881_v48, 2102212464  ;;  %v1896_v51 = vsel %vm1888_vm13, %v1875_v0, %v1878_v26  ;;  %v1897_v23 = vsel %vm1891_vm14, %v1884_v40, 920167782 }
 0x1d9   : > { %v1872_v37 = vshrl.u32 %v5599_v62, %v1871_v31  ;;  %vm1889_vm15 = vcmp.lt.s32.totalorder %v1869_v29, 2  ;;  %v1898_v28 = vsel %vm1890_vm11, %v1881_v48, %v1897_v23  ;;  %vm1744_vm1 = vcmp.eq.s32.totalorder %v6379_v56, 0  ;;  %v6448_v29 = vpop.f32.mrb[11].mxu1 }
 0x1da   : > { %v4916_v1 = vmin.u32 %v1818_v38, %v6400_v59  ;;  %v1899_v4 = vsel %vm1889_vm15, %v1896_v51, %v1898_v28  ;;  %v1900_v50 = vsel %vm1888_vm13, %v1878_v26, %v1881_v48  ;;  %v1901_v6 = vsel %vm1891_vm14, %v1887_v41, 1326507024 }
 0x1db   : > { %v1904_v25 = vshll.u32 %v1864_v27, 8  ;;  %vm1743_vm0 = vcmp.lt.s32.totalorder %v6379_v56, 2  ;;  %vm1747_vm2 = vcmp.eq.s32.totalorder %v6379_v56, 2  ;;  %v1892_v33 = vsel %vm1888_vm13, %v1872_v37, %v1875_v0 }
 0x1dc   : > { %v1820_v18 = vclz %v4916_v1  ;;  %v1894_v31 = vsel %vm1890_vm11, %v1878_v26, %v1893_v63  ;;  %vm1740_vm3 = vweird.f32 %v6040_v52  ;;  %vm6420_vm4 = vcmp.le.f32.partialorder %v1752_v43, 0.7853982 }
 0x1dd   : > { %v1838_v14 = vsub.s32 4, %v6384_v34  ;;  %v1902_v58 = vsel %vm1890_vm11, %v1884_v40, %v1901_v6  ;;  %v6426_v15 = vmul.u32.u64.low %v1904_v25, %v1899_v4  ;;  %v6427_v11 = vmul.u32.u64.high %v1904_v25, %v1899_v4, %v6426_v15 }
 0x1de   : > { %v4917_v57 = vadd.s32 4294967294, %v1820_v18  ;;  %v1903_v17 = vsel %vm1889_vm15, %v1900_v50, %v1902_v58  ;;  %v1960_v49 = vand.u32 2147483647, %v6148_v22  ;;  %v4923_v3 = vadd.s32 4294967169, %v1964_v16 }
 0x1df   : > { %v1895_v30 = vsel %vm1889_vm15, %v1892_v33, %v1894_v31  ;;  %v6433_v43 = vmul.u32.u64.low %v1904_v25, %v1903_v17  ;;  %v6434_v61 = vmul.u32.u64.high %v1904_v25, %v1903_v17, %v6433_v43  ;;  %v6438_v55 = vadd.f32 %v6056_v44, %v6058_v47 }
 0x1e0   : > { %v5399_v0 = vpop.eup %5398  ;;  %v1808_v26 = vadd.s32 %v6356_v13, %v6353_v24  ;;  %vm4918_vm5 = vcmp.lt.s32.totalorder %v4917_v57, 0  ;;  %v1970_v48 = vadd.s32 1, %v4923_v3  ;;  %v6446_v27 = vadd.f32 %v6060_v53, %v6062_v54 }
 0x1e1   : > { %v5401_v40 = vpop.eup %5400  ;;  %v1748_v36 = vxor.u32 2147483648, %v5399_v0  ;;  %v1823_v42 = vsel %vm4918_vm5, 0, %v4917_v57  ;;  %v1839_v44 = vsel %vm1754_vm10, %v1838_v14, %v6384_v34  ;;  %v1914_v47 = vadd.s32 1, %v6427_v11 }
 0x1e2   : > { %v1745_v16 = vxor.u32 2147483648, %v5401_v40  ;;  %v1824_v38 = vsub.s32 32, %v1823_v42  ;;  %v1828_v24 = vsub.s32 4294967266, %v1823_v42  ;;  %v1911_v13 = vmul.u32 %v1904_v25, %v1895_v30 }
 0x1e3   : > { %v1749_v41 = vsel %vm1747_vm2, %v1748_v36, %v5401_v40  ;;  %v1825_v53 = vshll.u32 %v6400_v59, %v1823_v42  ;;  %vm1913_vm6 = vc.u32 %v6434_v61, %v6426_v15  ;;  %vm1971_vm7 = vcmp.gt.s32.totalorder %v1970_v48, 0 }
 0x1e4   : > { %v1746_v54 = vsel %vm1744_vm1, %v5399_v0, %v1745_v16  ;;  %v1826_v34 = vshrl.u32 %v1808_v26, %v1824_v38  ;;  %v1829_v63 = vadd.s32 127, %v1828_v24  ;;  %v1915_v51 = vsel %vm1913_vm6, %v1914_v47, %v6427_v11 }
 0x1e5   : > { %v1750_v23 = vsel %vm1743_vm0, %v1746_v54, %v1749_v41  ;;  %v1916_v1 = vadd.s32 %v1915_v51, %v1911_v13  ;;  %v1967_v37 = vand.u32 8388607, %v1960_v49  ;;  %v1972_v28 = vsel %vm1971_vm7, %v1970_v48, 0 }
 0x1e6   : > { %v1751_v59 = vsel %vm1740_vm3, nan, %v1750_v23  ;;  %v1827_v4 = vor.u32 %v1826_v34, %v1825_v53  ;;  %v1830_v50 = vshll.u32 %v1829_v63, 23  ;;  %v1841_v6 = vsel %vm6420_vm4, 0, %v1839_v44 }
 0x1e7   : > { %4770 = vst [vmem:[%s6348_s26 + $0x10] sm:$0xff] %v1751_v59  ;;  %v1917_v25 = vadd.s32 536870912, %v1916_v1  ;;  %v1974_v18 = vand.u32 31, %v1972_v28  ;;  %v1845_v31 = vadd.s32 3, %v1841_v6  ;;  %v1968_v14 = vor.u32 8388608, %v1967_v37 }
 0x1e8   : > { %v1831_v33 = vor.u32 4788187, %v1830_v50  ;;  %v1834_v57 = vcvt.s32.f32 %v1827_v4  ;;  %v6473_v17 = vshrl.u32 %v1972_v28, 5  ;;  %vm1858_vm8 = vcmp.lt.s32.totalorder %v6144_v19, 0 }
 0x1e9   : > { %v6471_v56 = vshrl.u32 %v1917_v25, 30  ;;  %v1975_v58 = vsub.s32 32, %v1974_v18  ;;  %v1977_v52 = vshll.u32 %v5599_v62, %v1974_v18  ;;  %v1980_v43 = vshll.u32 %v5600_v5, %v1974_v18 }
 0x1ea   : > { %v1832_v11 = vand.u32 2147483647, %v1831_v33  ;;  %v1983_v0 = vshll.u32 %v5601_v7, %v1974_v18  ;;  %v1986_v44 = vshll.u32 %v5602_v12, %v1974_v18  ;;  %v6487_v41 = vand.u32 3, %v1845_v31 }
 0x1eb   : > { %v1919_v3 = vshll.u32 %v6471_v56, 30  ;;  %v1978_v30 = vshrl.u32 %v5600_v5, %v1975_v58  ;;  %v1981_v48 = vshrl.u32 %v5601_v7, %v1975_v58  ;;  %v1984_v40 = vshrl.u32 %v5602_v12, %v1975_v58 }
 0x1ec   : > { %v1835_v26 = vmul.f32 %v1834_v57, %v1832_v11  ;;  %v1987_v36 = vshrl.u32 %v5603_v21, %v1975_v58  ;;  %v1990_v47 = vshrl.u32 %v5604_v9, %v1975_v58  ;;  %v1989_v34 = vshll.u32 %v5603_v21, %v1974_v18 }
 0x1ed   : > { %v6483_v42 = vsub.s32 %v1916_v1, %v1919_v3  ;;  %v1979_v38 = vor.u32 %v1978_v30, %v1977_v52  ;;  %v1982_v24 = vor.u32 %v1981_v48, %v1980_v43  ;;  %v1985_v13 = vor.u32 %v1984_v40, %v1983_v0 }
 0x1ee   : > { %v1836_v16 = vxor.u32 2147483648, %v1835_v26  ;;  %v1988_v54 = vor.u32 %v1987_v36, %v1986_v44  ;;  %v1976_v51 = vshrl.u32 %v5599_v62, %v1975_v58  ;;  %vm1992_vm9 = vcmp.lt.s32.totalorder %v6473_v17, 1 }
 0x1ef   : > { %v1922_v53 = vsub.s32 0, %v6483_v42  ;;  %v2008_v23 = vshll.u32 %v1968_v14, 8  ;;  %v1991_v28 = vor.u32 %v1990_v47, %v1989_v34  ;;  %vm1995_vm12 = vcmp.lt.s32.totalorder %v6473_v17, 4  ;;  %v6536_v47 = vpop.f32.mrb[12].mxu0 }
 0x1f0   : > { %v1837_v63 = vsel %vm1754_vm10, %v1836_v16, %v1835_v26  ;;  %v1997_v59 = vsel %vm1995_vm12, %v1985_v13, 2102212464  ;;  %v2000_v4 = vsel %vm1992_vm9, %v1979_v38, %v1982_v24  ;;  %v2001_v50 = vsel %vm1995_vm12, %v1988_v54, 920167782 }
 0x1f1   : > { %v1840_v1 = vsel %vm6420_vm4, %v6044_v2, %v1837_v63  ;;  %v4920_v37 = vmin.u32 %v1922_v53, %v6483_v42  ;;  %vm1993_vm10 = vcmp.lt.s32.totalorder %v6473_v17, 2  ;;  %vm1994_vm13 = vcmp.lt.s32.totalorder %v6473_v17, 3 }
 0x1f2   : > { %5402 = vcosq.f32 %v1840_v1  ;;  %v1942_v32 = vsub.s32 4, %v6471_v56  ;;  %v1996_v25 = vsel %vm1992_vm9, %v1976_v51, %v1979_v38  ;;  %v2002_v18 = vsel %vm1994_vm13, %v1985_v13, %v2001_v50 }
 0x1f3   : > { %5404 = vsinq.f32 %v1840_v1  ;;  %v1924_v6 = vclz %v4920_v37  ;;  %v2004_v33 = vsel %vm1992_vm9, %v1982_v24, %v1985_v13  ;;  %v1998_v14 = vsel %vm1994_vm13, %v1982_v24, %v1997_v59 }
 0x1f4   : > { %v2003_v58 = vsel %vm1993_vm10, %v2000_v4, %v2002_v18  ;;  %v2005_v11 = vsel %vm1995_vm12, %v1991_v28, 1326507024  ;;  %v2067_v30 = vand.u32 2139095040, %v6438_v55  ;;  %vm6525_vm11 = vcmp.le.f32.partialorder %v1856_v46, 0.7853982 }
 0x1f5   : > { %v4921_v31 = vadd.s32 4294967294, %v1924_v6  ;;  %v2006_v57 = vsel %vm1994_vm13, %v1988_v54, %v2005_v11  ;;  %v6518_v52 = vmul.u32.u64.low %v2008_v23, %v2003_v58  ;;  %v6519_v3 = vmul.u32.u64.high %v2008_v23, %v2003_v58, %v6518_v52 }
 0x1f6   : > { %v1912_v0 = vadd.s32 %v6426_v15, %v6434_v61  ;;  %v2007_v26 = vsel %vm1993_vm10, %v2004_v33, %v2006_v57  ;;  %v2068_v44 = vshrl.u32 %v2067_v30, 23  ;;  %v1943_v46 = vsel %vm1858_vm8, %v1942_v32, %v6471_v56  ;;  %v6543_v61 = vpop.f32.mrb[12].mxu1 }
 0x1f7   : > { %vm4922_vm14 = vcmp.lt.s32.totalorder %v4921_v31, 0  ;;  %v6533_v40 = vmul.u32.u64.low %v2008_v23, %v2007_v26  ;;  %v6534_v36 = vmul.u32.u64.high %v2008_v23, %v2007_v26, %v6533_v40  ;;  %v1999_v15 = vsel %vm1993_vm10, %v1996_v25, %v1998_v14 }
 0x1f8   : > { %v1927_v48 = vsel %vm4922_vm14, 0, %v4921_v31  ;;  %vm1847_vm15 = vcmp.lt.s32.totalorder %v6487_v41, 2  ;;  %vm1848_vm1 = vcmp.eq.s32.totalorder %v6487_v41, 0  ;;  %v2018_v24 = vadd.s32 1, %v6519_v3 }
 0x1f9   : > { %v1928_v16 = vsub.s32 32, %v1927_v48  ;;  %v1932_v38 = vsub.s32 4294967266, %v1927_v48  ;;  %v4927_v13 = vadd.s32 4294967169, %v2068_v44  ;;  %v1929_v53 = vshll.u32 %v6483_v42, %v1927_v48 }
 0x1fa   : > { %v2064_v63 = vand.u32 2147483647, %v6438_v55  ;;  %v1945_v56 = vsel %vm6525_vm11, 0, %v1943_v46  ;;  %v2015_v17 = vmul.u32 %v2008_v23, %v1999_v15  ;;  %vm2017_vm0 = vc.u32 %v6534_v36, %v6518_v52 }
 0x1fb   : > { %v1930_v54 = vshrl.u32 %v1912_v0, %v1928_v16  ;;  %v1933_v34 = vadd.s32 127, %v1932_v38  ;;  %v2074_v1 = vadd.s32 1, %v4927_v13  ;;  %v2019_v50 = vsel %vm2017_vm0, %v2018_v24, %v6519_v3 }
 0x1fc   : > { %v5403_v51 = vpop.eup %5402  ;;  %vm1851_vm2 = vcmp.eq.s32.totalorder %v6487_v41, 2  ;;  %v2020_v6 = vadd.s32 %v2019_v50, %v2015_v17  ;;  %v1949_v18 = vadd.s32 3, %v1945_v56  ;;  %v2071_v14 = vand.u32 8388607, %v2064_v63 }
 0x1fd   : > { %v5405_v37 = vpop.eup %5404  ;;  %v1852_v28 = vxor.u32 2147483648, %v5403_v51  ;;  %v1931_v59 = vor.u32 %v1930_v54, %v1929_v53  ;;  %v1934_v4 = vshll.u32 %v1933_v34, 23  ;;  %vm2075_vm3 = vcmp.gt.s32.totalorder %v2074_v1, 0 }
 0x1fe   : > { %v1849_v42 = vxor.u32 2147483648, %v5405_v37  ;;  %v2076_v23 = vsel %vm2075_vm3, %v2074_v1, 0  ;;  %v2021_v31 = vadd.s32 536870912, %v2020_v6  ;;  %vm1844_vm4 = vweird.f32 %v6044_v2 }
 0x1ff   : > { %v1853_v32 = vsel %vm1851_vm2, %v1852_v28, %v5405_v37  ;;  %v1935_v25 = vor.u32 4788187, %v1934_v4  ;;  %v2078_v58 = vand.u32 31, %v2076_v23  ;;  %v1938_v3 = vcvt.s32.f32 %v1931_v59 }
 0x200   : > { %v1850_v33 = vsel %vm1848_vm1, %v5403_v51, %v1849_v42  ;;  %v6563_v0 = vshrl.u32 %v2021_v31, 30  ;;  %v2171_v48 = vand.u32 2139095040, %v6446_v27  ;;  %v6567_v44 = vand.u32 3, %v1949_v18 }
 0x201   : > { %v1854_v11 = vsel %vm1847_vm15, %v1850_v33, %v1853_v32  ;;  %v1936_v57 = vand.u32 2147483647, %v1935_v25  ;;  %v2079_v26 = vsub.s32 32, %v2078_v58  ;;  %v2072_v38 = vor.u32 8388608, %v2071_v14 }
 0x202   : > { %v1855_v30 = vsel %vm1844_vm4, nan, %v1854_v11  ;;  %v2023_v16 = vshll.u32 %v6563_v0, 30  ;;  %v2081_v2 = vshll.u32 %v5599_v62, %v2078_v58  ;;  %v2077_v54 = vshrl.u32 %v2076_v23, 5 }
 0x203   : > { %4771 = vst [vmem:[%s6348_s26 + $0x18] sm:$0xff] %v1855_v30  ;;  %v1939_v40 = vmul.f32 %v1938_v3, %v1936_v57  ;;  %v2082_v41 = vshrl.u32 %v5600_v5, %v2079_v26  ;;  %v2085_v15 = vshrl.u32 %v5601_v7, %v2079_v26  ;;  %v2088_v24 = vshrl.u32 %v5602_v12, %v2079_v26 }
 0x204   : > { %v2091_v13 = vshrl.u32 %v5603_v21, %v2079_v26  ;;  %v6575_v53 = vsub.s32 %v2020_v6, %v2023_v16  ;;  %v2084_v34 = vshll.u32 %v5600_v5, %v2078_v58  ;;  %v2172_v51 = vshrl.u32 %v2171_v48, 23  ;;  %v6600_v16 = vpop.f32.mrb[13].mxu0 }
 0x205   : > { %v1940_v46 = vxor.u32 2147483648, %v1939_v40  ;;  %v2083_v17 = vor.u32 %v2082_v41, %v2081_v2  ;;  %v2087_v1 = vshll.u32 %v5601_v7, %v2078_v58  ;;  %v2090_v37 = vshll.u32 %v5602_v12, %v2078_v58 }
 0x206   : > { %v2026_v59 = vsub.s32 0, %v6575_v53  ;;  %v2086_v4 = vor.u32 %v2085_v15, %v2084_v34  ;;  %v2093_v50 = vshll.u32 %v5603_v21, %v2078_v58  ;;  %vm1962_vm5 = vcmp.lt.s32.totalorder %v6148_v22, 0 }
 0x207   : > { %v1941_v56 = vsel %vm1858_vm8, %v1940_v46, %v1939_v40  ;;  %v2089_v42 = vor.u32 %v2088_v24, %v2087_v1  ;;  %v2092_v6 = vor.u32 %v2091_v13, %v2090_v37  ;;  %v2094_v32 = vshrl.u32 %v5604_v9, %v2079_v26 }
 0x208   : > { %v1944_v28 = vsel %vm6525_vm11, %v6144_v19, %v1941_v56  ;;  %v4924_v25 = vmin.u32 %v2026_v59, %v6575_v53  ;;  %v6590_v18 = vshll.u32 %v2072_v38, 8  ;;  %v4931_v23 = vadd.s32 4294967169, %v2172_v51  ;;  %v6602_v38 = vpop.f32.mrb[13].mxu1 }
 0x209   : > { %5406 = vcosq.f32 %v1944_v28  ;;  %v2046_v43 = vsub.s32 4, %v6563_v0  ;;  %v2080_v33 = vshrl.u32 %v5599_v62, %v2079_v26  ;;  %v2095_v31 = vor.u32 %v2094_v32, %v2093_v50 }
 0x20a   : > { %5408 = vsinq.f32 %v1944_v28  ;;  %vm2096_vm6 = vcmp.lt.s32.totalorder %v2077_v54, 1  ;;  %v2028_v14 = vclz %v4924_v25  ;;  %vm2098_vm7 = vcmp.lt.s32.totalorder %v2077_v54, 3 }
 0x20b   : > { %vm2099_vm8 = vcmp.lt.s32.totalorder %v2077_v54, 4  ;;  %v2104_v58 = vsel %vm2096_vm6, %v2083_v17, %v2086_v4  ;;  %vm1955_vm9 = vcmp.eq.s32.totalorder %v6567_v44, 2  ;;  %v2108_v3 = vsel %vm2096_vm6, %v2086_v4, %v2089_v42 }
 0x20c   : > { %v2101_v11 = vsel %vm2099_vm8, %v2089_v42, 2102212464  ;;  %v2105_v57 = vsel %vm2099_vm8, %v2092_v6, 920167782  ;;  %v2109_v30 = vsel %vm2099_vm8, %v2095_v31, 1326507024  ;;  %v2100_v41 = vsel %vm2096_vm6, %v2080_v33, %v2083_v17 }
 0x20d   : > { %vm1952_vm12 = vcmp.eq.s32.totalorder %v6567_v44, 0  ;;  %v4925_v48 = vadd.s32 4294967294, %v2028_v14  ;;  %vm2097_vm10 = vcmp.lt.s32.totalorder %v2077_v54, 2  ;;  %v2106_v26 = vsel %vm2098_vm7, %v2089_v42, %v2105_v57 }
 0x20e   : > { %v2110_v40 = vsel %vm2098_vm7, %v2092_v6, %v2109_v30  ;;  %vm1951_vm13 = vcmp.lt.s32.totalorder %v6567_v44, 2  ;;  %vm6607_vm11 = vcmp.le.f32.partialorder %v1960_v49, 0.7853982  ;;  %v2107_v46 = vsel %vm2097_vm10, %v2104_v58, %v2106_v26 }
 0x20f   : > { %v2111_v15 = vsel %vm2097_vm10, %v2108_v3, %v2110_v40  ;;  %v2168_v24 = vand.u32 2147483647, %v6446_v27  ;;  %vm1948_vm14 = vweird.f32 %v6144_v19  ;;  %vm4926_vm15 = vcmp.lt.s32.totalorder %v4925_v48, 0 }
 0x210   : > { %v2102_v13 = vsel %vm2098_vm7, %v2086_v4, %v2101_v11  ;;  %v6618_v34 = vmul.u32.u64.low %v6590_v18, %v2111_v15  ;;  %v6619_v51 = vmul.u32.u64.high %v6590_v18, %v2111_v15, %v6618_v34  ;;  %v2031_v49 = vsel %vm4926_vm15, 0, %v4925_v48 }
 0x211   : > { %v6622_v56 = vmul.u32.u64.low %v6590_v18, %v2107_v46  ;;  %v6623_v1 = vmul.u32.u64.high %v6590_v18, %v2107_v46, %v6622_v56  ;;  %v2178_v17 = vadd.s32 1, %v4931_v23  ;;  %v2016_v37 = vadd.s32 %v6518_v52, %v6534_v36 }
 0x212   : > { %v2032_v28 = vsub.s32 32, %v2031_v49  ;;  %v2036_v59 = vsub.s32 4294967266, %v2031_v49  ;;  %v2047_v4 = vsel %vm1962_vm5, %v2046_v43, %v6563_v0  ;;  %v2103_v42 = vsel %vm2097_vm10, %v2100_v41, %v2102_v13 }
 0x213   : > { %v5407_v50 = vpop.eup %5406  ;;  %vm2179_vm1 = vcmp.gt.s32.totalorder %v2178_v17, 0  ;;  %v6634_v6 = vadd.f32 %v6123_v20, %v6132_v39  ;;  %v6638_v32 = vadd.f32 %v6246_v60, %v6251_v45  ;;  %v2033_v36 = vshll.u32 %v6575_v53, %v2031_v49 }
 0x214   : > { %v5409_v25 = vpop.eup %5408  ;;  %v1956_v52 = vxor.u32 2147483648, %v5407_v50  ;;  %v2034_v23 = vshrl.u32 %v2016_v37, %v2032_v28  ;;  %v2037_v33 = vadd.s32 127, %v2036_v59  ;;  %vm2121_vm0 = vc.u32 %v6619_v51, %v6622_v56 }
 0x215   : > { %v1953_v31 = vxor.u32 2147483648, %v5409_v25  ;;  %v2122_v0 = vadd.s32 1, %v6623_v1  ;;  %v2180_v54 = vsel %vm2179_vm1, %v2178_v17, 0  ;;  %v2119_v45 = vmul.u32 %v6590_v18, %v2103_v42 }
 0x216   : > { %v1957_v20 = vsel %vm1955_vm9, %v1956_v52, %v5409_v25  ;;  %v2035_v39 = vor.u32 %v2034_v23, %v2033_v36  ;;  %v2038_v60 = vshll.u32 %v2037_v33, 23  ;;  %v2175_v14 = vand.u32 8388607, %v2168_v24 }
 0x217   : > { %v1954_v53 = vsel %vm1952_vm12, %v5407_v50, %v1953_v31  ;;  %v2123_v43 = vsel %vm2121_vm0, %v2122_v0, %v6623_v1  ;;  %v2182_v58 = vand.u32 31, %v2180_v54  ;;  %v2049_v3 = vsel %vm6607_vm11, 0, %v2047_v4 }
 0x218   : > { %v1958_v11 = vsel %vm1951_vm13, %v1954_v53, %v1957_v20  ;;  %v2039_v57 = vor.u32 4788187, %v2038_v60  ;;  %v2124_v30 = vadd.s32 %v2123_v43, %v2119_v45  ;;  %v2042_v40 = vcvt.s32.f32 %v2035_v39 }
 0x219   : > { %v1959_v18 = vsel %vm1948_vm14, nan, %v1958_v11  ;;  %v2183_v48 = vsub.s32 32, %v2182_v58  ;;  %v2053_v46 = vadd.s32 3, %v2049_v3  ;;  %v2176_v15 = vor.u32 8388608, %v2175_v14 }
 0x21a   : > { %4772 = vst [vmem:[%s6348_s26 + $0x20] sm:$0xff] %v1959_v18  ;;  %v2040_v26 = vand.u32 2147483647, %v2039_v57  ;;  %v2125_v41 = vadd.s32 536870912, %v2124_v30  ;;  %v2185_v19 = vshll.u32 %v5599_v62, %v2182_v58  ;;  %v2188_v37 = vshll.u32 %v5600_v5, %v2182_v58 }
 0x21b   : > { %v2186_v13 = vshrl.u32 %v5600_v5, %v2183_v48  ;;  %v2189_v44 = vshrl.u32 %v5601_v7, %v2183_v48  ;;  %v2192_v1 = vshrl.u32 %v5602_v12, %v2183_v48  ;;  %v2195_v17 = vshrl.u32 %v5603_v21, %v2183_v48 }
 0x21c   : > { %v2043_v34 = vmul.f32 %v2042_v40, %v2040_v26  ;;  %v2126_v49 = vshrl.u32 %v2125_v41, 30  ;;  %v2194_v28 = vshll.u32 %v5602_v12, %v2182_v58  ;;  %v2198_v59 = vshrl.u32 %v5604_v9, %v2183_v48 }
 0x21d   : > { %v2181_v42 = vshrl.u32 %v2180_v54, 5  ;;  %v2191_v25 = vshll.u32 %v5601_v7, %v2182_v58  ;;  %v2187_v52 = vor.u32 %v2186_v13, %v2185_v19  ;;  %v2190_v36 = vor.u32 %v2189_v44, %v2188_v37 }
 0x21e   : > { %v2044_v4 = vxor.u32 2147483648, %v2043_v34  ;;  %v2127_v50 = vshll.u32 %v2126_v49, 30  ;;  %v2196_v23 = vor.u32 %v2195_v17, %v2194_v28  ;;  %v2197_v33 = vshll.u32 %v5603_v21, %v2182_v58 }
 0x21f   : > { %v6671_v0 = vand.u32 3, %v2053_v46  ;;  %v2193_v39 = vor.u32 %v2192_v1, %v2191_v25  ;;  %v2184_v54 = vshrl.u32 %v5599_v62, %v2183_v48  ;;  %v2216_v53 = vshll.u32 %v2176_v15, 8 }
 0x220   : > { %v2045_v31 = vsel %vm1962_vm5, %v2044_v4, %v2043_v34  ;;  %v6673_v20 = vsub.s32 %v2124_v30, %v2127_v50  ;;  %v2199_v45 = vor.u32 %v2198_v59, %v2197_v33  ;;  %vm2200_vm2 = vcmp.lt.s32.totalorder %v2181_v42, 1  ;;  %v6707_v4 = vpop.f32.mrb[14].mxu0 }
 0x221   : > { %v2048_v60 = vsel %vm6607_vm11, %v6148_v22, %v2045_v31  ;;  %vm2203_vm3 = vcmp.lt.s32.totalorder %v2181_v42, 4  ;;  %vm2202_vm4 = vcmp.lt.s32.totalorder %v2181_v42, 3  ;;  %v2208_v14 = vsel %vm2200_vm2, %v2187_v52, %v2190_v36 }
 0x222   : > { %5410 = vcosq.f32 %v2048_v60  ;;  %v2130_v43 = vsub.s32 0, %v6673_v20  ;;  %v2209_v58 = vsel %vm2203_vm3, %v2196_v23, 920167782  ;;  %vm2201_vm5 = vcmp.lt.s32.totalorder %v2181_v42, 2 }
 0x223   : > { %5412 = vsinq.f32 %v2048_v60  ;;  %v2205_v57 = vsel %vm2203_vm3, %v2193_v39, 2102212464  ;;  %v2210_v2 = vsel %vm2202_vm4, %v2193_v39, %v2209_v58  ;;  %v2150_v3 = vsub.s32 4, %v2126_v49 }
 0x224   : > { %v4928_v11 = vmin.u32 %v2130_v43, %v6673_v20  ;;  %v2211_v30 = vsel %vm2201_vm5, %v2208_v14, %v2210_v2  ;;  %v2212_v18 = vsel %vm2200_vm2, %v2190_v36, %v2193_v39  ;;  %v2213_v48 = vsel %vm2203_vm3, %v2199_v45, 1326507024 }
 0x225   : > { %vm6686_vm6 = vcmp.le.f32.partialorder %v2064_v63, 0.7853982  ;;  %v2204_v41 = vsel %vm2200_vm2, %v2184_v54, %v2187_v52  ;;  %v2206_v46 = vsel %vm2202_vm4, %v2190_v36, %v2205_v57  ;;  %v2214_v15 = vsel %vm2202_vm4, %v2196_v23, %v2213_v48 }
 0x226   : > { %v2132_v40 = vclz %v4928_v11  ;;  %v6691_v13 = vmul.u32.u64.low %v2216_v53, %v2211_v30  ;;  %v6692_v44 = vmul.u32.u64.high %v2216_v53, %v2211_v30, %v6691_v13  ;;  %vm2066_vm7 = vcmp.lt.s32.totalorder %v6438_v55, 0 }
 0x227   : > { %v2215_v1 = vsel %vm2201_vm5, %v2212_v18, %v2214_v15  ;;  %v2275_v17 = vand.u32 2139095040, %v6634_v6  ;;  %vm2052_vm8 = vweird.f32 %v6148_v22  ;;  %vm2056_vm9 = vcmp.eq.s32.totalorder %v6671_v0, 0 }
 0x228   : > { %v4929_v34 = vadd.s32 4294967294, %v2132_v40  ;;  %v2151_v63 = vsel %vm2066_vm7, %v2150_v3, %v2126_v49  ;;  %v6702_v19 = vmul.u32.u64.low %v2216_v53, %v2215_v1  ;;  %v6703_v37 = vmul.u32.u64.high %v2216_v53, %v2215_v1, %v6702_v19  ;;  %v6713_v49 = vpop.f32.mrb[14].mxu1 }
 0x229   : > { %vm2059_vm12 = vcmp.eq.s32.totalorder %v6671_v0, 2  ;;  %v2207_v28 = vsel %vm2201_vm5, %v2204_v41, %v2206_v46  ;;  %v2276_v59 = vshrl.u32 %v2275_v17, 23  ;;  %v2120_v50 = vadd.s32 %v6622_v56, %v6619_v51 }
 0x22a   : > { %vm4930_vm10 = vcmp.lt.s32.totalorder %v4929_v34, 0  ;;  %v2226_v52 = vadd.s32 1, %v6692_v44  ;;  %v2272_v36 = vand.u32 2147483647, %v6634_v6  ;;  %v2153_v42 = vsel %vm6686_vm6, 0, %v2151_v63 }
 0x22b   : > { %v2135_v25 = vsel %vm4930_vm10, 0, %v4929_v34  ;;  %v4935_v39 = vadd.s32 4294967169, %v2276_v59  ;;  %v2223_v43 = vmul.u32 %v2216_v53, %v2207_v28  ;;  %vm2225_vm13 = vc.u32 %v6703_v37, %v6691_v13 }
 0x22c   : > { %v5411_v23 = vpop.eup %5410  ;;  %v2136_v33 = vsub.s32 32, %v2135_v25  ;;  %v2140_v31 = vsub.s32 4294967266, %v2135_v25  ;;  %v2137_v45 = vshll.u32 %v6673_v20, %v2135_v25  ;;  %v2227_v58 = vsel %vm2225_vm13, %v2226_v52, %v6692_v44 }
 0x22d   : > { %v5413_v60 = vpop.eup %5412  ;;  %v2060_v54 = vxor.u32 2147483648, %v5411_v23  ;;  %v2228_v57 = vadd.s32 %v2227_v58, %v2223_v43  ;;  %v2282_v2 = vadd.s32 1, %v4935_v39  ;;  %v2379_v3 = vand.u32 2139095040, %v6638_v32 }
 0x22e   : > { %v2057_v51 = vxor.u32 2147483648, %v5413_v60  ;;  %v2138_v56 = vshrl.u32 %v2120_v50, %v2136_v33  ;;  %v2141_v14 = vadd.s32 127, %v2140_v31  ;;  %vm2055_vm11 = vcmp.lt.s32.totalorder %v6671_v0, 2 }
 0x22f   : > { %v2061_v11 = vsel %vm2059_vm12, %v2060_v54, %v5413_v60  ;;  %v2157_v48 = vadd.s32 3, %v2153_v42  ;;  %v2229_v40 = vadd.s32 536870912, %v2228_v57  ;;  %vm2283_vm14 = vcmp.gt.s32.totalorder %v2282_v2, 0 }
 0x230   : > { %v2058_v20 = vsel %vm2056_vm9, %v5411_v23, %v2057_v51  ;;  %v2139_v53 = vor.u32 %v2138_v56, %v2137_v45  ;;  %v2142_v30 = vshll.u32 %v2141_v14, 23  ;;  %v2279_v15 = vand.u32 8388607, %v2272_v36 }
 0x231   : > { %v2062_v18 = vsel %vm2055_vm11, %v2058_v20, %v2061_v11  ;;  %v2284_v44 = vsel %vm2283_vm14, %v2282_v2, 0  ;;  %v2230_v34 = vshrl.u32 %v2229_v40, 30  ;;  %v2380_v17 = vshrl.u32 %v2379_v3, 23 }
 0x232   : > { %v2063_v41 = vsel %vm2052_vm8, nan, %v2062_v18  ;;  %v2143_v46 = vor.u32 4788187, %v2142_v30  ;;  %v2286_v1 = vand.u32 31, %v2284_v44  ;;  %v2146_v63 = vcvt.s32.f32 %v2139_v53 }
 0x233   : > { %4773 = vst [vmem:[%s6348_s26 + $0x28] sm:$0xff] %v2063_v41  ;;  %v6734_v19 = vadd.f32 %v6339_v10, %v6346_v35  ;;  %v6736_v28 = vand.u32 3, %v2157_v48  ;;  %vm2170_vm15 = vcmp.lt.s32.totalorder %v6446_v27, 0  ;;  %v2231_v22 = vshll.u32 %v2230_v34, 30 }
 0x234   : > { %v2144_v0 = vand.u32 2147483647, %v2143_v46  ;;  %v2287_v59 = vsub.s32 32, %v2286_v1  ;;  %v6741_v25 = vadd.s32 %v6691_v13, %v6703_v37  ;;  %v2280_v52 = vor.u32 8388608, %v2279_v15 }
 0x235   : > { %v2376_v23 = vand.u32 2147483647, %v6638_v32  ;;  %v6744_v33 = vsub.s32 %v2228_v57, %v2231_v22  ;;  %v6746_v31 = vshrl.u32 %v2284_v44, 5  ;;  %v4939_v35 = vadd.s32 4294967169, %v2380_v17 }
 0x236   : > { %v2147_v50 = vmul.f32 %v2146_v63, %v2144_v0  ;;  %v2290_v10 = vshrl.u32 %v5600_v5, %v2287_v59  ;;  %v2289_v39 = vshll.u32 %v5599_v62, %v2286_v1  ;;  %v2293_v60 = vshrl.u32 %v5601_v7, %v2287_v59 }
 0x237   : > { %v2296_v54 = vshrl.u32 %v5602_v12, %v2287_v59  ;;  %v2234_v13 = vsub.s32 0, %v6744_v33  ;;  %v2292_v37 = vshll.u32 %v5600_v5, %v2286_v1  ;;  %v2295_v45 = vshll.u32 %v5601_v7, %v2286_v1 }
 0x238   : > { %v2148_v42 = vxor.u32 2147483648, %v2147_v50  ;;  %v2299_v43 = vshrl.u32 %v5603_v21, %v2287_v59  ;;  %v2254_v56 = vsub.s32 4, %v2230_v34  ;;  %v2291_v14 = vor.u32 %v2290_v10, %v2289_v39 }
 0x239   : > { %v2298_v58 = vshll.u32 %v5602_v12, %v2286_v1  ;;  %v4932_v57 = vmin.u32 %v2234_v13, %v6744_v33  ;;  %v2294_v2 = vor.u32 %v2293_v60, %v2292_v37  ;;  %v2297_v3 = vor.u32 %v2296_v54, %v2295_v45  ;;  %v6794_v54 = vpop.f32.mrb[15].mxu1 }
 0x23a   : > { %v2149_v51 = vsel %vm2066_vm7, %v2148_v42, %v2147_v50  ;;  %v2301_v53 = vshll.u32 %v5603_v21, %v2286_v1  ;;  %v2302_v30 = vshrl.u32 %v5604_v9, %v2287_v59  ;;  %v6765_v48 = vshll.u32 %v2280_v52, 8 }
 0x23b   : > { %v2152_v11 = vsel %vm6686_vm6, %v6438_v55, %v2149_v51  ;;  %v2300_v20 = vor.u32 %v2299_v43, %v2298_v58  ;;  %v2236_v18 = vclz %v4932_v57  ;;  %v2386_v40 = vadd.s32 1, %v4939_v35  ;;  %v6789_v35 = vpop.f32.mrb[15].mxu0 }
 0x23c   : > { %5414 = vcosq.f32 %v2152_v11  ;;  %vm6769_vm1 = vcmp.le.f32.partialorder %v2168_v24, 0.7853982  ;;  %v2255_v41 = vsel %vm2170_vm15, %v2254_v56, %v2230_v34  ;;  %v2288_v46 = vshrl.u32 %v5599_v62, %v2287_v59 }
 0x23d   : > { %5416 = vsinq.f32 %v2152_v11  ;;  %v2303_v15 = vor.u32 %v2302_v30, %v2301_v53  ;;  %vm2304_vm0 = vcmp.lt.s32.totalorder %v6746_v31, 1  ;;  %v4933_v44 = vadd.s32 4294967294, %v2236_v18 }
 0x23e   : > { %vm2306_vm2 = vcmp.lt.s32.totalorder %v6746_v31, 3  ;;  %vm2307_vm3 = vcmp.lt.s32.totalorder %v6746_v31, 4  ;;  %v2312_v1 = vsel %vm2304_vm0, %v2291_v14, %v2294_v2  ;;  %v2316_v24 = vsel %vm2304_vm0, %v2294_v2, %v2297_v3 }
 0x23f   : > { %v2309_v17 = vsel %vm2307_vm3, %v2297_v3, 2102212464  ;;  %v2313_v0 = vsel %vm2307_vm3, %v2300_v20, 920167782  ;;  %v2317_v63 = vsel %vm2307_vm3, %v2303_v15, 1326507024  ;;  %v2308_v50 = vsel %vm2304_vm0, %v2288_v46, %v2291_v14 }
 0x240   : > { %vm4934_vm4 = vcmp.lt.s32.totalorder %v4933_v44, 0  ;;  %vm2305_vm5 = vcmp.lt.s32.totalorder %v6746_v31, 2  ;;  %v2314_v34 = vsel %vm2306_vm2, %v2297_v3, %v2313_v0  ;;  %v2318_v22 = vsel %vm2306_vm2, %v2300_v20, %v2317_v63 }
 0x241   : > { %vm2159_vm6 = vcmp.lt.s32.totalorder %v6736_v28, 2  ;;  %v2239_v59 = vsel %vm4934_vm4, 0, %v4933_v44  ;;  %v2315_v52 = vsel %vm2305_vm5, %v2312_v1, %v2314_v34  ;;  %v2319_v10 = vsel %vm2305_vm5, %v2316_v24, %v2318_v22 }
 0x242   : > { %vm2156_vm7 = vweird.f32 %v6438_v55  ;;  %v2240_v42 = vsub.s32 32, %v2239_v59  ;;  %v2244_v39 = vsub.s32 4294967266, %v2239_v59  ;;  %v2310_v60 = vsel %vm2306_vm2, %v2294_v2, %v2309_v17 }
 0x243   : > { %vm2387_vm8 = vcmp.gt.s32.totalorder %v2386_v40, 0  ;;  %v6797_v13 = vmul.u32.u64.low %v6765_v48, %v2319_v10  ;;  %v6798_v37 = vmul.u32.u64.high %v6765_v48, %v2319_v10, %v6797_v13  ;;  %v2241_v51 = vshll.u32 %v6744_v33, %v2239_v59 }
 0x244   : > { %v6801_v45 = vmul.u32.u64.low %v6765_v48, %v2315_v52  ;;  %v6802_v43 = vmul.u32.u64.high %v6765_v48, %v2315_v52, %v6801_v45  ;;  %v2242_v56 = vshrl.u32 %v6741_v25, %v2240_v42  ;;  %v2245_v14 = vadd.s32 127, %v2244_v39 }
 0x245   : > { %v2388_v58 = vsel %vm2387_vm8, %v2386_v40, 0  ;;  %vm2160_vm9 = vcmp.eq.s32.totalorder %v6736_v28, 0  ;;  %vm2163_vm12 = vcmp.eq.s32.totalorder %v6736_v28, 2  ;;  %v2311_v57 = vsel %vm2305_vm5, %v2308_v50, %v2310_v60 }
 0x246   : > { %v5415_v11 = vpop.eup %5414  ;;  %v2390_v2 = vand.u32 31, %v2388_v58  ;;  %v2243_v53 = vor.u32 %v2242_v56, %v2241_v51  ;;  %v2246_v30 = vshll.u32 %v2245_v14, 23  ;;  %v2257_v33 = vsel %vm6769_vm1, 0, %v2255_v41 }
 0x247   : > { %v5417_v3 = vpop.eup %5416  ;;  %v2164_v20 = vxor.u32 2147483648, %v5415_v11  ;;  %vm2329_vm10 = vc.u32 %v6798_v37, %v6801_v45  ;;  %v2330_v25 = vadd.s32 1, %v6802_v43  ;;  %v2383_v40 = vand.u32 8388607, %v2376_v23 }
 0x248   : > { %v2161_v18 = vxor.u32 2147483648, %v5417_v3  ;;  %v2247_v31 = vor.u32 4788187, %v2246_v30  ;;  %v2327_v15 = vmul.u32 %v6765_v48, %v2311_v57  ;;  %v2391_v44 = vsub.s32 32, %v2390_v2 }
 0x249   : > { %v2165_v46 = vsel %vm2163_vm12, %v2164_v20, %v5417_v3  ;;  %v2261_v17 = vadd.s32 3, %v2257_v33  ;;  %v2331_v41 = vsel %vm2329_vm10, %v2330_v25, %v6802_v43  ;;  %v6822_v0 = vshrl.u32 %v2388_v58, 5 }
 0x24a   : > { %v2162_v1 = vsel %vm2160_vm9, %v5415_v11, %v2161_v18  ;;  %v2248_v63 = vand.u32 2147483647, %v2247_v31  ;;  %v2250_v34 = vcvt.s32.f32 %v2243_v53  ;;  %v2332_v22 = vadd.s32 %v2331_v41, %v2327_v15 }
 0x24b   : > { %v2166_v24 = vsel %vm2159_vm6, %v2162_v1, %v2165_v46  ;;  %v2393_v48 = vshll.u32 %v5599_v62, %v2390_v2  ;;  %v2394_v50 = vshrl.u32 %v5600_v5, %v2391_v44  ;;  %v2397_v52 = vshrl.u32 %v5601_v7, %v2391_v44 }
 0x24c   : > { %v2167_v59 = vsel %vm2156_vm7, nan, %v2166_v24  ;;  %v2251_v10 = vmul.f32 %v2250_v34, %v2248_v63  ;;  %v2333_v42 = vadd.s32 536870912, %v2332_v22  ;;  %v2396_v39 = vshll.u32 %v5600_v5, %v2390_v2 }
 0x24d   : > { %4774 = vst [vmem:[%s6348_s26 + $0x30] sm:$0xff] %v2167_v59  ;;  %v2400_v28 = vshrl.u32 %v5602_v12, %v2391_v44  ;;  %v2395_v60 = vor.u32 %v2394_v50, %v2393_v48  ;;  %v2399_v13 = vshll.u32 %v5601_v7, %v2390_v2  ;;  %v2402_v43 = vshll.u32 %v5602_v12, %v2390_v2 }
 0x24e   : > { %v2403_v55 = vshrl.u32 %v5603_v21, %v2391_v44  ;;  %v2252_v51 = vxor.u32 2147483648, %v2251_v10  ;;  %v2334_v56 = vshrl.u32 %v2333_v42, 30  ;;  %v2398_v14 = vor.u32 %v2397_v52, %v2396_v39 }
 0x24f   : > { %v2406_v58 = vshrl.u32 %v5604_v9, %v2391_v44  ;;  %v2405_v57 = vshll.u32 %v5603_v21, %v2390_v2  ;;  %v2384_v53 = vor.u32 8388608, %v2383_v40  ;;  %v2401_v30 = vor.u32 %v2400_v28, %v2399_v13 }
 0x250   : > { %v2404_v11 = vor.u32 %v2403_v55, %v2402_v43  ;;  %v2253_v3 = vsel %vm2170_vm15, %v2252_v51, %v2251_v10  ;;  %v2335_v20 = vshll.u32 %v2334_v56, 30  ;;  %v6844_v18 = vand.u32 3, %v2261_v17  ;;  %v6889_v51 = vpop.f32.mrb[16].mxu0 }
 0x251   : > { %v2256_v33 = vsel %vm6769_vm1, %v6446_v27, %v2253_v3  ;;  %vm2274_vm13 = vcmp.lt.s32.totalorder %v6634_v6, 0  ;;  %v2407_v25 = vor.u32 %v2406_v58, %v2405_v57  ;;  %vm2408_vm11 = vcmp.lt.s32.totalorder %v6822_v0, 1  ;;  %v6901_v57 = vpop.f32.mrb[16].mxu1  ;;  %v6964_v31 = vpop.f32.mrb[17].mxu0 }
 0x252   : > { %5418 = vcosq.f32 %v2256_v33  ;;  %v6848_v46 = vsub.s32 %v2332_v22, %v2335_v20  ;;  %vm2411_vm14 = vcmp.lt.s32.totalorder %v6822_v0, 4  ;;  %v2416_v2 = vsel %vm2408_vm11, %v2395_v60, %v2398_v14 }
 0x253   : > { %5420 = vsinq.f32 %v2256_v33  ;;  %vm2410_vm15 = vcmp.lt.s32.totalorder %v6822_v0, 3  ;;  %v2417_v26 = vsel %vm2411_vm14, %v2404_v11, 920167782  ;;  %v2483_v40 = vand.u32 2139095040, %v6734_v19 }
 0x254   : > { %vm6857_vm1 = vcmp.le.f32.partialorder %v2272_v36, 0.7853982  ;;  %v2338_v15 = vsub.s32 0, %v6848_v46  ;;  %vm2409_vm0 = vcmp.lt.s32.totalorder %v6822_v0, 2  ;;  %v2418_v1 = vsel %vm2410_vm15, %v2401_v30, %v2417_v26 }
 0x255   : > { %v2424_v17 = vshll.u32 %v2384_v53, 8  ;;  %v2413_v41 = vsel %vm2411_vm14, %v2401_v30, 2102212464  ;;  %v2419_v24 = vsel %vm2409_vm0, %v2416_v2, %v2418_v1  ;;  %v2420_v63 = vsel %vm2408_vm11, %v2398_v14, %v2401_v30 }
 0x256   : > { %v2421_v34 = vsel %vm2411_vm14, %v2407_v25, 1326507024  ;;  %v4936_v36 = vmin.u32 %v2338_v15, %v6848_v46  ;;  %v2358_v22 = vsub.s32 4, %v2334_v56  ;;  %v2392_v59 = vshrl.u32 %v5599_v62, %v2391_v44 }
 0x257   : > { %v2422_v48 = vsel %vm2410_vm15, %v2404_v11, %v2421_v34  ;;  %v6875_v52 = vmul.u32.u64.low %v2424_v17, %v2419_v24  ;;  %v6876_v10 = vmul.u32.u64.high %v2424_v17, %v2419_v24, %v6875_v52  ;;  %v2484_v42 = vshrl.u32 %v2483_v40, 23 }
 0x258   : > { %v2423_v50 = vsel %vm2409_vm0, %v2420_v63, %v2422_v48  ;;  %vm2263_vm2 = vcmp.lt.s32.totalorder %v6844_v18, 2  ;;  %v2340_v39 = vclz %v4936_v36  ;;  %v2412_v28 = vsel %vm2408_vm11, %v2392_v59, %v2395_v60 }
 0x259   : > { %v2414_v44 = vsel %vm2410_vm15, %v2398_v14, %v2413_v41  ;;  %vm2260_vm3 = vweird.f32 %v6446_v27  ;;  %vm2264_vm4 = vcmp.eq.s32.totalorder %v6844_v18, 0  ;;  %v4943_v55 = vadd.s32 4294967169, %v2484_v42 }
 0x25a   : > { %v6886_v13 = vmul.u32.u64.low %v2424_v17, %v2423_v50  ;;  %v6887_v43 = vmul.u32.u64.high %v2424_v17, %v2423_v50, %v6886_v13  ;;  %v4937_v58 = vadd.s32 4294967294, %v2340_v39  ;;  %v2359_v11 = vsel %vm2274_vm13, %v2358_v22, %v2334_v56 }
 0x25b   : > { %v6895_v60 = vadd.f32 %v6440_v8, %v6448_v29  ;;  %v6899_v14 = vadd.f32 %v6536_v47, %v6543_v61  ;;  %v2415_v3 = vsel %vm2409_vm0, %v2412_v28, %v2414_v44  ;;  %v2434_v20 = vadd.s32 1, %v6876_v10 }
 0x25c   : > { %v2490_v53 = vadd.s32 1, %v4943_v55  ;;  %v6908_v30 = vadd.f32 %v6600_v16, %v6602_v38  ;;  %v5419_v56 = vpop.eup %5418  ;;  %vm2267_vm5 = vcmp.eq.s32.totalorder %v6844_v18, 2  ;;  %v2328_v8 = vadd.s32 %v6801_v45, %v6798_v37 }
 0x25d   : > { %vm4938_vm6 = vcmp.lt.s32.totalorder %v4937_v58, 0  ;;  %v2480_v29 = vand.u32 2147483647, %v6734_v19  ;;  %v5421_v47 = vpop.eup %5420  ;;  %v2268_v61 = vxor.u32 2147483648, %v5419_v56  ;;  %v2361_v33 = vsel %vm6857_vm1, 0, %v2359_v11 }
 0x25e   : > { %v2343_v0 = vsel %vm4938_vm6, 0, %v4937_v58  ;;  %vm2433_vm7 = vc.u32 %v6887_v43, %v6875_v52  ;;  %v2265_v16 = vxor.u32 2147483648, %v5421_v47  ;;  %v2431_v2 = vmul.u32 %v2424_v17, %v2415_v3 }
 0x25f   : > { %v2344_v38 = vsub.s32 32, %v2343_v0  ;;  %v2348_v25 = vsub.s32 4294967266, %v2343_v0  ;;  %v2269_v26 = vsel %vm2267_vm5, %v2268_v61, %v5421_v47  ;;  %v2345_v37 = vshll.u32 %v6848_v46, %v2343_v0 }
 0x260   : > { %v2435_v45 = vsel %vm2433_vm7, %v2434_v20, %v6876_v10  ;;  %vm2491_vm8 = vcmp.gt.s32.totalorder %v2490_v53, 0  ;;  %v2266_v40 = vsel %vm2264_vm4, %v5419_v56, %v2265_v16  ;;  %v2365_v63 = vadd.s32 3, %v2361_v33 }
 0x261   : > { %v2346_v15 = vshrl.u32 %v2328_v8, %v2344_v38  ;;  %v2349_v1 = vadd.s32 127, %v2348_v25  ;;  %v2436_v41 = vadd.s32 %v2435_v45, %v2431_v2  ;;  %v2270_v24 = vsel %vm2263_vm2, %v2266_v40, %v2269_v26 }
 0x262   : > { %v2487_v17 = vand.u32 8388607, %v2480_v29  ;;  %v2492_v34 = vsel %vm2491_vm8, %v2490_v53, 0  ;;  %v2271_v46 = vsel %vm2260_vm3, nan, %v2270_v24  ;;  %v2587_v50 = vand.u32 2139095040, %v6895_v60 }
 0x263   : > { %v2347_v36 = vor.u32 %v2346_v15, %v2345_v37  ;;  %v2350_v22 = vshll.u32 %v2349_v1, 23  ;;  %v2437_v59 = vadd.s32 536870912, %v2436_v41  ;;  %4775 = vst [vmem:[%s6348_s26 + $0x38] sm:$0xff] %v2271_v46  ;;  %v2494_v48 = vand.u32 31, %v2492_v34 }
 0x264   : > { %v6930_v39 = vand.u32 3, %v2365_v63  ;;  %v2488_v18 = vor.u32 8388608, %v2487_v17  ;;  %vm2378_vm9 = vcmp.lt.s32.totalorder %v6638_v32, 0  ;;  %v2584_v27 = vand.u32 2147483647, %v6895_v60 }
 0x265   : > { %v2351_v10 = vor.u32 4788187, %v2350_v22  ;;  %v2438_v42 = vshrl.u32 %v2437_v59, 30  ;;  %v2495_v28 = vsub.s32 32, %v2494_v48  ;;  %v2354_v13 = vcvt.s32.f32 %v2347_v36 }
 0x266   : > { %v2588_v20 = vshrl.u32 %v2587_v50, 23  ;;  %v2497_v8 = vshll.u32 %v5599_v62, %v2494_v48  ;;  %v2493_v0 = vshrl.u32 %v2492_v34, 5  ;;  %v2500_v33 = vshll.u32 %v5600_v5, %v2494_v48 }
 0x267   : > { %v2352_v44 = vand.u32 2147483647, %v2351_v10  ;;  %v2439_v55 = vshll.u32 %v2438_v42, 30  ;;  %v2498_v58 = vshrl.u32 %v5600_v5, %v2495_v28  ;;  %v2501_v11 = vshrl.u32 %v5601_v7, %v2495_v28 }
 0x268   : > { %v2504_v3 = vshrl.u32 %v5602_v12, %v2495_v28  ;;  %v2507_v47 = vshrl.u32 %v5603_v21, %v2495_v28  ;;  %v2462_v61 = vsub.s32 4, %v2438_v42  ;;  %v2503_v16 = vshll.u32 %v5601_v7, %v2494_v48 }
 0x269   : > { %v2355_v53 = vmul.f32 %v2354_v13, %v2352_v44  ;;  %v6937_v56 = vsub.s32 %v2436_v41, %v2439_v55  ;;  %v2499_v2 = vor.u32 %v2498_v58, %v2497_v8  ;;  %v2506_v26 = vshll.u32 %v5602_v12, %v2494_v48  ;;  %v6966_v58 = vpop.f32.mrb[17].mxu1 }
 0x26a   : > { %v2502_v37 = vor.u32 %v2501_v11, %v2500_v33  ;;  %v2505_v45 = vor.u32 %v2504_v3, %v2503_v16  ;;  %v2509_v40 = vshll.u32 %v5603_v21, %v2494_v48  ;;  %v2510_v15 = vshrl.u32 %v5604_v9, %v2495_v28 }
 0x26b   : > { %v2356_v38 = vxor.u32 2147483648, %v2355_v53  ;;  %v2442_v25 = vsub.s32 0, %v6937_v56  ;;  %vm6951_vm12 = vcmp.le.f32.partialorder %v2376_v23, 0.7853982  ;;  %v2508_v63 = vor.u32 %v2507_v47, %v2506_v26 }
 0x26c   : > { %v6956_v17 = vshll.u32 %v2488_v18, 8  ;;  %v2496_v46 = vshrl.u32 %v5599_v62, %v2495_v28  ;;  %v2511_v36 = vor.u32 %v2510_v15, %v2509_v40  ;;  %v4947_v22 = vadd.s32 4294967169, %v2588_v20 }
 0x26d   : > { %v2357_v1 = vsel %vm2274_vm13, %v2356_v38, %v2355_v53  ;;  %v4940_v24 = vmin.u32 %v2442_v25, %v6937_v56  ;;  %vm2512_vm10 = vcmp.lt.s32.totalorder %v2493_v0, 1  ;;  %vm2515_vm13 = vcmp.lt.s32.totalorder %v2493_v0, 4 }
 0x26e   : > { %v2360_v34 = vsel %vm6857_vm1, %v6634_v6, %v2357_v1  ;;  %v2463_v23 = vsel %vm2378_vm9, %v2462_v61, %v2438_v42  ;;  %v2517_v48 = vsel %vm2515_vm13, %v2505_v45, 2102212464  ;;  %v2520_v50 = vsel %vm2512_vm10, %v2499_v2, %v2502_v37 }
 0x26f   : > { %5422 = vcosq.f32 %v2360_v34  ;;  %v2444_v59 = vclz %v4940_v24  ;;  %vm2514_vm11 = vcmp.lt.s32.totalorder %v2493_v0, 3  ;;  %v2521_v18 = vsel %vm2515_vm13, %v2508_v63, 920167782 }
 0x270   : > { %5424 = vsinq.f32 %v2360_v34  ;;  %v2524_v44 = vsel %vm2512_vm10, %v2502_v37, %v2505_v45  ;;  %vm2513_vm14 = vcmp.lt.s32.totalorder %v2493_v0, 2  ;;  %v2516_v28 = vsel %vm2512_vm10, %v2496_v46, %v2499_v2 }
 0x271   : > { %v4941_v10 = vadd.s32 4294967294, %v2444_v59  ;;  %v2522_v13 = vsel %vm2514_vm11, %v2505_v45, %v2521_v18  ;;  %v2525_v55 = vsel %vm2515_vm13, %v2511_v36, 1326507024  ;;  %v2518_v11 = vsel %vm2514_vm11, %v2502_v37, %v2517_v48 }
 0x272   : > { %v2523_v3 = vsel %vm2513_vm14, %v2520_v50, %v2522_v13  ;;  %v2526_v20 = vsel %vm2514_vm11, %v2508_v63, %v2525_v55  ;;  %v2432_v61 = vadd.s32 %v6875_v52, %v6887_v43  ;;  %v2594_v38 = vadd.s32 1, %v4947_v22 }
 0x273   : > { %vm4942_vm15 = vcmp.lt.s32.totalorder %v4941_v10, 0  ;;  %v2527_v53 = vsel %vm2513_vm14, %v2524_v44, %v2526_v20  ;;  %v6971_v8 = vmul.u32.u64.low %v6956_v17, %v2523_v3  ;;  %v6972_v47 = vmul.u32.u64.high %v6956_v17, %v2523_v3, %v6971_v8 }
 0x274   : > { %v2447_v42 = vsel %vm4942_vm15, 0, %v4941_v10  ;;  %v2465_v25 = vsel %vm6951_vm12, 0, %v2463_v23  ;;  %v2519_v2 = vsel %vm2513_vm14, %v2516_v28, %v2518_v11  ;;  %vm2595_vm1 = vcmp.gt.s32.totalorder %v2594_v38, 0 }
 0x275   : > { %v2448_v33 = vsub.s32 32, %v2447_v42  ;;  %v2452_v16 = vsub.s32 4294967266, %v2447_v42  ;;  %v6981_v26 = vmul.u32.u64.low %v6956_v17, %v2527_v53  ;;  %v6982_v37 = vmul.u32.u64.high %v6956_v17, %v2527_v53, %v6981_v26 }
 0x276   : > { %v2449_v45 = vshll.u32 %v6937_v56, %v2447_v42  ;;  %vm2364_vm0 = vweird.f32 %v6634_v6  ;;  %vm2367_vm2 = vcmp.lt.s32.totalorder %v6930_v39, 2  ;;  %v2538_v52 = vadd.s32 1, %v6972_v47 }
 0x277   : > { %v2450_v40 = vshrl.u32 %v2432_v61, %v2448_v33  ;;  %v2453_v15 = vadd.s32 127, %v2452_v16  ;;  %v2596_v43 = vsel %vm2595_vm1, %v2594_v38, 0  ;;  %v2469_v63 = vadd.s32 3, %v2465_v25 }
 0x278   : > { %v2598_v34 = vand.u32 31, %v2596_v43  ;;  %v2535_v22 = vmul.u32 %v6956_v17, %v2519_v2  ;;  %vm2537_vm3 = vc.u32 %v6982_v37, %v6971_v8  ;;  %v2591_v56 = vand.u32 8388607, %v2584_v27 }
 0x279   : > { %v5423_v1 = vpop.eup %5422  ;;  %v2451_v24 = vor.u32 %v2450_v40, %v2449_v45  ;;  %v2454_v0 = vshll.u32 %v2453_v15, 23  ;;  %vm2371_vm4 = vcmp.eq.s32.totalorder %v6930_v39, 2  ;;  %v2539_v48 = vsel %vm2537_vm3, %v2538_v52, %v6972_v47 }
 0x27a   : > { %v5425_v46 = vpop.eup %5424  ;;  %v2372_v36 = vxor.u32 2147483648, %v5423_v1  ;;  %vm2368_vm5 = vcmp.eq.s32.totalorder %v6930_v39, 0  ;;  %v2540_v10 = vadd.s32 %v2539_v48, %v2535_v22  ;;  %v2599_v18 = vsub.s32 32, %v2598_v34 }
 0x27b   : > { %v2369_v59 = vxor.u32 2147483648, %v5425_v46  ;;  %v2455_v23 = vor.u32 4788187, %v2454_v0  ;;  %v2458_v28 = vcvt.s32.f32 %v2451_v24  ;;  %v6996_v13 = vand.u32 3, %v2469_v63 }
 0x27c   : > { %v2373_v50 = vsel %vm2371_vm4, %v2372_v36, %v5425_v46  ;;  %v2541_v11 = vadd.s32 536870912, %v2540_v10  ;;  %v2592_v3 = vor.u32 8388608, %v2591_v56  ;;  %v2602_v20 = vshrl.u32 %v5600_v5, %v2599_v18 }
 0x27d   : > { %v2370_v44 = vsel %vm2368_vm5, %v5423_v1, %v2369_v59  ;;  %v2456_v17 = vand.u32 2147483647, %v2455_v23  ;;  %v2605_v47 = vshrl.u32 %v5601_v7, %v2599_v18  ;;  %v2691_v61 = vand.u32 2139095040, %v6899_v14 }
 0x27e   : > { %v2374_v55 = vsel %vm2367_vm2, %v2370_v44, %v2373_v50  ;;  %v2542_v33 = vshrl.u32 %v2541_v11, 30  ;;  %v2601_v16 = vshll.u32 %v5599_v62, %v2598_v34  ;;  %v2608_v38 = vshrl.u32 %v5602_v12, %v2599_v18 }
 0x27f   : > { %v2375_v42 = vsel %vm2364_vm0, nan, %v2374_v55  ;;  %v2459_v53 = vmul.f32 %v2458_v28, %v2456_v17  ;;  %v2611_v39 = vshrl.u32 %v5603_v21, %v2599_v18  ;;  %v2597_v2 = vshrl.u32 %v2596_v43, 5 }
 0x280   : > { %4776 = vst [vmem:[%s6348_s26 + $0x40] sm:$0xff] %v2375_v42  ;;  %v2604_v26 = vshll.u32 %v5600_v5, %v2598_v34  ;;  %v2610_v6 = vshll.u32 %v5602_v12, %v2598_v34  ;;  %v2543_v45 = vshll.u32 %v2542_v33, 30  ;;  %v2603_v40 = vor.u32 %v2602_v20, %v2601_v16 }
 0x281   : > { %v2460_v25 = vxor.u32 2147483648, %v2459_v53  ;;  %v2607_v15 = vshll.u32 %v5601_v7, %v2598_v34  ;;  %v2614_v52 = vshrl.u32 %v5604_v9, %v2599_v18  ;;  %v2613_v63 = vshll.u32 %v5603_v21, %v2598_v34 }
 0x282   : > { %v2606_v24 = vor.u32 %v2605_v47, %v2604_v26  ;;  %v2612_v0 = vor.u32 %v2611_v39, %v2610_v6  ;;  %v7019_v46 = vsub.s32 %v2540_v10, %v2543_v45  ;;  %v7021_v22 = vshll.u32 %v2592_v3, 8 }
 0x283   : > { %v2461_v1 = vsel %vm2378_vm9, %v2460_v25, %v2459_v53  ;;  %v2609_v36 = vor.u32 %v2608_v38, %v2607_v15  ;;  %v2600_v56 = vshrl.u32 %v5599_v62, %v2599_v18  ;;  %v2615_v59 = vor.u32 %v2614_v52, %v2613_v63  ;;  %v7057_v15 = vpop.f32.mrb[18].mxu0  ;;  %v7064_v63 = vpop.f32.mrb[18].mxu1 }
 0x284   : > { %v2464_v43 = vsel %vm6951_vm12, %v6638_v32, %v2461_v1  ;;  %v2692_v23 = vshrl.u32 %v2691_v61, 23  ;;  %v2546_v48 = vsub.s32 0, %v7019_v46  ;;  %vm2616_vm6 = vcmp.lt.s32.totalorder %v2597_v2, 1 }
 0x285   : > { %5426 = vcosq.f32 %v2464_v43  ;;  %vm2619_vm7 = vcmp.lt.s32.totalorder %v2597_v2, 4  ;;  %v2566_v34 = vsub.s32 4, %v2542_v33  ;;  %vm2618_vm8 = vcmp.lt.s32.totalorder %v2597_v2, 3 }
 0x286   : > { %5428 = vsinq.f32 %v2464_v43  ;;  %v2624_v41 = vsel %vm2616_vm6, %v2603_v40, %v2606_v24  ;;  %v2625_v50 = vsel %vm2619_vm7, %v2612_v0, 920167782  ;;  %v4944_v10 = vmin.u32 %v2546_v48, %v7019_v46 }
 0x287   : > { %vm2617_vm9 = vcmp.lt.s32.totalorder %v2597_v2, 2  ;;  %v2621_v44 = vsel %vm2619_vm7, %v2609_v36, 2102212464  ;;  %v2626_v17 = vsel %vm2618_vm8, %v2609_v36, %v2625_v50  ;;  %v2628_v28 = vsel %vm2616_vm6, %v2606_v24, %v2609_v36 }
 0x288   : > { %v2627_v18 = vsel %vm2617_vm9, %v2624_v41, %v2626_v17  ;;  %v2629_v55 = vsel %vm2619_vm7, %v2615_v59, 1326507024  ;;  %v4951_v11 = vadd.s32 4294967169, %v2692_v23  ;;  %vm7032_vm12 = vcmp.le.f32.partialorder %v2480_v29, 0.7853982 }
 0x289   : > { %vm2482_vm10 = vcmp.lt.s32.totalorder %v6734_v19, 0  ;;  %v2548_v20 = vclz %v4944_v10  ;;  %v2620_v42 = vsel %vm2616_vm6, %v2600_v56, %v2603_v40  ;;  %v2622_v53 = vsel %vm2618_vm8, %v2606_v24, %v2621_v44 }
 0x28a   : > { %v2630_v47 = vsel %vm2618_vm8, %v2612_v0, %v2629_v55  ;;  %v7041_v61 = vmul.u32.u64.low %v7021_v22, %v2627_v18  ;;  %v7042_v16 = vmul.u32.u64.high %v7021_v22, %v2627_v18, %v7041_v61  ;;  %vm2468_vm13 = vweird.f32 %v6638_v32 }
 0x28b   : > { %v4945_v29 = vadd.s32 4294967294, %v2548_v20  ;;  %v2567_v38 = vsel %vm2482_vm10, %v2566_v34, %v2542_v33  ;;  %v2631_v39 = vsel %vm2617_vm9, %v2628_v28, %v2630_v47  ;;  %v2698_v25 = vadd.s32 1, %v4951_v11 }
 0x28c   : > { %vm2472_vm11 = vcmp.eq.s32.totalorder %v6996_v13, 0  ;;  %vm2475_vm14 = vcmp.eq.s32.totalorder %v6996_v13, 2  ;;  %v7052_v26 = vmul.u32.u64.low %v7021_v22, %v2631_v39  ;;  %v7053_v6 = vmul.u32.u64.high %v7021_v22, %v2631_v39, %v7052_v26 }
 0x28d   : > { %vm4946_vm15 = vcmp.lt.s32.totalorder %v4945_v29, 0  ;;  %v2623_v45 = vsel %vm2617_vm9, %v2620_v42, %v2622_v53  ;;  %v2688_v40 = vand.u32 2147483647, %v6899_v14  ;;  %vm2699_vm1 = vcmp.gt.s32.totalorder %v2698_v25, 0 }
 0x28e   : > { %v2536_v52 = vadd.s32 %v6971_v8, %v6982_v37  ;;  %v2551_v1 = vsel %vm4946_vm15, 0, %v4945_v29  ;;  %v2569_v24 = vsel %vm7032_vm12, 0, %v2567_v38  ;;  %v2642_v0 = vadd.s32 1, %v7042_v16 }
 0x28f   : > { %v5427_v33 = vpop.eup %5426  ;;  %v2552_v36 = vsub.s32 32, %v2551_v1  ;;  %v2556_v56 = vsub.s32 4294967266, %v2551_v1  ;;  %v2700_v59 = vsel %vm2699_vm1, %v2698_v25, 0  ;;  %v2553_v48 = vshll.u32 %v7019_v46, %v2551_v1 }
 0x290   : > { %v5429_v43 = vpop.eup %5428  ;;  %v2476_v2 = vxor.u32 2147483648, %v5427_v33  ;;  %v2639_v34 = vmul.u32 %v7021_v22, %v2623_v45  ;;  %vm2641_vm0 = vc.u32 %v7053_v6, %v7041_v61  ;;  %vm2471_vm2 = vcmp.lt.s32.totalorder %v6996_v13, 2 }
 0x291   : > { %v2473_v23 = vxor.u32 2147483648, %v5429_v43  ;;  %v2554_v37 = vshrl.u32 %v2536_v52, %v2552_v36  ;;  %v2557_v41 = vadd.s32 127, %v2556_v56  ;;  %v2643_v50 = vsel %vm2641_vm0, %v2642_v0, %v7042_v16 }
 0x292   : > { %v2477_v8 = vsel %vm2475_vm14, %v2476_v2, %v5429_v43  ;;  %v2644_v44 = vadd.s32 %v2643_v50, %v2639_v34  ;;  %v2702_v46 = vand.u32 31, %v2700_v59  ;;  %v2573_v28 = vadd.s32 3, %v2569_v24 }
 0x293   : > { %v2474_v10 = vsel %vm2472_vm11, %v5427_v33, %v2473_v23  ;;  %v2555_v22 = vor.u32 %v2554_v37, %v2553_v48  ;;  %v2558_v18 = vshll.u32 %v2557_v41, 23  ;;  %v2695_v20 = vand.u32 8388607, %v2688_v40 }
 0x294   : > { %v2478_v17 = vsel %vm2471_vm2, %v2474_v10, %v2477_v8  ;;  %v2645_v11 = vadd.s32 536870912, %v2644_v44  ;;  %v2703_v42 = vsub.s32 32, %v2702_v46  ;;  %v2701_v16 = vshrl.u32 %v2700_v59, 5 }
 0x295   : > { %v2479_v55 = vsel %vm2468_vm13, nan, %v2478_v17  ;;  %v2559_v53 = vor.u32 4788187, %v2558_v18  ;;  %v2562_v47 = vcvt.s32.f32 %v2555_v22  ;;  %v2705_v13 = vshll.u32 %v5599_v62, %v2702_v46 }
 0x296   : > { %4777 = vst [vmem:[%s6348_s26 + $0x48] sm:$0xff] %v2479_v55  ;;  %v2646_v29 = vshrl.u32 %v2645_v11, 30  ;;  %v2706_v38 = vshrl.u32 %v5600_v5, %v2703_v42  ;;  %v2708_v39 = vshll.u32 %v5600_v5, %v2702_v46  ;;  %v2709_v25 = vshrl.u32 %v5601_v7, %v2703_v42 }
 0x297   : > { %v2560_v32 = vand.u32 2147483647, %v2559_v53  ;;  %v2712_v26 = vshrl.u32 %v5602_v12, %v2703_v42  ;;  %v2714_v45 = vshll.u32 %v5602_v12, %v2702_v46  ;;  %v2715_v33 = vshrl.u32 %v5603_v21, %v2703_v42 }
 0x298   : > { %v7088_v52 = vand.u32 3, %v2573_v28  ;;  %v2647_v1 = vshll.u32 %v2646_v29, 30  ;;  %v2711_v24 = vshll.u32 %v5601_v7, %v2702_v46  ;;  %v2707_v43 = vor.u32 %v2706_v38, %v2705_v13 }
 0x299   : > { %v2563_v0 = vmul.f32 %v2562_v47, %v2560_v32  ;;  %v2710_v2 = vor.u32 %v2709_v25, %v2708_v39  ;;  %v2716_v36 = vor.u32 %v2715_v33, %v2714_v45  ;;  %vm2586_vm3 = vcmp.lt.s32.totalorder %v6895_v60, 0 }
 0x29a   : > { %v7092_v56 = vsub.s32 %v2644_v44, %v2647_v1  ;;  %v2713_v59 = vor.u32 %v2712_v26, %v2711_v24  ;;  %v2717_v23 = vshll.u32 %v5603_v21, %v2702_v46  ;;  %v2718_v48 = vshrl.u32 %v5604_v9, %v2703_v42 }
 0x29b   : > { %v2564_v34 = vxor.u32 2147483648, %v2563_v0  ;;  %v2696_v8 = vor.u32 8388608, %v2695_v20  ;;  %vm2720_vm4 = vcmp.lt.s32.totalorder %v2701_v16, 1  ;;  %v2795_v37 = vand.u32 2139095040, %v6908_v30 }
 0x29c   : > { %v2650_v41 = vsub.s32 0, %v7092_v56  ;;  %v2704_v50 = vshrl.u32 %v5599_v62, %v2703_v42  ;;  %v2719_v10 = vor.u32 %v2718_v48, %v2717_v23  ;;  %vm2723_vm5 = vcmp.lt.s32.totalorder %v2701_v16, 4 }
 0x29d   : > { %v2565_v44 = vsel %vm2482_vm10, %v2564_v34, %v2563_v0  ;;  %vm7103_vm6 = vcmp.le.f32.partialorder %v2584_v27, 0.7853982  ;;  %v2670_v17 = vsub.s32 4, %v2646_v29  ;;  %vm2722_vm7 = vcmp.lt.s32.totalorder %v2701_v16, 3 }
 0x29e   : > { %v2729_v22 = vsel %vm2723_vm5, %v2716_v36, 920167782  ;;  %v2568_v18 = vsel %vm7032_vm12, %v6734_v19, %v2565_v44  ;;  %v4948_v28 = vmin.u32 %v2650_v41, %v7092_v56  ;;  %v2725_v55 = vsel %vm2723_vm5, %v2713_v59, 2102212464 }
 0x29f   : > { %v2728_v11 = vsel %vm2720_vm4, %v2707_v43, %v2710_v2  ;;  %5430 = vcosq.f32 %v2568_v18  ;;  %v2730_v20 = vsel %vm2722_vm7, %v2713_v59, %v2729_v22  ;;  %v2732_v27 = vsel %vm2720_vm4, %v2710_v2, %v2713_v59 }
 0x2a0   : > { %v2733_v42 = vsel %vm2723_vm5, %v2719_v10, 1326507024  ;;  %5432 = vsinq.f32 %v2568_v18  ;;  %v2652_v53 = vclz %v4948_v28  ;;  %vm2721_vm8 = vcmp.lt.s32.totalorder %v2701_v16, 2 }
 0x2a1   : > { %v2736_v47 = vshll.u32 %v2696_v8, 8  ;;  %v2724_v13 = vsel %vm2720_vm4, %v2704_v50, %v2707_v43  ;;  %v2726_v3 = vsel %vm2722_vm7, %v2710_v2, %v2725_v55  ;;  %v2731_v38 = vsel %vm2721_vm8, %v2728_v11, %v2730_v20  ;;  %v7151_v20 = vpop.f32.mrb[19].mxu0 }
 0x2a2   : > { %v2734_v39 = vsel %vm2722_vm7, %v2716_v36, %v2733_v42  ;;  %v4949_v25 = vadd.s32 4294967294, %v2652_v53  ;;  %v2671_v33 = vsel %vm2586_vm3, %v2670_v17, %v2646_v29  ;;  %v2796_v0 = vshrl.u32 %v2795_v37, 23  ;;  %v7154_v53 = vpop.f32.mrb[19].mxu1 }
 0x2a3   : > { %v2735_v32 = vsel %vm2721_vm8, %v2732_v27, %v2734_v39  ;;  %v7117_v26 = vmul.u32.u64.low %v2736_v47, %v2731_v38  ;;  %v7118_v45 = vmul.u32.u64.high %v2736_v47, %v2731_v38, %v7117_v26  ;;  %v2640_v43 = vadd.s32 %v7041_v61, %v7053_v6 }
 0x2a4   : > { %v7123_v1 = vmul.u32.u64.low %v2736_v47, %v2735_v32  ;;  %v7124_v24 = vmul.u32.u64.high %v2736_v47, %v2735_v32, %v7123_v1  ;;  %vm4950_vm9 = vcmp.lt.s32.totalorder %v4949_v25, 0  ;;  %v2727_v2 = vsel %vm2721_vm8, %v2724_v13, %v2726_v3 }
 0x2a5   : > { %v7130_v16 = vadd.f32 %v6707_v4, %v6713_v49  ;;  %v2655_v36 = vsel %vm4950_vm9, 0, %v4949_v25  ;;  %v4955_v59 = vadd.s32 4294967169, %v2796_v0  ;;  %v7134_v23 = vadd.f32 %v6789_v35, %v6794_v54 }
 0x2a6   : > { %v7138_v29 = vadd.f32 %v6889_v51, %v6901_v57  ;;  %v2656_v48 = vsub.s32 32, %v2655_v36  ;;  %v2660_v34 = vsub.s32 4294967266, %v2655_v36  ;;  %v2673_v61 = vsel %vm7103_vm6, 0, %v2671_v33 }
 0x2a7   : > { %v2746_v6 = vadd.s32 1, %v7118_v45  ;;  %v2743_v8 = vmul.u32 %v2736_v47, %v2727_v2  ;;  %vm2745_vm12 = vc.u32 %v7124_v24, %v7117_v26  ;;  %v2792_v4 = vand.u32 2147483647, %v6908_v30 }
 0x2a8   : > { %v2802_v49 = vadd.s32 1, %v4955_v59  ;;  %v2657_v35 = vshll.u32 %v7092_v56, %v2655_v36  ;;  %v2658_v54 = vshrl.u32 %v2640_v43, %v2656_v48  ;;  %v2661_v37 = vadd.s32 127, %v2660_v34 }
 0x2a9   : > { %v2747_v51 = vsel %vm2745_vm12, %v2746_v6, %v7118_v45  ;;  %v5431_v57 = vpop.eup %5430  ;;  %vm2579_vm10 = vcmp.eq.s32.totalorder %v7088_v52, 2  ;;  %v2677_v41 = vadd.s32 3, %v2673_v61  ;;  %v2799_v56 = vand.u32 8388607, %v2792_v4 }
 0x2aa   : > { %v2748_v50 = vadd.s32 %v2747_v51, %v2743_v8  ;;  %vm2803_vm13 = vcmp.gt.s32.totalorder %v2802_v49, 0  ;;  %v5433_v10 = vpop.eup %5432  ;;  %v2580_v44 = vxor.u32 2147483648, %v5431_v57  ;;  %v2659_v17 = vor.u32 %v2658_v54, %v2657_v35 }
 0x2ab   : > { %v2662_v22 = vshll.u32 %v2661_v37, 23  ;;  %v2804_v18 = vsel %vm2803_vm13, %v2802_v49, 0  ;;  %v2577_v28 = vxor.u32 2147483648, %v5433_v10  ;;  %vm2576_vm11 = vcmp.eq.s32.totalorder %v7088_v52, 0 }
 0x2ac   : > { %v2749_v55 = vadd.s32 536870912, %v2748_v50  ;;  %v2806_v11 = vand.u32 31, %v2804_v18  ;;  %v2581_v27 = vsel %vm2579_vm10, %v2580_v44, %v5433_v10  ;;  %vm2575_vm14 = vcmp.lt.s32.totalorder %v7088_v52, 2 }
 0x2ad   : > { %v2663_v42 = vor.u32 4788187, %v2662_v22  ;;  %v2578_v47 = vsel %vm2576_vm11, %v5431_v57, %v2577_v28  ;;  %vm2572_vm15 = vweird.f32 %v6734_v19  ;;  %v2666_v25 = vcvt.s32.f32 %v2659_v17 }
 0x2ae   : > { %v2750_v13 = vshrl.u32 %v2749_v55, 30  ;;  %v2807_v3 = vsub.s32 32, %v2806_v11  ;;  %v2582_v38 = vsel %vm2575_vm14, %v2578_v47, %v2581_v27  ;;  %v7158_v45 = vand.u32 3, %v2677_v41 }
 0x2af   : > { %v2664_v39 = vand.u32 2147483647, %v2663_v42  ;;  %v2583_v32 = vsel %vm2572_vm15, nan, %v2582_v38  ;;  %vm2690_vm1 = vcmp.lt.s32.totalorder %v6899_v14, 0  ;;  %v2800_v1 = vor.u32 8388608, %v2799_v56 }
 0x2b0   : > { %v2751_v33 = vshll.u32 %v2750_v13, 30  ;;  %4778 = vst [vmem:[%s6348_s26 + $0x50] sm:$0xff] %v2583_v32  ;;  %v2810_v43 = vshrl.u32 %v5600_v5, %v2807_v3  ;;  %v2813_v52 = vshrl.u32 %v5601_v7, %v2807_v3  ;;  %v2816_v2 = vshrl.u32 %v5602_v12, %v2807_v3 }
 0x2b1   : > { %v2667_v0 = vmul.f32 %v2666_v25, %v2664_v39  ;;  %v2809_v19 = vshll.u32 %v5599_v62, %v2806_v11  ;;  %v2812_v59 = vshll.u32 %v5600_v5, %v2806_v11  ;;  %v2819_v48 = vshrl.u32 %v5603_v21, %v2807_v3 }
 0x2b2   : > { %v7165_v36 = vsub.s32 %v2748_v50, %v2751_v33  ;;  %v2774_v61 = vsub.s32 4, %v2750_v13  ;;  %v2805_v6 = vshrl.u32 %v2804_v18, 5  ;;  %v2815_v8 = vshll.u32 %v5601_v7, %v2806_v11 }
 0x2b3   : > { %v2668_v34 = vxor.u32 2147483648, %v2667_v0  ;;  %v2811_v35 = vor.u32 %v2810_v43, %v2809_v19  ;;  %v2814_v54 = vor.u32 %v2813_v52, %v2812_v59  ;;  %v2818_v37 = vshll.u32 %v5602_v12, %v2806_v11 }
 0x2b4   : > { %v2754_v49 = vsub.s32 0, %v7165_v36  ;;  %v2817_v57 = vor.u32 %v2816_v2, %v2815_v8  ;;  %v2821_v41 = vshll.u32 %v5603_v21, %v2806_v11  ;;  %v2822_v50 = vshrl.u32 %v5604_v9, %v2807_v3 }
 0x2b5   : > { %v2669_v51 = vsel %vm2586_vm3, %v2668_v34, %v2667_v0  ;;  %vm7182_vm0 = vcmp.le.f32.partialorder %v2688_v40, 0.7853982  ;;  %v2744_v17 = vadd.s32 %v7117_v26, %v7124_v24  ;;  %v2820_v18 = vor.u32 %v2819_v48, %v2818_v37 }
 0x2b6   : > { %v2672_v10 = vsel %vm7103_vm6, %v6895_v60, %v2669_v51  ;;  %v4952_v22 = vmin.u32 %v2754_v49, %v7165_v36  ;;  %v2808_v28 = vshrl.u32 %v5599_v62, %v2807_v3  ;;  %v2823_v55 = vor.u32 %v2822_v50, %v2821_v41  ;;  %v7212_v41 = vpop.f32.mrb[20].mxu0 }
 0x2b7   : > { %5434 = vcosq.f32 %v2672_v10  ;;  %v2840_v56 = vshll.u32 %v2800_v1, 8  ;;  %vm2824_vm2 = vcmp.lt.s32.totalorder %v2805_v6, 1  ;;  %vm2827_vm3 = vcmp.lt.s32.totalorder %v2805_v6, 4 }
 0x2b8   : > { %5436 = vsinq.f32 %v2672_v10  ;;  %v2756_v46 = vclz %v4952_v22  ;;  %v2775_v40 = vsel %vm2690_vm1, %v2774_v61, %v2750_v13  ;;  %vm2825_vm4 = vcmp.lt.s32.totalorder %v2805_v6, 2 }
 0x2b9   : > { %v2829_v11 = vsel %vm2827_vm3, %v2817_v57, 2102212464  ;;  %v2832_v27 = vsel %vm2824_vm2, %v2811_v35, %v2814_v54  ;;  %vm2826_vm5 = vcmp.lt.s32.totalorder %v2805_v6, 3  ;;  %v2833_v26 = vsel %vm2827_vm3, %v2820_v18, 920167782 }
 0x2ba   : > { %v4953_v42 = vadd.s32 4294967294, %v2756_v46  ;;  %v2836_v24 = vsel %vm2824_vm2, %v2814_v54, %v2817_v57  ;;  %v2828_v47 = vsel %vm2824_vm2, %v2808_v28, %v2811_v35  ;;  %v2834_v38 = vsel %vm2826_vm5, %v2817_v57, %v2833_v26 }
 0x2bb   : > { %v2837_v39 = vsel %vm2827_vm3, %v2823_v55, 1326507024  ;;  %v2899_v3 = vand.u32 2139095040, %v7130_v16  ;;  %v2830_v25 = vsel %vm2826_vm5, %v2814_v54, %v2829_v11  ;;  %v2835_v32 = vsel %vm2825_vm4, %v2832_v27, %v2834_v38 }
 0x2bc   : > { %vm4954_vm6 = vcmp.lt.s32.totalorder %v4953_v42, 0  ;;  %v2838_v33 = vsel %vm2826_vm5, %v2820_v18, %v2837_v39  ;;  %v7195_v0 = vmul.u32.u64.low %v2840_v56, %v2835_v32  ;;  %v7196_v43 = vmul.u32.u64.high %v2840_v56, %v2835_v32, %v7195_v0 }
 0x2bd   : > { %v2759_v1 = vsel %vm4954_vm6, 0, %v4953_v42  ;;  %v2839_v13 = vsel %vm2825_vm4, %v2836_v24, %v2838_v33  ;;  %vm2676_vm7 = vweird.f32 %v6895_v60  ;;  %v2896_v19 = vand.u32 2147483647, %v7130_v16 }
 0x2be   : > { %v2760_v52 = vsub.s32 32, %v2759_v1  ;;  %v2764_v2 = vsub.s32 4294967266, %v2759_v1  ;;  %v2900_v59 = vshrl.u32 %v2899_v3, 23  ;;  %v2777_v48 = vsel %vm7182_vm0, 0, %v2775_v40 }
 0x2bf   : > { %v2831_v34 = vsel %vm2825_vm4, %v2828_v47, %v2830_v25  ;;  %v7204_v61 = vmul.u32.u64.low %v2840_v56, %v2839_v13  ;;  %v7205_v8 = vmul.u32.u64.high %v2840_v56, %v2839_v13, %v7204_v61  ;;  %v2761_v49 = vshll.u32 %v7165_v36, %v2759_v1  ;;  %v7214_v36 = vpop.f32.mrb[20].mxu1 }
 0x2c0   : > { %v2762_v35 = vshrl.u32 %v2744_v17, %v2760_v52  ;;  %v2765_v54 = vadd.s32 127, %v2764_v2  ;;  %v4959_v37 = vadd.s32 4294967169, %v2900_v59  ;;  %vm2679_vm8 = vcmp.lt.s32.totalorder %v7158_v45, 2 }
 0x2c1   : > { %v5435_v51 = vpop.eup %5434  ;;  %vm2680_vm9 = vcmp.eq.s32.totalorder %v7158_v45, 0  ;;  %vm2683_vm12 = vcmp.eq.s32.totalorder %v7158_v45, 2  ;;  %v2850_v57 = vadd.s32 1, %v7196_v43  ;;  %v2781_v28 = vadd.s32 3, %v2777_v48 }
 0x2c2   : > { %v5437_v6 = vpop.eup %5436  ;;  %v2684_v50 = vxor.u32 2147483648, %v5435_v51  ;;  %v2763_v10 = vor.u32 %v2762_v35, %v2761_v49  ;;  %v2766_v22 = vshll.u32 %v2765_v54, 23  ;;  %v2906_v18 = vadd.s32 1, %v4959_v37 }
 0x2c3   : > { %v2681_v17 = vxor.u32 2147483648, %v5437_v6  ;;  %v2847_v55 = vmul.u32 %v2840_v56, %v2831_v34  ;;  %vm2849_vm10 = vc.u32 %v7205_v8, %v7195_v0  ;;  %v2903_v27 = vand.u32 8388607, %v2896_v19 }
 0x2c4   : > { %v2685_v46 = vsel %vm2683_vm12, %v2684_v50, %v5437_v6  ;;  %v2767_v40 = vor.u32 4788187, %v2766_v22  ;;  %v2851_v11 = vsel %vm2849_vm10, %v2850_v57, %v7196_v43  ;;  %vm2907_vm13 = vcmp.gt.s32.totalorder %v2906_v18, 0 }
 0x2c5   : > { %v2682_v42 = vsel %vm2680_vm9, %v5435_v51, %v2681_v17  ;;  %v2852_v26 = vadd.s32 %v2851_v11, %v2847_v55  ;;  %v3003_v24 = vand.u32 2139095040, %v7134_v23  ;;  %v2770_v38 = vcvt.s32.f32 %v2763_v10 }
 0x2c6   : > { %v2686_v56 = vsel %vm2679_vm8, %v2682_v42, %v2685_v46  ;;  %v2768_v47 = vand.u32 2147483647, %v2767_v40  ;;  %v2908_v39 = vsel %vm2907_vm13, %v2906_v18, 0  ;;  %v7229_v1 = vand.u32 3, %v2781_v28 }
 0x2c7   : > { %v2687_v3 = vsel %vm2676_vm7, nan, %v2686_v56  ;;  %v2853_v25 = vadd.s32 536870912, %v2852_v26  ;;  %v2910_v32 = vand.u32 31, %v2908_v39  ;;  %vm2794_vm11 = vcmp.lt.s32.totalorder %v6908_v30, 0 }
 0x2c8   : > { %4779 = vst [vmem:[%s6348_s26 + $0x58] sm:$0xff] %v2687_v3  ;;  %v2771_v33 = vmul.f32 %v2770_v38, %v2768_v47  ;;  %v2904_v2 = vor.u32 8388608, %v2903_v27  ;;  %v7232_v45 = vshrl.u32 %v2908_v39, 5  ;;  %v3004_v59 = vshrl.u32 %v3003_v24, 23 }
 0x2c9   : > { %v2854_v13 = vshrl.u32 %v2853_v25, 30  ;;  %v2911_v43 = vsub.s32 32, %v2910_v32  ;;  %v2913_v34 = vshll.u32 %v5599_v62, %v2910_v32  ;;  %v2916_v61 = vshll.u32 %v5600_v5, %v2910_v32 }
 0x2ca   : > { %v2772_v52 = vxor.u32 2147483648, %v2771_v33  ;;  %v2919_v6 = vshll.u32 %v5601_v7, %v2910_v32  ;;  %v2922_v50 = vshll.u32 %v5602_v12, %v2910_v32  ;;  %vm7252_vm14 = vcmp.le.f32.partialorder %v2792_v4, 0.7853982 }
 0x2cb   : > { %v2855_v48 = vshll.u32 %v2854_v13, 30  ;;  %v2914_v60 = vshrl.u32 %v5600_v5, %v2911_v43  ;;  %v2917_v35 = vshrl.u32 %v5601_v7, %v2911_v43  ;;  %v2920_v54 = vshrl.u32 %v5602_v12, %v2911_v43 }
 0x2cc   : > { %v2773_v49 = vsel %vm2690_vm1, %v2772_v52, %v2771_v33  ;;  %v2923_v37 = vshrl.u32 %v5603_v21, %v2911_v43  ;;  %v2878_v10 = vsub.s32 4, %v2854_v13  ;;  %v2925_v46 = vshll.u32 %v5603_v21, %v2910_v32 }
 0x2cd   : > { %v2776_v51 = vsel %vm7182_vm0, %v6899_v14, %v2773_v49  ;;  %v7245_v57 = vsub.s32 %v2852_v26, %v2855_v48  ;;  %v2915_v22 = vor.u32 %v2914_v60, %v2913_v34  ;;  %v2918_v18 = vor.u32 %v2917_v35, %v2916_v61  ;;  %v7295_v61 = vpop.f32.mrb[21].mxu1 }
 0x2ce   : > { %5438 = vcosq.f32 %v2776_v51  ;;  %v2921_v28 = vor.u32 %v2920_v54, %v2919_v6  ;;  %v2924_v55 = vor.u32 %v2923_v37, %v2922_v50  ;;  %v2926_v40 = vshrl.u32 %v5604_v9, %v2911_v43 }
 0x2cf   : > { %5440 = vsinq.f32 %v2776_v51  ;;  %v2858_v17 = vsub.s32 0, %v7245_v57  ;;  %v7258_v11 = vshll.u32 %v2904_v2, 8  ;;  %vm2928_vm15 = vcmp.lt.s32.totalorder %v7232_v45, 1  ;;  %v7286_v2 = vpop.f32.mrb[21].mxu0 }
 0x2d0   : > { %vm2931_vm1 = vcmp.lt.s32.totalorder %v7232_v45, 4  ;;  %v4963_v42 = vadd.s32 4294967169, %v3004_v59  ;;  %vm2787_vm0 = vcmp.eq.s32.totalorder %v7229_v1, 2  ;;  %v2912_v4 = vshrl.u32 %v5599_v62, %v2911_v43 }
 0x2d1   : > { %v4956_v27 = vmin.u32 %v2858_v17, %v7245_v57  ;;  %v2927_v26 = vor.u32 %v2926_v40, %v2925_v46  ;;  %v2936_v24 = vsel %vm2928_vm15, %v2915_v22, %v2918_v18  ;;  %v2937_v56 = vsel %vm2931_vm1, %v2924_v55, 920167782 }
 0x2d2   : > { %vm2784_vm2 = vcmp.eq.s32.totalorder %v7229_v1, 0  ;;  %v2879_v38 = vsel %vm2794_vm11, %v2878_v10, %v2854_v13  ;;  %vm2930_vm3 = vcmp.lt.s32.totalorder %v7232_v45, 3  ;;  %v2933_v39 = vsel %vm2931_vm1, %v2921_v28, 2102212464 }
 0x2d3   : > { %v2860_v47 = vclz %v4956_v27  ;;  %vm2783_vm4 = vcmp.lt.s32.totalorder %v7229_v1, 2  ;;  %vm2929_vm5 = vcmp.lt.s32.totalorder %v7232_v45, 2  ;;  %v2938_v3 = vsel %vm2930_vm3, %v2921_v28, %v2937_v56 }
 0x2d4   : > { %v2940_v25 = vsel %vm2928_vm15, %v2918_v18, %v2921_v28  ;;  %v2941_v32 = vsel %vm2931_vm1, %v2927_v26, 1326507024  ;;  %vm2780_vm6 = vweird.f32 %v6899_v14  ;;  %v2932_v13 = vsel %vm2928_vm15, %v2912_v4, %v2915_v22 }
 0x2d5   : > { %v4957_v33 = vadd.s32 4294967294, %v2860_v47  ;;  %v2939_v43 = vsel %vm2929_vm5, %v2936_v24, %v2938_v3  ;;  %v2942_v52 = vsel %vm2930_vm3, %v2924_v55, %v2941_v32  ;;  %v2934_v59 = vsel %vm2930_vm3, %v2918_v18, %v2933_v39 }
 0x2d6   : > { %v2943_v48 = vsel %vm2929_vm5, %v2940_v25, %v2942_v52  ;;  %v7291_v34 = vmul.u32.u64.low %v7258_v11, %v2939_v43  ;;  %v7292_v60 = vmul.u32.u64.high %v7258_v11, %v2939_v43, %v7291_v34  ;;  %v2881_v49 = vsel %vm7252_vm14, 0, %v2879_v38 }
 0x2d7   : > { %vm4958_vm7 = vcmp.lt.s32.totalorder %v4957_v33, 0  ;;  %v7300_v35 = vmul.u32.u64.low %v7258_v11, %v2943_v48  ;;  %v7301_v54 = vmul.u32.u64.high %v7258_v11, %v2943_v48, %v7300_v35  ;;  %v2848_v51 = vadd.s32 %v7195_v0, %v7205_v8 }
 0x2d8   : > { %v5439_v37 = vpop.eup %5438  ;;  %v2863_v6 = vsel %vm4958_vm7, 0, %v4957_v33  ;;  %v3000_v50 = vand.u32 2147483647, %v7134_v23  ;;  %v3010_v10 = vadd.s32 1, %v4963_v42  ;;  %v2935_v55 = vsel %vm2929_vm5, %v2932_v13, %v2934_v59 }
 0x2d9   : > { %v5441_v22 = vpop.eup %5440  ;;  %v2788_v18 = vxor.u32 2147483648, %v5439_v37  ;;  %v2864_v17 = vsub.s32 32, %v2863_v6  ;;  %v2868_v28 = vsub.s32 4294967266, %v2863_v6  ;;  %v2885_v40 = vadd.s32 3, %v2881_v49 }
 0x2da   : > { %v2785_v46 = vxor.u32 2147483648, %v5441_v22  ;;  %v2954_v27 = vadd.s32 1, %v7292_v60  ;;  %vm3011_vm8 = vcmp.gt.s32.totalorder %v3010_v10, 0  ;;  %v2865_v8 = vshll.u32 %v7245_v57, %v2863_v6 }
 0x2db   : > { %v2789_v0 = vsel %vm2787_vm0, %v2788_v18, %v5441_v22  ;;  %v2866_v4 = vshrl.u32 %v2848_v51, %v2864_v17  ;;  %v2869_v42 = vadd.s32 127, %v2868_v28  ;;  %v2951_v24 = vmul.u32 %v7258_v11, %v2935_v55 }
 0x2dc   : > { %v2786_v26 = vsel %vm2784_vm2, %v5439_v37, %v2785_v46  ;;  %vm2953_vm9 = vc.u32 %v7301_v54, %v7291_v34  ;;  %v3012_v45 = vsel %vm3011_vm8, %v3010_v10, 0  ;;  %v3007_v11 = vand.u32 8388607, %v3000_v50 }
 0x2dd   : > { %v2790_v56 = vsel %vm2783_vm4, %v2786_v26, %v2789_v0  ;;  %v2867_v47 = vor.u32 %v2866_v4, %v2865_v8  ;;  %v2870_v38 = vshll.u32 %v2869_v42, 23  ;;  %v2955_v39 = vsel %vm2953_vm9, %v2954_v27, %v7292_v60 }
 0x2de   : > { %v2791_v57 = vsel %vm2780_vm6, nan, %v2790_v56  ;;  %v2956_v3 = vadd.s32 %v2955_v39, %v2951_v24  ;;  %v3014_v25 = vand.u32 31, %v3012_v45  ;;  %v7325_v1 = vand.u32 3, %v2885_v40 }
 0x2df   : > { %4780 = vst [vmem:[%s6348_s26 + $0x60] sm:$0xff] %v2791_v57  ;;  %v2871_v32 = vor.u32 4788187, %v2870_v38  ;;  %v2874_v52 = vcvt.s32.f32 %v2867_v47  ;;  %v7327_v59 = vshrl.u32 %v3012_v45, 5  ;;  %v3008_v55 = vor.u32 8388608, %v3007_v11 }
 0x2e0   : > { %v2957_v33 = vadd.s32 536870912, %v2956_v3  ;;  %v3015_v13 = vsub.s32 32, %v3014_v25  ;;  %v3026_v49 = vshll.u32 %v5602_v12, %v3014_v25  ;;  %v3017_v22 = vshll.u32 %v5599_v62, %v3014_v25 }
 0x2e1   : > { %v2872_v43 = vand.u32 2147483647, %v2871_v32  ;;  %v3020_v18 = vshll.u32 %v5600_v5, %v3014_v25  ;;  %v3023_v17 = vshll.u32 %v5601_v7, %v3014_v25  ;;  %v3029_v40 = vshll.u32 %v5603_v21, %v3014_v25 }
 0x2e2   : > { %v2958_v48 = vshrl.u32 %v2957_v33, 30  ;;  %v3018_v60 = vshrl.u32 %v5600_v5, %v3015_v13  ;;  %v3021_v14 = vshrl.u32 %v5601_v7, %v3015_v13  ;;  %v3024_v37 = vshrl.u32 %v5602_v12, %v3015_v13 }
 0x2e3   : > { %v2875_v35 = vmul.f32 %v2874_v52, %v2872_v43  ;;  %v3027_v51 = vshrl.u32 %v5603_v21, %v3015_v13  ;;  %v3030_v6 = vshrl.u32 %v5604_v9, %v3015_v13  ;;  %vm2898_vm12 = vcmp.lt.s32.totalorder %v7130_v16, 0 }
 0x2e4   : > { %v2959_v10 = vshll.u32 %v2958_v48, 30  ;;  %v3019_v0 = vor.u32 %v3018_v60, %v3017_v22  ;;  %v3022_v8 = vor.u32 %v3021_v14, %v3020_v18  ;;  %v3025_v4 = vor.u32 %v3024_v37, %v3023_v17  ;;  %v7371_v37 = vpop.f32.mrb[22].mxu0  ;;  %v7380_v18 = vpop.f32.mrb[22].mxu1 }
 0x2e5   : > { %v2876_v28 = vxor.u32 2147483648, %v2875_v35  ;;  %v3028_v46 = vor.u32 %v3027_v51, %v3026_v49  ;;  %v3031_v26 = vor.u32 %v3030_v6, %v3029_v40  ;;  %v3104_v24 = vand.u32 2147483647, %v7138_v29 }
 0x2e6   : > { %v7340_v27 = vsub.s32 %v2956_v3, %v2959_v10  ;;  %v3107_v45 = vand.u32 2139095040, %v7138_v29  ;;  %v3016_v38 = vshrl.u32 %v5599_v62, %v3015_v13  ;;  %vm3035_vm10 = vcmp.lt.s32.totalorder %v7327_v59, 4 }
 0x2e7   : > { %v2877_v42 = vsel %vm2794_vm11, %v2876_v28, %v2875_v35  ;;  %vm7354_vm13 = vcmp.le.f32.partialorder %v2896_v19, 0.7853982  ;;  %vm3032_vm11 = vcmp.lt.s32.totalorder %v7327_v59, 1  ;;  %vm3034_vm15 = vcmp.lt.s32.totalorder %v7327_v59, 3 }
 0x2e8   : > { %v2880_v56 = vsel %vm7252_vm14, %v6908_v30, %v2877_v42  ;;  %v2962_v47 = vsub.s32 0, %v7340_v27  ;;  %v3041_v57 = vsel %vm3035_vm10, %v3028_v46, 920167782  ;;  %v3037_v3 = vsel %vm3035_vm10, %v3025_v4, 2102212464 }
 0x2e9   : > { %5442 = vcosq.f32 %v2880_v56  ;;  %v3040_v25 = vsel %vm3032_vm11, %v3019_v0, %v3022_v8  ;;  %v2982_v32 = vsub.s32 4, %v2958_v48  ;;  %v3042_v33 = vsel %vm3034_vm15, %v3025_v4, %v3041_v57 }
 0x2ea   : > { %5444 = vsinq.f32 %v2880_v56  ;;  %v4960_v44 = vmin.u32 %v2962_v47, %v7340_v27  ;;  %v3044_v11 = vsel %vm3032_vm11, %v3022_v8, %v3025_v4  ;;  %v3045_v13 = vsel %vm3035_vm10, %v3031_v26, 1326507024 }
 0x2eb   : > { %vm3033_vm14 = vcmp.lt.s32.totalorder %v7327_v59, 2  ;;  %v3036_v43 = vsel %vm3032_vm11, %v3016_v38, %v3019_v0  ;;  %v3048_v52 = vshll.u32 %v3008_v55, 8  ;;  %vm2891_vm1 = vcmp.eq.s32.totalorder %v7325_v1, 2 }
 0x2ec   : > { %v2964_v19 = vclz %v4960_v44  ;;  %v3038_v60 = vsel %vm3034_vm15, %v3022_v8, %v3037_v3  ;;  %v3043_v14 = vsel %vm3033_vm14, %v3040_v25, %v3042_v33  ;;  %v3046_v49 = vsel %vm3034_vm15, %v3028_v46, %v3045_v13 }
 0x2ed   : > { %v3108_v35 = vshrl.u32 %v3107_v45, 23  ;;  %vm2888_vm0 = vcmp.eq.s32.totalorder %v7325_v1, 0  ;;  %v3047_v6 = vsel %vm3033_vm14, %v3044_v11, %v3046_v49  ;;  %v2983_v17 = vsel %vm2898_vm12, %v2982_v32, %v2958_v48 }
 0x2ee   : > { %v4961_v51 = vadd.s32 4294967294, %v2964_v19  ;;  %v7376_v10 = vmul.u32.u64.low %v3048_v52, %v3043_v14  ;;  %v7377_v22 = vmul.u32.u64.high %v3048_v52, %v3043_v14, %v7376_v10  ;;  %v3039_v40 = vsel %vm3033_vm14, %v3036_v43, %v3038_v60 }
 0x2ef   : > { %v7384_v28 = vmul.u32.u64.low %v3048_v52, %v3047_v6  ;;  %v7385_v55 = vmul.u32.u64.high %v3048_v52, %v3047_v6, %v7384_v28  ;;  %v4967_v46 = vadd.s32 4294967169, %v3108_v35  ;;  %v7391_v0 = vadd.f32 %v6964_v31, %v6966_v58 }
 0x2f0   : > { %vm4962_vm2 = vcmp.lt.s32.totalorder %v4961_v51, 0  ;;  %v7395_v8 = vadd.f32 %v7057_v15, %v7064_v63  ;;  %v2952_v4 = vadd.s32 %v7291_v34, %v7301_v54  ;;  %v7401_v26 = vadd.f32 %v7151_v20, %v7154_v53 }
 0x2f1   : > { %v2967_v48 = vsel %vm4962_vm2, 0, %v4961_v51  ;;  %v3114_v42 = vadd.s32 1, %v4967_v46  ;;  %v2985_v56 = vsel %vm7354_vm13, 0, %v2983_v17  ;;  %v3058_v31 = vadd.s32 1, %v7377_v22 }
 0x2f2   : > { %v2968_v45 = vsub.s32 32, %v2967_v48  ;;  %v2972_v59 = vsub.s32 4294967266, %v2967_v48  ;;  %v2969_v15 = vshll.u32 %v7340_v27, %v2967_v48  ;;  %v3055_v63 = vmul.u32 %v3048_v52, %v3039_v40 }
 0x2f3   : > { %v5443_v58 = vpop.eup %5442  ;;  %vm3057_vm3 = vc.u32 %v7385_v55, %v7376_v10  ;;  %vm3115_vm4 = vcmp.gt.s32.totalorder %v3114_v42, 0  ;;  %v3111_v44 = vand.u32 8388607, %v3104_v24  ;;  %v2989_v33 = vadd.s32 3, %v2985_v56 }
 0x2f4   : > { %v5445_v34 = vpop.eup %5444  ;;  %v2892_v54 = vxor.u32 2147483648, %v5443_v58  ;;  %v2970_v47 = vshrl.u32 %v2952_v4, %v2968_v45  ;;  %v2973_v20 = vadd.s32 127, %v2972_v59  ;;  %v3059_v53 = vsel %vm3057_vm3, %v3058_v31, %v7377_v22 }
 0x2f5   : > { %v2889_v38 = vxor.u32 2147483648, %v5445_v34  ;;  %v3060_v57 = vadd.s32 %v3059_v53, %v3055_v63  ;;  %v3116_v3 = vsel %vm3115_vm4, %v3114_v42, 0  ;;  %vm2887_vm5 = vcmp.lt.s32.totalorder %v7325_v1, 2 }
 0x2f6   : > { %v2893_v27 = vsel %vm2891_vm1, %v2892_v54, %v5445_v34  ;;  %v2971_v25 = vor.u32 %v2970_v47, %v2969_v15  ;;  %v2974_v32 = vshll.u32 %v2973_v20, 23  ;;  %v3118_v19 = vand.u32 31, %v3116_v3 }
 0x2f7   : > { %v2890_v11 = vsel %vm2888_vm0, %v5443_v58, %v2889_v38  ;;  %v3061_v13 = vadd.s32 536870912, %v3060_v57  ;;  %vm2884_vm6 = vweird.f32 %v6908_v30  ;;  %vm3002_vm7 = vcmp.lt.s32.totalorder %v7134_v23, 0 }
 0x2f8   : > { %v2894_v43 = vsel %vm2887_vm5, %v2890_v11, %v2893_v27  ;;  %v2975_v52 = vor.u32 4788187, %v2974_v32  ;;  %v3119_v49 = vsub.s32 32, %v3118_v19  ;;  %v2978_v51 = vcvt.s32.f32 %v2971_v25 }
 0x2f9   : > { %v2895_v60 = vsel %vm2884_vm6, nan, %v2894_v43  ;;  %v3062_v14 = vshrl.u32 %v3061_v13, 30  ;;  %v7420_v6 = vand.u32 3, %v2989_v33  ;;  %v3112_v22 = vor.u32 8388608, %v3111_v44 }
 0x2fa   : > { %4781 = vst [vmem:[%s6348_s26 + $0x68] sm:$0xff] %v2895_v60  ;;  %v2976_v35 = vand.u32 2147483647, %v2975_v52  ;;  %v3117_v1 = vshrl.u32 %v3116_v3, 5  ;;  %v3121_v28 = vshll.u32 %v5599_v62, %v3118_v19  ;;  %v3122_v46 = vshrl.u32 %v5600_v5, %v3119_v49 }
 0x2fb   : > { %v3063_v17 = vshll.u32 %v3062_v14, 30  ;;  %v3125_v40 = vshrl.u32 %v5601_v7, %v3119_v49  ;;  %v3128_v4 = vshrl.u32 %v5602_v12, %v3119_v49  ;;  %v3131_v48 = vshrl.u32 %v5603_v21, %v3119_v49 }
 0x2fc   : > { %v2979_v30 = vmul.f32 %v2978_v51, %v2976_v35  ;;  %v3124_v45 = vshll.u32 %v5600_v5, %v3118_v19  ;;  %v3127_v59 = vshll.u32 %v5601_v7, %v3118_v19  ;;  %v3130_v56 = vshll.u32 %v5602_v12, %v3118_v19 }
 0x2fd   : > { %v7427_v42 = vsub.s32 %v3060_v57, %v3063_v17  ;;  %v3086_v58 = vsub.s32 4, %v3062_v14  ;;  %v3123_v15 = vor.u32 %v3122_v46, %v3121_v28  ;;  %v3133_v63 = vshll.u32 %v5603_v21, %v3118_v19 }
 0x2fe   : > { %v2980_v31 = vxor.u32 2147483648, %v2979_v30  ;;  %v3126_v54 = vor.u32 %v3125_v40, %v3124_v45  ;;  %v3129_v47 = vor.u32 %v3128_v4, %v3127_v59  ;;  %v3134_v20 = vshrl.u32 %v5604_v9, %v3119_v49 }
 0x2ff   : > { %v3066_v34 = vsub.s32 0, %v7427_v42  ;;  %v3132_v38 = vor.u32 %v3131_v48, %v3130_v56  ;;  %v3152_v57 = vshll.u32 %v3112_v22, 8  ;;  %v3208_v44 = vand.u32 2147483647, %v7391_v0 }
 0x300   : > { %v2981_v53 = vsel %vm2898_vm12, %v2980_v31, %v2979_v30  ;;  %vm7443_vm8 = vcmp.le.f32.partialorder %v3000_v50, 0.7853982  ;;  %v3135_v32 = vor.u32 %v3134_v20, %v3133_v63  ;;  %vm3136_vm9 = vcmp.lt.s32.totalorder %v3117_v1, 1 }
 0x301   : > { %v2984_v3 = vsel %vm7354_vm13, %v7130_v16, %v2981_v53  ;;  %v4964_v25 = vmin.u32 %v3066_v34, %v7427_v42  ;;  %v3087_v33 = vsel %vm3002_vm7, %v3086_v58, %v3062_v14  ;;  %v3120_v11 = vshrl.u32 %v5599_v62, %v3119_v49  ;;  %v7468_v34 = vpop.f32.mrb[23].mxu0 }
 0x302   : > { %5446 = vcosq.f32 %v2984_v3  ;;  %vm3139_vm12 = vcmp.lt.s32.totalorder %v3117_v1, 4  ;;  %v3144_v19 = vsel %vm3136_vm9, %v3123_v15, %v3126_v54  ;;  %vm3137_vm10 = vcmp.lt.s32.totalorder %v3117_v1, 2 }
 0x303   : > { %5448 = vsinq.f32 %v2984_v3  ;;  %v3068_v39 = vclz %v4964_v25  ;;  %v3141_v13 = vsel %vm3139_vm12, %v3129_v47, 2102212464  ;;  %vm3138_vm13 = vcmp.lt.s32.totalorder %v3117_v1, 3 }
 0x304   : > { %v3145_v50 = vsel %vm3139_vm12, %v3132_v38, 920167782  ;;  %v3148_v43 = vsel %vm3136_vm9, %v3126_v54, %v3129_v47  ;;  %v3140_v60 = vsel %vm3136_vm9, %v3120_v11, %v3123_v15  ;;  %v3149_v51 = vsel %vm3139_vm12, %v3135_v32, 1326507024 }
 0x305   : > { %v4965_v52 = vadd.s32 4294967294, %v3068_v39  ;;  %v3146_v35 = vsel %vm3138_vm13, %v3129_v47, %v3145_v50  ;;  %v3142_v22 = vsel %vm3138_vm13, %v3126_v54, %v3141_v13  ;;  %v3150_v28 = vsel %vm3138_vm13, %v3132_v38, %v3149_v51 }
 0x306   : > { %v3147_v17 = vsel %vm3137_vm10, %v3144_v19, %v3146_v35  ;;  %v3211_v14 = vand.u32 2139095040, %v7391_v0  ;;  %v3151_v49 = vsel %vm3137_vm10, %v3148_v43, %v3150_v28  ;;  %v3056_v59 = vadd.s32 %v7376_v10, %v7385_v55  ;;  %v7472_v55 = vpop.f32.mrb[23].mxu1 }
 0x307   : > { %vm4966_vm11 = vcmp.lt.s32.totalorder %v4965_v52, 0  ;;  %v7454_v46 = vmul.u32.u64.low %v3152_v57, %v3147_v17  ;;  %v7455_v30 = vmul.u32.u64.high %v3152_v57, %v3147_v17, %v7454_v46  ;;  %v3143_v58 = vsel %vm3137_vm10, %v3140_v60, %v3142_v22 }
 0x308   : > { %v3071_v40 = vsel %vm4966_vm11, 0, %v4965_v52  ;;  %v7458_v4 = vmul.u32.u64.low %v3152_v57, %v3151_v49  ;;  %v7459_v48 = vmul.u32.u64.high %v3152_v57, %v3151_v49, %v7458_v4  ;;  %v3212_v45 = vshrl.u32 %v3211_v14, 23 }
 0x309   : > { %v3072_v56 = vsub.s32 32, %v3071_v40  ;;  %v3076_v31 = vsub.s32 4294967266, %v3071_v40  ;;  %vm2991_vm15 = vcmp.lt.s32.totalorder %v7420_v6, 2  ;;  %vm2992_vm14 = vcmp.eq.s32.totalorder %v7420_v6, 0 }
 0x30a   : > { %v3089_v15 = vsel %vm7443_vm8, 0, %v3087_v33  ;;  %v4971_v63 = vadd.s32 4294967169, %v3212_v45  ;;  %v3073_v54 = vshll.u32 %v7427_v42, %v3071_v40  ;;  %v3162_v10 = vadd.s32 1, %v7455_v30 }
 0x30b   : > { %v3074_v47 = vshrl.u32 %v3056_v59, %v3072_v56  ;;  %v3077_v20 = vadd.s32 127, %v3076_v31  ;;  %v3159_v53 = vmul.u32 %v3152_v57, %v3143_v58  ;;  %vm3161_vm1 = vc.u32 %v7459_v48, %v7454_v46 }
 0x30c   : > { %v5447_v1 = vpop.eup %5446  ;;  %v3215_v38 = vand.u32 8388607, %v3208_v44  ;;  %v3218_v3 = vadd.s32 1, %v4971_v63  ;;  %v3163_v42 = vsel %vm3161_vm1, %v3162_v10, %v7455_v30  ;;  %vm2995_vm0 = vcmp.eq.s32.totalorder %v7420_v6, 2 }
 0x30d   : > { %v5449_v25 = vpop.eup %5448  ;;  %v2996_v32 = vxor.u32 2147483648, %v5447_v1  ;;  %v3075_v33 = vor.u32 %v3074_v47, %v3073_v54  ;;  %v3078_v11 = vshll.u32 %v3077_v20, 23  ;;  %v3164_v13 = vadd.s32 %v3163_v42, %v3159_v53 }
 0x30e   : > { %v2993_v39 = vxor.u32 2147483648, %v5449_v25  ;;  %vm3219_vm2 = vcmp.gt.s32.totalorder %v3218_v3, 0  ;;  %v3093_v50 = vadd.s32 3, %v3089_v15  ;;  %v3216_v35 = vor.u32 8388608, %v3215_v38 }
 0x30f   : > { %v2997_v57 = vsel %vm2995_vm0, %v2996_v32, %v5449_v25  ;;  %v3079_v19 = vor.u32 4788187, %v3078_v11  ;;  %v3220_v43 = vsel %vm3219_vm2, %v3218_v3, 0  ;;  %v3165_v60 = vadd.s32 536870912, %v3164_v13 }
 0x310   : > { %v2994_v52 = vsel %vm2992_vm14, %v5447_v1, %v2993_v39  ;;  %v3222_v51 = vand.u32 31, %v3220_v43  ;;  %vm2988_vm3 = vweird.f32 %v7130_v16  ;;  %v3082_v28 = vcvt.s32.f32 %v3075_v33 }
 0x311   : > { %v2998_v22 = vsel %vm2991_vm15, %v2994_v52, %v2997_v57  ;;  %v3080_v17 = vand.u32 2147483647, %v3079_v19  ;;  %v3166_v49 = vshrl.u32 %v3165_v60, 30  ;;  %v7486_v4 = vand.u32 3, %v3093_v50 }
 0x312   : > { %v2999_v14 = vsel %vm2988_vm3, nan, %v2998_v22  ;;  %v3223_v30 = vsub.s32 32, %v3222_v51  ;;  %v3225_v59 = vshll.u32 %v5599_v62, %v3222_v51  ;;  %v7490_v31 = vshll.u32 %v3216_v35, 8 }
 0x313   : > { %4782 = vst [vmem:[%s6348_s26 + $0x70] sm:$0xff] %v2999_v14  ;;  %v3083_v40 = vmul.f32 %v3082_v28, %v3080_v17  ;;  %v3167_v45 = vshll.u32 %v3166_v49, 30  ;;  %vm3106_vm4 = vcmp.lt.s32.totalorder %v7138_v29, 0  ;;  %v3221_v54 = vshrl.u32 %v3220_v43, 5 }
 0x314   : > { %v3226_v56 = vshrl.u32 %v5600_v5, %v3223_v30  ;;  %v3229_v6 = vshrl.u32 %v5601_v7, %v3223_v30  ;;  %v3232_v58 = vshrl.u32 %v5602_v12, %v3223_v30  ;;  %v3235_v15 = vshrl.u32 %v5603_v21, %v3223_v30 }
 0x315   : > { %v3084_v16 = vxor.u32 2147483648, %v3083_v40  ;;  %v7496_v63 = vsub.s32 %v3164_v13, %v3167_v45  ;;  %v3228_v47 = vshll.u32 %v5600_v5, %v3222_v51  ;;  %v3315_v20 = vand.u32 2139095040, %v7395_v8  ;;  %v7519_v45 = vpop.f32.mrb[24].mxu0 }
 0x316   : > { %v3227_v1 = vor.u32 %v3226_v56, %v3225_v59  ;;  %v3231_v53 = vshll.u32 %v5601_v7, %v3222_v51  ;;  %v3234_v38 = vshll.u32 %v5602_v12, %v3222_v51  ;;  %v3237_v33 = vshll.u32 %v5603_v21, %v3222_v51 }
 0x317   : > { %v3085_v10 = vsel %vm3002_vm7, %v3084_v16, %v3083_v40  ;;  %v3170_v25 = vsub.s32 0, %v7496_v63  ;;  %v3230_v32 = vor.u32 %v3229_v6, %v3228_v47  ;;  %v3238_v39 = vshrl.u32 %v5604_v9, %v3223_v30 }
 0x318   : > { %v3088_v3 = vsel %vm7443_vm8, %v7134_v23, %v3085_v10  ;;  %v3233_v11 = vor.u32 %v3232_v58, %v3231_v53  ;;  %v3236_v42 = vor.u32 %v3235_v15, %v3234_v38  ;;  %vm7512_vm5 = vcmp.le.f32.partialorder %v3104_v24, 0.7853982 }
 0x319   : > { %5450 = vcosq.f32 %v3088_v3  ;;  %v4968_v27 = vmin.u32 %v3170_v25, %v7496_v63  ;;  %v3190_v57 = vsub.s32 4, %v3166_v49  ;;  %v3224_v19 = vshrl.u32 %v5599_v62, %v3223_v30  ;;  %v7521_v30 = vpop.f32.mrb[24].mxu1 }
 0x31a   : > { %5452 = vsinq.f32 %v3088_v3  ;;  %v3239_v50 = vor.u32 %v3238_v39, %v3237_v33  ;;  %vm3240_vm6 = vcmp.lt.s32.totalorder %v3221_v54, 1  ;;  %vm3241_vm7 = vcmp.lt.s32.totalorder %v3221_v54, 2 }
 0x31b   : > { %vm3242_vm8 = vcmp.lt.s32.totalorder %v3221_v54, 3  ;;  %v3172_v43 = vclz %v4968_v27  ;;  %vm3243_vm9 = vcmp.lt.s32.totalorder %v3221_v54, 4  ;;  %v3244_v52 = vsel %vm3240_vm6, %v3224_v19, %v3227_v1 }
 0x31c   : > { %v3248_v60 = vsel %vm3240_vm6, %v3227_v1, %v3230_v32  ;;  %v3245_v35 = vsel %vm3243_vm9, %v3233_v11, 2102212464  ;;  %v3249_v51 = vsel %vm3243_vm9, %v3236_v42, 920167782  ;;  %v3252_v22 = vsel %vm3240_vm6, %v3230_v32, %v3233_v11 }
 0x31d   : > { %v3253_v24 = vsel %vm3243_vm9, %v3239_v50, 1326507024  ;;  %vm3096_vm12 = vcmp.eq.s32.totalorder %v7486_v4, 0  ;;  %v4969_v17 = vadd.s32 4294967294, %v3172_v43  ;;  %v3246_v28 = vsel %vm3242_vm8, %v3230_v32, %v3245_v35 }
 0x31e   : > { %v3250_v14 = vsel %vm3242_vm8, %v3233_v11, %v3249_v51  ;;  %v3254_v40 = vsel %vm3242_vm8, %v3236_v42, %v3253_v24  ;;  %vm3095_vm10 = vcmp.lt.s32.totalorder %v7486_v4, 2  ;;  %v3191_v59 = vsel %vm3106_vm4, %v3190_v57, %v3166_v49 }
 0x31f   : > { %v3251_v56 = vsel %vm3241_vm7, %v3248_v60, %v3250_v14  ;;  %v3255_v16 = vsel %vm3241_vm7, %v3252_v22, %v3254_v40  ;;  %v3316_v6 = vshrl.u32 %v3315_v20, 23  ;;  %vm4970_vm13 = vcmp.lt.s32.totalorder %v4969_v17, 0 }
 0x320   : > { %v3247_v58 = vsel %vm3241_vm7, %v3244_v52, %v3246_v28  ;;  %v7530_v15 = vmul.u32.u64.low %v7490_v31, %v3255_v16  ;;  %v7531_v47 = vmul.u32.u64.high %v7490_v31, %v3255_v16, %v7530_v15  ;;  %v3175_v10 = vsel %vm4970_vm13, 0, %v4969_v17 }
 0x321   : > { %v7534_v1 = vmul.u32.u64.low %v7490_v31, %v3251_v56  ;;  %v7535_v53 = vmul.u32.u64.high %v7490_v31, %v3251_v56, %v7534_v1  ;;  %v4975_v38 = vadd.s32 4294967169, %v3316_v6  ;;  %vm3099_vm11 = vcmp.eq.s32.totalorder %v7486_v4, 2 }
 0x322   : > { %v3160_v49 = vadd.s32 %v7454_v46, %v7459_v48  ;;  %v3176_v20 = vsub.s32 32, %v3175_v10  ;;  %v3180_v3 = vsub.s32 4294967266, %v3175_v10  ;;  %v3193_v25 = vsel %vm7512_vm5, 0, %v3191_v59 }
 0x323   : > { %v5451_v54 = vpop.eup %5450  ;;  %v3263_v32 = vmul.u32 %v7490_v31, %v3247_v58  ;;  %v3312_v33 = vand.u32 2147483647, %v7395_v8  ;;  %v3322_v11 = vadd.s32 1, %v4975_v38  ;;  %v3177_v27 = vshll.u32 %v7496_v63, %v3175_v10 }
 0x324   : > { %v5453_v42 = vpop.eup %5452  ;;  %v3100_v39 = vxor.u32 2147483648, %v5451_v54  ;;  %v3178_v57 = vshrl.u32 %v3160_v49, %v3176_v20  ;;  %v3181_v19 = vadd.s32 127, %v3180_v3  ;;  %vm3265_vm15 = vc.u32 %v7531_v47, %v7534_v1 }
 0x325   : > { %v3097_v50 = vxor.u32 2147483648, %v5453_v42  ;;  %v3266_v46 = vadd.s32 1, %v7535_v53  ;;  %vm3323_vm14 = vcmp.gt.s32.totalorder %v3322_v11, 0  ;;  %v3197_v63 = vadd.s32 3, %v3193_v25 }
 0x326   : > { %v3101_v48 = vsel %vm3099_vm11, %v3100_v39, %v5453_v42  ;;  %v3179_v31 = vor.u32 %v3178_v57, %v3177_v27  ;;  %v3182_v43 = vshll.u32 %v3181_v19, 23  ;;  %v3324_v52 = vsel %vm3323_vm14, %v3322_v11, 0 }
 0x327   : > { %v3098_v60 = vsel %vm3096_vm12, %v5451_v54, %v3097_v50  ;;  %v3267_v35 = vsel %vm3265_vm15, %v3266_v46, %v7535_v53  ;;  %v3326_v51 = vand.u32 31, %v3324_v52  ;;  %vm3092_vm1 = vweird.f32 %v7134_v23 }
 0x328   : > { %v3102_v22 = vsel %vm3095_vm10, %v3098_v60, %v3101_v48  ;;  %v3183_v24 = vor.u32 4788187, %v3182_v43  ;;  %v3268_v17 = vadd.s32 %v3267_v35, %v3263_v32  ;;  %v3186_v59 = vcvt.s32.f32 %v3179_v31 }
 0x329   : > { %v3103_v28 = vsel %vm3092_vm1, nan, %v3102_v22  ;;  %v3327_v14 = vsub.s32 32, %v3326_v51  ;;  %v7558_v16 = vand.u32 3, %v3197_v63  ;;  %v3319_v6 = vand.u32 8388607, %v3312_v33 }
 0x32a   : > { %4783 = vst [vmem:[%s6348_s26 + $0x78] sm:$0xff] %v3103_v28  ;;  %v3184_v40 = vand.u32 2147483647, %v3183_v24  ;;  %v3269_v56 = vadd.s32 536870912, %v3268_v17  ;;  %v3329_v38 = vshll.u32 %v5599_v62, %v3326_v51  ;;  %v3332_v49 = vshll.u32 %v5600_v5, %v3326_v51 }
 0x32b   : > { %v3330_v58 = vshrl.u32 %v5600_v5, %v3327_v14  ;;  %v3333_v23 = vshrl.u32 %v5601_v7, %v3327_v14  ;;  %v3336_v10 = vshrl.u32 %v5602_v12, %v3327_v14  ;;  %v3339_v53 = vshrl.u32 %v5603_v21, %v3327_v14 }
 0x32c   : > { %v3187_v15 = vmul.f32 %v3186_v59, %v3184_v40  ;;  %v3270_v4 = vshrl.u32 %v3269_v56, 30  ;;  %v3338_v20 = vshll.u32 %v5602_v12, %v3326_v51  ;;  %v3342_v3 = vshrl.u32 %v5604_v9, %v3327_v14 }
 0x32d   : > { %v3325_v32 = vshrl.u32 %v3324_v52, 5  ;;  %v3335_v11 = vshll.u32 %v5601_v7, %v3326_v51  ;;  %v3331_v42 = vor.u32 %v3330_v58, %v3329_v38  ;;  %v3334_v39 = vor.u32 %v3333_v23, %v3332_v49 }
 0x32e   : > { %v3188_v54 = vxor.u32 2147483648, %v3187_v15  ;;  %v3271_v25 = vshll.u32 %v3270_v4, 30  ;;  %v3340_v27 = vor.u32 %v3339_v53, %v3338_v20  ;;  %v3341_v57 = vshll.u32 %v5603_v21, %v3326_v51 }
 0x32f   : > { %v3320_v46 = vor.u32 8388608, %v3319_v6  ;;  %v3337_v48 = vor.u32 %v3336_v10, %v3335_v11  ;;  %v3294_v43 = vsub.s32 4, %v3270_v4  ;;  %v3328_v52 = vshrl.u32 %v5599_v62, %v3327_v14 }
 0x330   : > { %v3189_v19 = vsel %vm3106_vm4, %v3188_v54, %v3187_v15  ;;  %v7574_v50 = vsub.s32 %v3268_v17, %v3271_v25  ;;  %v3343_v60 = vor.u32 %v3342_v3, %v3341_v57  ;;  %vm3344_vm0 = vcmp.lt.s32.totalorder %v3325_v32, 1 }
 0x331   : > { %v3192_v31 = vsel %vm7512_vm5, %v7138_v29, %v3189_v19  ;;  %vm3347_vm2 = vcmp.lt.s32.totalorder %v3325_v32, 4  ;;  %vm3346_vm3 = vcmp.lt.s32.totalorder %v3325_v32, 3  ;;  %v3352_v35 = vsel %vm3344_vm0, %v3331_v42, %v3334_v39 }
 0x332   : > { %5454 = vcosq.f32 %v3192_v31  ;;  %v3274_v63 = vsub.s32 0, %v7574_v50  ;;  %v3353_v51 = vsel %vm3347_vm2, %v3340_v27, 920167782  ;;  %vm3345_vm4 = vcmp.lt.s32.totalorder %v3325_v32, 2 }
 0x333   : > { %5456 = vsinq.f32 %v3192_v31  ;;  %v3349_v24 = vsel %vm3347_vm2, %v3337_v48, 2102212464  ;;  %v3354_v13 = vsel %vm3346_vm3, %v3337_v48, %v3353_v51  ;;  %v3356_v28 = vsel %vm3344_vm0, %v3334_v39, %v3337_v48 }
 0x334   : > { %v4972_v22 = vmin.u32 %v3274_v63, %v7574_v50  ;;  %v3355_v17 = vsel %vm3345_vm4, %v3352_v35, %v3354_v13  ;;  %v3357_v14 = vsel %vm3347_vm2, %v3343_v60, 1326507024  ;;  %v3360_v40 = vshll.u32 %v3320_v46, 8 }
 0x335   : > { %vm7588_vm5 = vcmp.le.f32.partialorder %v3208_v44, 0.7853982  ;;  %vm3210_vm6 = vcmp.lt.s32.totalorder %v7391_v0, 0  ;;  %v3348_v6 = vsel %vm3344_vm0, %v3328_v52, %v3331_v42  ;;  %v3350_v58 = vsel %vm3346_vm3, %v3334_v39, %v3349_v24  ;;  %v7617_v39 = vpop.f32.mrb[25].mxu0 }
 0x336   : > { %v3276_v56 = vclz %v4972_v22  ;;  %v3358_v23 = vsel %vm3346_vm3, %v3340_v27, %v3357_v14  ;;  %v7596_v15 = vmul.u32.u64.low %v3360_v40, %v3355_v17  ;;  %v7597_v10 = vmul.u32.u64.high %v3360_v40, %v3355_v17, %v7596_v15 }
 0x337   : > { %vm3203_vm7 = vcmp.eq.s32.totalorder %v7558_v16, 2  ;;  %v3359_v44 = vsel %vm3345_vm4, %v3356_v28, %v3358_v23  ;;  %v3419_v38 = vand.u32 2139095040, %v7401_v26  ;;  %vm3196_vm8 = vweird.f32 %v7138_v29 }
 0x338   : > { %v4973_v53 = vadd.s32 4294967294, %v3276_v56  ;;  %v3295_v49 = vsel %vm3210_vm6, %v3294_v43, %v3270_v4  ;;  %v7605_v20 = vmul.u32.u64.low %v3360_v40, %v3359_v44  ;;  %v7606_v3 = vmul.u32.u64.high %v3360_v40, %v3359_v44, %v7605_v20 }
 0x339   : > { %v7610_v54 = vadd.f32 %v7212_v41, %v7214_v36  ;;  %v3351_v25 = vsel %vm3345_vm4, %v3348_v6, %v3350_v58  ;;  %v3420_v11 = vshrl.u32 %v3419_v38, 23  ;;  %v7615_v42 = vadd.f32 %v7286_v2, %v7295_v61  ;;  %v7623_v41 = vpop.f32.mrb[25].mxu1 }
 0x33a   : > { %vm4974_vm9 = vcmp.lt.s32.totalorder %v4973_v53, 0  ;;  %v3264_v4 = vadd.s32 %v7534_v1, %v7531_v47  ;;  %v3370_v57 = vadd.s32 1, %v7597_v10  ;;  %v3416_v19 = vand.u32 2147483647, %v7401_v26 }
 0x33b   : > { %v3279_v27 = vsel %vm4974_vm9, 0, %v4973_v53  ;;  %v3297_v48 = vsel %vm7588_vm5, 0, %v3295_v49  ;;  %v4979_v2 = vadd.s32 4294967169, %v3420_v11  ;;  %v3367_v52 = vmul.u32 %v3360_v40, %v3351_v25 }
 0x33c   : > { %v5455_v36 = vpop.eup %5454  ;;  %v3280_v32 = vsub.s32 32, %v3279_v27  ;;  %v3284_v46 = vsub.s32 4294967266, %v3279_v27  ;;  %v3281_v43 = vshll.u32 %v7574_v50, %v3279_v27  ;;  %vm3369_vm12 = vc.u32 %v7606_v3, %v7596_v15 }
 0x33d   : > { %v5457_v61 = vpop.eup %5456  ;;  %v3204_v31 = vxor.u32 2147483648, %v5455_v36  ;;  %v3371_v63 = vsel %vm3369_vm12, %v3370_v57, %v7597_v10  ;;  %vm3200_vm10 = vcmp.eq.s32.totalorder %v7558_v16, 0  ;;  %v3426_v22 = vadd.s32 1, %v4979_v2 }
 0x33e   : > { %v3201_v47 = vxor.u32 2147483648, %v5457_v61  ;;  %v3282_v1 = vshrl.u32 %v3264_v4, %v3280_v32  ;;  %v3285_v60 = vadd.s32 127, %v3284_v46  ;;  %v3372_v51 = vadd.s32 %v3371_v63, %v3367_v52 }
 0x33f   : > { %v3205_v35 = vsel %vm3203_vm7, %v3204_v31, %v5457_v61  ;;  %vm3199_vm13 = vcmp.lt.s32.totalorder %v7558_v16, 2  ;;  %v3301_v28 = vadd.s32 3, %v3297_v48  ;;  %vm3427_vm11 = vcmp.gt.s32.totalorder %v3426_v22, 0 }
 0x340   : > { %v3202_v24 = vsel %vm3200_vm10, %v5455_v36, %v3201_v47  ;;  %v3283_v50 = vor.u32 %v3282_v1, %v3281_v43  ;;  %v3286_v13 = vshll.u32 %v3285_v60, 23  ;;  %v3373_v14 = vadd.s32 536870912, %v3372_v51 }
 0x341   : > { %v3206_v17 = vsel %vm3199_vm13, %v3202_v24, %v3205_v35  ;;  %v3423_v6 = vand.u32 8388607, %v3416_v19  ;;  %v3428_v58 = vsel %vm3427_vm11, %v3426_v22, 0  ;;  %vm3314_vm15 = vcmp.lt.s32.totalorder %v7395_v8, 0 }
 0x342   : > { %v3207_v40 = vsel %vm3196_vm8, nan, %v3206_v17  ;;  %v3287_v56 = vor.u32 4788187, %v3286_v13  ;;  %v3374_v23 = vshrl.u32 %v3373_v14, 30  ;;  %v3430_v10 = vand.u32 31, %v3428_v58 }
 0x343   : > { %4784 = vst [vmem:[%s6348_s26 + $0x80] sm:$0xff] %v3207_v40  ;;  %v3290_v16 = vcvt.s32.f32 %v3283_v50  ;;  %v7640_v20 = vand.u32 3, %v3301_v28  ;;  %v3368_v29 = vadd.s32 %v7596_v15, %v7606_v3  ;;  %v3424_v25 = vor.u32 8388608, %v3423_v6 }
 0x344   : > { %v3288_v53 = vand.u32 2147483647, %v3287_v56  ;;  %v3375_v44 = vshll.u32 %v3374_v23, 30  ;;  %v3431_v38 = vsub.s32 32, %v3430_v10  ;;  %v7645_v4 = vshrl.u32 %v3428_v58, 5 }
 0x345   : > { %v3523_v57 = vand.u32 2139095040, %v7610_v54  ;;  %v3433_v32 = vshll.u32 %v5599_v62, %v3430_v10  ;;  %v3436_v15 = vshll.u32 %v5600_v5, %v3430_v10  ;;  %v3439_v3 = vshll.u32 %v5601_v7, %v3430_v10 }
 0x346   : > { %v3291_v49 = vmul.f32 %v3290_v16, %v3288_v53  ;;  %v7643_v11 = vsub.s32 %v3372_v51, %v3375_v44  ;;  %v3434_v27 = vshrl.u32 %v5600_v5, %v3431_v38  ;;  %v3437_v46 = vshrl.u32 %v5601_v7, %v3431_v38  ;;  %v7690_v44 = vpop.f32.mrb[26].mxu0 }
 0x347   : > { %v3440_v48 = vshrl.u32 %v5602_v12, %v3431_v38  ;;  %v3443_v61 = vshrl.u32 %v5603_v21, %v3431_v38  ;;  %v3398_v43 = vsub.s32 4, %v3374_v23  ;;  %v3442_v47 = vshll.u32 %v5602_v12, %v3430_v10 }
 0x348   : > { %v3292_v36 = vxor.u32 2147483648, %v3291_v49  ;;  %v3378_v2 = vsub.s32 0, %v7643_v11  ;;  %v3435_v52 = vor.u32 %v3434_v27, %v3433_v32  ;;  %v3438_v63 = vor.u32 %v3437_v46, %v3436_v15 }
 0x349   : > { %v3441_v35 = vor.u32 %v3440_v48, %v3439_v3  ;;  %v3444_v51 = vor.u32 %v3443_v61, %v3442_v47  ;;  %v3445_v22 = vshll.u32 %v5603_v21, %v3430_v10  ;;  %v3446_v24 = vshrl.u32 %v5604_v9, %v3431_v38 }
 0x34a   : > { %v3293_v31 = vsel %vm3210_vm6, %v3292_v36, %v3291_v49  ;;  %v4976_v60 = vmin.u32 %v3378_v2, %v7643_v11  ;;  %v7665_v13 = vshll.u32 %v3424_v25, 8  ;;  %v3524_v17 = vshrl.u32 %v3523_v57, 23  ;;  %v7698_v57 = vpop.f32.mrb[26].mxu1 }
 0x34b   : > { %v3296_v1 = vsel %vm7588_vm5, %v7391_v0, %v3293_v31  ;;  %v7669_v28 = vsel %vm3314_vm15, %v3398_v43, %v3374_v23  ;;  %v3432_v59 = vshrl.u32 %v5599_v62, %v3431_v38  ;;  %v3447_v14 = vor.u32 %v3446_v24, %v3445_v22 }
 0x34c   : > { %5458 = vcosq.f32 %v3296_v1  ;;  %v3380_v50 = vclz %v4976_v60  ;;  %vm3448_vm14 = vcmp.lt.s32.totalorder %v7645_v4, 1  ;;  %vm7675_vm1 = vcmp.le.f32.partialorder %v3312_v33, 0.7853982 }
 0x34d   : > { %5460 = vsinq.f32 %v3296_v1  ;;  %vm3450_vm0 = vcmp.lt.s32.totalorder %v7645_v4, 3  ;;  %vm3451_vm2 = vcmp.lt.s32.totalorder %v7645_v4, 4  ;;  %v3456_v6 = vsel %vm3448_vm14, %v3435_v52, %v3438_v63 }
 0x34e   : > { %v4977_v56 = vadd.s32 4294967294, %v3380_v50  ;;  %v3453_v58 = vsel %vm3451_vm2, %v3441_v35, 2102212464  ;;  %v3457_v23 = vsel %vm3451_vm2, %v3444_v51, 920167782  ;;  %v3460_v10 = vsel %vm3448_vm14, %v3438_v63, %v3441_v35 }
 0x34f   : > { %v3461_v53 = vsel %vm3451_vm2, %v3447_v14, 1326507024  ;;  %vm3449_vm4 = vcmp.lt.s32.totalorder %v7645_v4, 2  ;;  %v3458_v33 = vsel %vm3450_vm0, %v3441_v35, %v3457_v23  ;;  %v3452_v49 = vsel %vm3448_vm14, %v3432_v59, %v3435_v52 }
 0x350   : > { %vm4978_vm3 = vcmp.lt.s32.totalorder %v4977_v56, 0  ;;  %v3462_v16 = vsel %vm3450_vm0, %v3444_v51, %v3461_v53  ;;  %v3459_v25 = vsel %vm3449_vm4, %v3456_v6, %v3458_v33  ;;  %vm3300_vm5 = vweird.f32 %v7391_v0 }
 0x351   : > { %v3383_v38 = vsel %vm4978_vm3, 0, %v4977_v56  ;;  %v3463_v27 = vsel %vm3449_vm4, %v3460_v10, %v3462_v16  ;;  %v3454_v46 = vsel %vm3450_vm0, %v3438_v63, %v3453_v58  ;;  %v4983_v48 = vadd.s32 4294967169, %v3524_v17 }
 0x352   : > { %v3384_v36 = vsub.s32 32, %v3383_v38  ;;  %v3388_v32 = vsub.s32 4294967266, %v3383_v38  ;;  %v7704_v2 = vmul.u32.u64.low %v7665_v13, %v3463_v27  ;;  %v7705_v15 = vmul.u32.u64.high %v7665_v13, %v3463_v27, %v7704_v2 }
 0x353   : > { %v7708_v3 = vmul.u32.u64.low %v7665_v13, %v3459_v25  ;;  %v7709_v61 = vmul.u32.u64.high %v7665_v13, %v3459_v25, %v7708_v3  ;;  %v3385_v31 = vshll.u32 %v7643_v11, %v3383_v38  ;;  %v3530_v47 = vadd.s32 1, %v4983_v48 }
 0x354   : > { %v3386_v43 = vshrl.u32 %v3368_v29, %v3384_v36  ;;  %v3389_v52 = vadd.s32 127, %v3388_v32  ;;  %vm3304_vm6 = vcmp.eq.s32.totalorder %v7640_v20, 0  ;;  %vm3307_vm7 = vcmp.eq.s32.totalorder %v7640_v20, 2 }
 0x355   : > { %v3455_v60 = vsel %vm3449_vm4, %v3452_v49, %v3454_v46  ;;  %v3520_v63 = vand.u32 2147483647, %v7610_v54  ;;  %vm3531_vm8 = vcmp.gt.s32.totalorder %v3530_v47, 0  ;;  %v3401_v29 = vsel %vm7675_vm1, 0, %v7669_v28 }
 0x356   : > { %v5459_v1 = vpop.eup %5458  ;;  %v3387_v22 = vor.u32 %v3386_v43, %v3385_v31  ;;  %v3390_v24 = vshll.u32 %v3389_v52, 23  ;;  %vm3473_vm9 = vc.u32 %v7705_v15, %v7708_v3  ;;  %v3474_v11 = vadd.s32 1, %v7709_v61 }
 0x357   : > { %v5461_v35 = vpop.eup %5460  ;;  %v3308_v51 = vxor.u32 2147483648, %v5459_v1  ;;  %v3471_v59 = vmul.u32 %v7665_v13, %v3455_v60  ;;  %v3532_v14 = vsel %vm3531_vm8, %v3530_v47, 0  ;;  %vm3303_vm12 = vcmp.lt.s32.totalorder %v7640_v20, 2 }
 0x358   : > { %v3305_v50 = vxor.u32 2147483648, %v5461_v35  ;;  %v3391_v4 = vor.u32 4788187, %v3390_v24  ;;  %v3475_v6 = vsel %vm3473_vm9, %v3474_v11, %v7709_v61  ;;  %v3534_v58 = vand.u32 31, %v3532_v14 }
 0x359   : > { %v3309_v17 = vsel %vm3307_vm7, %v3308_v51, %v5461_v35  ;;  %v3394_v10 = vcvt.s32.f32 %v3387_v22  ;;  %v3476_v53 = vadd.s32 %v3475_v6, %v3471_v59  ;;  %v3405_v16 = vadd.s32 3, %v3401_v29 }
 0x35a   : > { %v3306_v56 = vsel %vm3304_vm6, %v5459_v1, %v3305_v50  ;;  %v3392_v23 = vand.u32 2147483647, %v3391_v4  ;;  %v3527_v13 = vand.u32 8388607, %v3520_v63  ;;  %v3535_v38 = vsub.s32 32, %v3534_v58 }
 0x35b   : > { %v3310_v28 = vsel %vm3303_vm12, %v3306_v56, %v3309_v17  ;;  %v3477_v25 = vadd.s32 536870912, %v3476_v53  ;;  %v7734_v20 = vshrl.u32 %v3532_v14, 5  ;;  %v3627_v27 = vand.u32 2139095040, %v7615_v42 }
 0x35c   : > { %v3311_v33 = vsel %vm3300_vm5, nan, %v3310_v28  ;;  %v3395_v49 = vmul.f32 %v3394_v10, %v3392_v23  ;;  %v3537_v36 = vshll.u32 %v5599_v62, %v3534_v58  ;;  %v3538_v32 = vshrl.u32 %v5600_v5, %v3535_v38 }
 0x35d   : > { %4785 = vst [vmem:[%s6348_s26 + $0x88] sm:$0xff] %v3311_v33  ;;  %v3541_v46 = vshrl.u32 %v5601_v7, %v3535_v38  ;;  %v3544_v0 = vshrl.u32 %v5602_v12, %v3535_v38  ;;  %v7741_v2 = vshrl.u32 %v3477_v25, 30  ;;  %v3540_v61 = vshll.u32 %v5600_v5, %v3534_v58 }
 0x35e   : > { %v3396_v48 = vxor.u32 2147483648, %v3395_v49  ;;  %v3547_v31 = vshrl.u32 %v5603_v21, %v3535_v38  ;;  %v3543_v43 = vshll.u32 %v5601_v7, %v3534_v58  ;;  %v3546_v52 = vshll.u32 %v5602_v12, %v3534_v58 }
 0x35f   : > { %v3549_v47 = vshll.u32 %v5603_v21, %v3534_v58  ;;  %v3550_v1 = vshrl.u32 %v5604_v9, %v3535_v38  ;;  %v3479_v35 = vshll.u32 %v7741_v2, 30  ;;  %v3539_v51 = vor.u32 %v3538_v32, %v3537_v36 }
 0x360   : > { %v3397_v60 = vsel %vm3314_vm15, %v3396_v48, %v3395_v49  ;;  %v3542_v22 = vor.u32 %v3541_v46, %v3540_v61  ;;  %v3545_v50 = vor.u32 %v3544_v0, %v3543_v43  ;;  %v3548_v29 = vor.u32 %v3547_v31, %v3546_v52 }
 0x361   : > { %v3400_v24 = vsel %vm7675_vm1, %v7395_v8, %v3397_v60  ;;  %v3551_v11 = vor.u32 %v3550_v1, %v3549_v47  ;;  %v7755_v17 = vand.u32 3, %v3405_v16  ;;  %v7757_v4 = vsub.s32 %v3476_v53, %v3479_v35 }
 0x362   : > { %5462 = vcosq.f32 %v3400_v24  ;;  %v3528_v59 = vor.u32 8388608, %v3527_v13  ;;  %vm3552_vm10 = vcmp.lt.s32.totalorder %v7734_v20, 1  ;;  %v3624_v14 = vand.u32 2147483647, %v7615_v42 }
 0x363   : > { %5464 = vsinq.f32 %v3400_v24  ;;  %v3628_v56 = vshrl.u32 %v3627_v27, 23  ;;  %vm3418_vm13 = vcmp.lt.s32.totalorder %v7401_v26, 0  ;;  %v3482_v40 = vsub.s32 0, %v7757_v4 }
 0x364   : > { %vm3554_vm11 = vcmp.lt.s32.totalorder %v7734_v20, 3  ;;  %vm3555_vm15 = vcmp.lt.s32.totalorder %v7734_v20, 4  ;;  %v3560_v6 = vsel %vm3552_vm10, %v3539_v51, %v3542_v22  ;;  %v3536_v58 = vshrl.u32 %v5599_v62, %v3535_v38 }
 0x365   : > { %v3557_v28 = vsel %vm3555_vm15, %v3545_v50, 2102212464  ;;  %v3561_v23 = vsel %vm3555_vm15, %v3548_v29, 920167782  ;;  %v3565_v10 = vsel %vm3555_vm15, %v3551_v11, 1326507024  ;;  %v4980_v53 = vmin.u32 %v3482_v40, %v7757_v4 }
 0x366   : > { %vm3411_vm14 = vcmp.eq.s32.totalorder %v7755_v17, 2  ;;  %vm3553_vm1 = vcmp.lt.s32.totalorder %v7734_v20, 2  ;;  %v3562_v33 = vsel %vm3554_vm11, %v3545_v50, %v3561_v23  ;;  %v3564_v16 = vsel %vm3552_vm10, %v3542_v22, %v3545_v50 }
 0x367   : > { %vm3408_vm0 = vcmp.eq.s32.totalorder %v7755_v17, 0  ;;  %v3563_v13 = vsel %vm3553_vm1, %v3560_v6, %v3562_v33  ;;  %v3566_v38 = vsel %vm3554_vm11, %v3548_v29, %v3565_v10  ;;  %v3568_v49 = vshll.u32 %v3528_v59, 8 }
 0x368   : > { %v4987_v25 = vadd.s32 4294967169, %v3628_v56  ;;  %vm3407_vm2 = vcmp.lt.s32.totalorder %v7755_v17, 2  ;;  %vm7783_vm3 = vcmp.le.f32.partialorder %v3416_v19, 0.7853982  ;;  %v3484_v36 = vclz %v4980_v53 }
 0x369   : > { %v3556_v32 = vsel %vm3552_vm10, %v3536_v58, %v3539_v51  ;;  %v3558_v46 = vsel %vm3554_vm11, %v3542_v22, %v3557_v28  ;;  %v7793_v0 = vand.u32 8388607, %v3624_v14  ;;  %vm3404_vm4 = vweird.f32 %v7395_v8 }
 0x36a   : > { %v3502_v48 = vsub.s32 4, %v7741_v2  ;;  %v3567_v19 = vsel %vm3553_vm1, %v3564_v16, %v3566_v38  ;;  %v7799_v61 = vmul.u32.u64.low %v3568_v49, %v3563_v13  ;;  %v7800_v31 = vmul.u32.u64.high %v3568_v49, %v3563_v13, %v7799_v61 }
 0x36b   : > { %v4981_v43 = vadd.s32 4294967294, %v3484_v36  ;;  %v7803_v52 = vmul.u32.u64.low %v3568_v49, %v3567_v19  ;;  %v7804_v47 = vmul.u32.u64.high %v3568_v49, %v3567_v19, %v7803_v52  ;;  %v3634_v1 = vadd.s32 1, %v4987_v25 }
 0x36c   : > { %v3472_v60 = vadd.s32 %v7708_v3, %v7705_v15  ;;  %v3559_v35 = vsel %vm3553_vm1, %v3556_v32, %v3558_v46  ;;  %v7812_v51 = vadd.f32 %v7371_v37, %v7380_v18  ;;  %v7816_v22 = vadd.f32 %v7468_v34, %v7472_v55  ;;  %v5463_v24 = vpop.eup %5462  ;;  %v7830_v34 = vpop.f32.mrb[27].mxu0 }
 0x36d   : > { %vm4982_vm5 = vcmp.lt.s32.totalorder %v4981_v43, 0  ;;  %vm3635_vm6 = vcmp.gt.s32.totalorder %v3634_v1, 0  ;;  %v7820_v50 = vadd.f32 %v7519_v45, %v7521_v30  ;;  %v7824_v15 = vadd.f32 %v7617_v39, %v7623_v41  ;;  %v5465_v3 = vpop.eup %5464  ;;  %v7832_v30 = vpop.f32.mrb[27].mxu1 }
 0x36e   : > { %v3412_v20 = vxor.u32 2147483648, %v5463_v24  ;;  %v3487_v29 = vsel %vm4982_vm5, 0, %v4981_v43  ;;  %v3503_v37 = vsel %vm3418_vm13, %v3502_v48, %v7741_v2  ;;  %v3578_v18 = vadd.s32 1, %v7800_v31 }
 0x36f   : > { %v3409_v55 = vxor.u32 2147483648, %v5465_v3  ;;  %v3488_v11 = vsub.s32 32, %v3487_v29  ;;  %v3492_v59 = vsub.s32 4294967266, %v3487_v29  ;;  %v3636_v45 = vsel %vm3635_vm6, %v3634_v1, 0 }
 0x370   : > { %v3413_v39 = vsel %vm3411_vm14, %v3412_v20, %v5465_v3  ;;  %v3489_v41 = vshll.u32 %v7757_v4, %v3487_v29  ;;  %v3575_v56 = vmul.u32 %v3568_v49, %v3559_v35  ;;  %vm3577_vm7 = vc.u32 %v7804_v47, %v7799_v61 }
 0x371   : > { %v3410_v2 = vsel %vm3408_vm0, %v5463_v24, %v3409_v55  ;;  %v3490_v40 = vshrl.u32 %v3472_v60, %v3488_v11  ;;  %v3493_v6 = vadd.s32 127, %v3492_v59  ;;  %v3579_v58 = vsel %vm3577_vm7, %v3578_v18, %v7800_v31 }
 0x372   : > { %v3414_v28 = vsel %vm3407_vm2, %v3410_v2, %v3413_v39  ;;  %v3505_v23 = vsel %vm7783_vm3, 0, %v3503_v37  ;;  %v3580_v10 = vadd.s32 %v3579_v58, %v3575_v56  ;;  %v3638_v53 = vand.u32 31, %v3636_v45 }
 0x373   : > { %v3415_v4 = vsel %vm3404_vm4, nan, %v3414_v28  ;;  %v3491_v33 = vor.u32 %v3490_v40, %v3489_v41  ;;  %v3494_v16 = vshll.u32 %v3493_v6, 23  ;;  %v3509_v25 = vadd.s32 3, %v3505_v23 }
 0x374   : > { %4786 = vst [vmem:[%s6348_s26 + $0x90] sm:$0xff] %v3415_v4  ;;  %v3581_v13 = vadd.s32 536870912, %v3580_v10  ;;  %v3639_v38 = vsub.s32 32, %v3638_v53  ;;  %v3632_v36 = vor.u32 8388608, %v7793_v0  ;;  %v3637_v32 = vshrl.u32 %v3636_v45, 5 }
 0x375   : > { %v3495_v49 = vor.u32 4788187, %v3494_v16  ;;  %v3498_v17 = vcvt.s32.f32 %v3491_v33  ;;  %v3650_v43 = vshll.u32 %v5602_v12, %v3638_v53  ;;  %v3641_v60 = vshll.u32 %v5599_v62, %v3638_v53 }
 0x376   : > { %v3582_v46 = vshrl.u32 %v3581_v13, 30  ;;  %v3642_v48 = vshrl.u32 %v5600_v5, %v3639_v38  ;;  %v3645_v19 = vshrl.u32 %v5601_v7, %v3639_v38  ;;  %v3648_v8 = vshrl.u32 %v5602_v12, %v3639_v38 }
 0x377   : > { %v3496_v31 = vand.u32 2147483647, %v3495_v49  ;;  %v3651_v52 = vshrl.u32 %v5603_v21, %v3639_v38  ;;  %v3644_v35 = vshll.u32 %v5600_v5, %v3638_v53  ;;  %v3647_v0 = vshll.u32 %v5601_v7, %v3638_v53 }
 0x378   : > { %v3583_v1 = vshll.u32 %v3582_v46, 30  ;;  %v3653_v20 = vshll.u32 %v5603_v21, %v3638_v53  ;;  %v3654_v29 = vshrl.u32 %v5604_v9, %v3639_v38  ;;  %v3643_v18 = vor.u32 %v3642_v48, %v3641_v60  ;;  %v7895_v60 = vpop.f32.mrb[28].mxu1 }
 0x379   : > { %v3499_v24 = vmul.f32 %v3498_v17, %v3496_v31  ;;  %v3652_v3 = vor.u32 %v3651_v52, %v3650_v43  ;;  %v3646_v55 = vor.u32 %v3645_v19, %v3644_v35  ;;  %v3649_v11 = vor.u32 %v3648_v8, %v3647_v0  ;;  %v7886_v43 = vpop.f32.mrb[28].mxu0 }
 0x37a   : > { %v7860_v37 = vsub.s32 %v3580_v10, %v3583_v1  ;;  %v7862_v45 = vand.u32 3, %v3509_v25  ;;  %v3655_v39 = vor.u32 %v3654_v29, %v3653_v20  ;;  %vm3656_vm8 = vcmp.lt.s32.totalorder %v3637_v32, 1 }
 0x37b   : > { %v3500_v59 = vxor.u32 2147483648, %v3499_v24  ;;  %vm3659_vm9 = vcmp.lt.s32.totalorder %v3637_v32, 4  ;;  %v3672_v56 = vshll.u32 %v3632_v36, 8  ;;  %v3640_v40 = vshrl.u32 %v5599_v62, %v3639_v38 }
 0x37c   : > { %v3586_v41 = vsub.s32 0, %v7860_v37  ;;  %vm3658_vm12 = vcmp.lt.s32.totalorder %v3637_v32, 3  ;;  %v3665_v6 = vsel %vm3659_vm9, %v3652_v3, 920167782  ;;  %v3661_v23 = vsel %vm3659_vm9, %v3649_v11, 2102212464 }
 0x37d   : > { %v3501_v2 = vsel %vm3418_vm13, %v3500_v59, %v3499_v24  ;;  %v3664_v10 = vsel %vm3656_vm8, %v3643_v18, %v3646_v55  ;;  %v3666_v53 = vsel %vm3658_vm12, %v3649_v11, %v3665_v6  ;;  %v3668_v4 = vsel %vm3656_vm8, %v3646_v55, %v3649_v11 }
 0x37e   : > { %v3504_v58 = vsel %vm7783_vm3, %v7401_v26, %v3501_v2  ;;  %v4984_v28 = vmin.u32 %v3586_v41, %v7860_v37  ;;  %v3669_v33 = vsel %vm3659_vm9, %v3655_v39, 1326507024  ;;  %v3606_v13 = vsub.s32 4, %v3582_v46 }
 0x37f   : > { %5466 = vcosq.f32 %v3504_v58  ;;  %vm3657_vm10 = vcmp.lt.s32.totalorder %v3637_v32, 2  ;;  %v3660_v38 = vsel %vm3656_vm8, %v3640_v40, %v3643_v18  ;;  %v3662_v27 = vsel %vm3658_vm12, %v3646_v55, %v3661_v23 }
 0x380   : > { %5468 = vsinq.f32 %v3504_v58  ;;  %v3588_v16 = vclz %v4984_v28  ;;  %v3667_v49 = vsel %vm3657_vm10, %v3664_v10, %v3666_v53  ;;  %v3670_v25 = vsel %vm3658_vm12, %v3652_v3, %v3669_v33 }
 0x381   : > { %v3671_v17 = vsel %vm3657_vm10, %v3668_v4, %v3670_v25  ;;  %v7878_v48 = vmul.u32.u64.low %v3672_v56, %v3667_v49  ;;  %v7879_v19 = vmul.u32.u64.high %v3672_v56, %v3667_v49, %v7878_v48  ;;  %vm3522_vm13 = vcmp.lt.s32.totalorder %v7610_v54, 0 }
 0x382   : > { %v4985_v36 = vadd.s32 4294967294, %v3588_v16  ;;  %v7883_v31 = vmul.u32.u64.low %v3672_v56, %v3671_v17  ;;  %v7884_v8 = vmul.u32.u64.high %v3672_v56, %v3671_v17, %v7883_v31  ;;  %vm7890_vm11 = vcmp.le.f32.partialorder %v3520_v63, 0.7853982 }
 0x383   : > { %v3663_v32 = vsel %vm3657_vm10, %v3660_v38, %v3662_v27  ;;  %v3731_v1 = vand.u32 2139095040, %v7812_v51  ;;  %vm3511_vm14 = vcmp.lt.s32.totalorder %v7862_v45, 2  ;;  %v3576_v35 = vadd.s32 %v7799_v61, %v7804_v47 }
 0x384   : > { %vm4986_vm15 = vcmp.lt.s32.totalorder %v4985_v36, 0  ;;  %v3607_v24 = vsel %vm3522_vm13, %v3606_v13, %v3582_v46  ;;  %v3835_v63 = vand.u32 2139095040, %v7816_v22  ;;  %vm3508_vm1 = vweird.f32 %v7401_v26 }
 0x385   : > { %v3591_v0 = vsel %vm4986_vm15, 0, %v4985_v36  ;;  %v3682_v29 = vadd.s32 1, %v7879_v19  ;;  %v3728_v18 = vand.u32 2147483647, %v7812_v51  ;;  %vm3515_vm0 = vcmp.eq.s32.totalorder %v7862_v45, 2 }
 0x386   : > { %v3592_v3 = vsub.s32 32, %v3591_v0  ;;  %v3596_v20 = vsub.s32 4294967266, %v3591_v0  ;;  %v3679_v55 = vmul.u32 %v3672_v56, %v3663_v32  ;;  %vm3681_vm2 = vc.u32 %v7884_v8, %v7878_v48 }
 0x387   : > { %v3732_v61 = vshrl.u32 %v3731_v1, 23  ;;  %v3593_v47 = vshll.u32 %v7860_v37, %v3591_v0  ;;  %v3683_v59 = vsel %vm3681_vm2, %v3682_v29, %v7879_v19  ;;  %v3609_v41 = vsel %vm7890_vm11, 0, %v3607_v24 }
 0x388   : > { %v3594_v46 = vshrl.u32 %v3576_v35, %v3592_v3  ;;  %v3597_v11 = vadd.s32 127, %v3596_v20  ;;  %v3684_v2 = vadd.s32 %v3683_v59, %v3679_v55  ;;  %v3836_v6 = vshrl.u32 %v3835_v63, 23 }
 0x389   : > { %v5467_v39 = vpop.eup %5466  ;;  %v4991_v40 = vadd.s32 4294967169, %v3732_v61  ;;  %v3735_v10 = vand.u32 8388607, %v3728_v18  ;;  %v3832_v33 = vand.u32 2147483647, %v7816_v22  ;;  %vm3512_vm3 = vcmp.eq.s32.totalorder %v7862_v45, 0 }
 0x38a   : > { %v5469_v58 = vpop.eup %5468  ;;  %v3516_v28 = vxor.u32 2147483648, %v5467_v39  ;;  %v3595_v56 = vor.u32 %v3594_v46, %v3593_v47  ;;  %v3598_v23 = vshll.u32 %v3597_v11, 23  ;;  %v3685_v37 = vadd.s32 536870912, %v3684_v2 }
 0x38b   : > { %v3513_v53 = vxor.u32 2147483648, %v5469_v58  ;;  %v3738_v4 = vadd.s32 1, %v4991_v40  ;;  %v3613_v38 = vadd.s32 3, %v3609_v41  ;;  %v4995_v25 = vadd.s32 4294967169, %v3836_v6 }
 0x38c   : > { %v3517_v16 = vsel %vm3515_vm0, %v3516_v28, %v5469_v58  ;;  %v3599_v13 = vor.u32 4788187, %v3598_v23  ;;  %v7919_v49 = vshrl.u32 %v3685_v37, 30  ;;  %v3602_v19 = vcvt.s32.f32 %v3595_v56 }
 0x38d   : > { %v3514_v27 = vsel %vm3512_vm3, %v5467_v39, %v3513_v53  ;;  %vm3739_vm4 = vcmp.gt.s32.totalorder %v3738_v4, 0  ;;  %v3736_v35 = vor.u32 8388608, %v3735_v10  ;;  %v7928_v0 = vand.u32 8388607, %v3832_v33 }
 0x38e   : > { %v3518_v36 = vsel %vm3511_vm14, %v3514_v27, %v3517_v16  ;;  %v3600_v17 = vand.u32 2147483647, %v3599_v13  ;;  %v3740_v31 = vsel %vm3739_vm4, %v3738_v4, 0  ;;  %v3687_v1 = vshll.u32 %v7919_v49, 30 }
 0x38f   : > { %v3519_v32 = vsel %vm3508_vm1, nan, %v3518_v36  ;;  %v3742_v63 = vand.u32 31, %v3740_v31  ;;  %v7931_v3 = vand.u32 3, %v3613_v38  ;;  %v3680_v45 = vadd.s32 %v7878_v48, %v7884_v8 }
 0x390   : > { %4787 = vst [vmem:[%s6348_s26 + $0x98] sm:$0xff] %v3519_v32  ;;  %v3603_v24 = vmul.f32 %v3602_v19, %v3600_v17  ;;  %v7935_v20 = vsub.s32 %v3684_v2, %v3687_v1  ;;  %v7937_v26 = vshrl.u32 %v3740_v31, 5  ;;  %v3842_v61 = vadd.s32 1, %v4995_v25 }
 0x391   : > { %v3743_v55 = vsub.s32 32, %v3742_v63  ;;  %v3710_v46 = vsub.s32 4, %v7919_v49  ;;  %v7941_v11 = vshll.u32 %v3736_v35, 8  ;;  %v3840_v59 = vor.u32 8388608, %v7928_v0 }
 0x392   : > { %v3604_v29 = vxor.u32 2147483648, %v3603_v24  ;;  %v3690_v47 = vsub.s32 0, %v7935_v20  ;;  %v3745_v48 = vshll.u32 %v5599_v62, %v3742_v63  ;;  %vm3626_vm5 = vcmp.lt.s32.totalorder %v7615_v42, 0 }
 0x393   : > { %v3746_v8 = vshrl.u32 %v5600_v5, %v3743_v55  ;;  %v3749_v41 = vshrl.u32 %v5601_v7, %v3743_v55  ;;  %v3748_v6 = vshll.u32 %v5600_v5, %v3742_v63  ;;  %v3752_v58 = vshrl.u32 %v5602_v12, %v3743_v55 }
 0x394   : > { %v3605_v39 = vsel %vm3522_vm13, %v3604_v29, %v3603_v24  ;;  %v4988_v40 = vmin.u32 %v3690_v47, %v7935_v20  ;;  %v3751_v28 = vshll.u32 %v5601_v7, %v3742_v63  ;;  %vm3760_vm6 = vcmp.lt.s32.totalorder %v7937_v26, 1  ;;  %v7991_v47 = vpop.f32.mrb[29].mxu0 }
 0x395   : > { %v3608_v2 = vsel %vm7890_vm11, %v7610_v54, %v3605_v39  ;;  %vm3843_vm7 = vcmp.gt.s32.totalorder %v3842_v61, 0  ;;  %v3747_v23 = vor.u32 %v3746_v8, %v3745_v48  ;;  %v3750_v10 = vor.u32 %v3749_v41, %v3748_v6  ;;  %v8001_v41 = vpop.f32.mrb[29].mxu1 }
 0x396   : > { %5470 = vcosq.f32 %v3608_v2  ;;  %v3692_v56 = vclz %v4988_v40  ;;  %v3744_v52 = vshrl.u32 %v5599_v62, %v3743_v55  ;;  %v3753_v53 = vor.u32 %v3752_v58, %v3751_v28 }
 0x397   : > { %5472 = vsinq.f32 %v3608_v2  ;;  %v3754_v37 = vshll.u32 %v5602_v12, %v3742_v63  ;;  %v3755_v4 = vshrl.u32 %v5603_v21, %v3743_v55  ;;  %vm7963_vm8 = vcmp.le.f32.partialorder %v3624_v14, 0.7853982 }
 0x398   : > { %v4989_v13 = vadd.s32 4294967294, %v3692_v56  ;;  %v3757_v38 = vshll.u32 %v5603_v21, %v3742_v63  ;;  %v3758_v27 = vshrl.u32 %v5604_v9, %v3743_v55  ;;  %vm3763_vm9 = vcmp.lt.s32.totalorder %v7937_v26, 4 }
 0x399   : > { %vm3619_vm12 = vcmp.eq.s32.totalorder %v7931_v3, 2  ;;  %v3756_v25 = vor.u32 %v3755_v4, %v3754_v37  ;;  %vm3761_vm10 = vcmp.lt.s32.totalorder %v7937_v26, 2  ;;  %vm3762_vm13 = vcmp.lt.s32.totalorder %v7937_v26, 3 }
 0x39a   : > { %v3765_v14 = vsel %vm3763_vm9, %v3753_v53, 2102212464  ;;  %vm3616_vm11 = vcmp.eq.s32.totalorder %v7931_v3, 0  ;;  %vm4990_vm15 = vcmp.lt.s32.totalorder %v4989_v13, 0  ;;  %v3759_v36 = vor.u32 %v3758_v27, %v3757_v38 }
 0x39b   : > { %v3764_v17 = vsel %vm3760_vm6, %v3744_v52, %v3747_v23  ;;  %v3768_v19 = vsel %vm3760_vm6, %v3747_v23, %v3750_v10  ;;  %vm3615_vm14 = vcmp.lt.s32.totalorder %v7931_v3, 2  ;;  %v3695_v31 = vsel %vm4990_vm15, 0, %v4989_v13 }
 0x39c   : > { %v3766_v32 = vsel %vm3762_vm13, %v3750_v10, %v3765_v14  ;;  %v3769_v1 = vsel %vm3763_vm9, %v3756_v25, 920167782  ;;  %v3844_v35 = vsel %vm3843_vm7, %v3842_v61, 0  ;;  %vm3612_vm1 = vweird.f32 %v7610_v54 }
 0x39d   : > { %v3696_v24 = vsub.s32 32, %v3695_v31  ;;  %v3700_v63 = vsub.s32 4294967266, %v3695_v31  ;;  %v3770_v29 = vsel %vm3762_vm13, %v3753_v53, %v3769_v1  ;;  %v3772_v55 = vsel %vm3760_vm6, %v3750_v10, %v3753_v53 }
 0x39e   : > { %v3697_v39 = vshll.u32 %v7935_v20, %v3695_v31  ;;  %v3711_v48 = vsel %vm3626_vm5, %v3710_v46, %v7919_v49  ;;  %v3771_v61 = vsel %vm3761_vm10, %v3768_v19, %v3770_v29  ;;  %v3773_v8 = vsel %vm3763_vm9, %v3759_v36, 1326507024 }
 0x39f   : > { %v3698_v2 = vshrl.u32 %v3680_v45, %v3696_v24  ;;  %v3701_v40 = vadd.s32 127, %v3700_v63  ;;  %v3774_v6 = vsel %vm3762_vm13, %v3756_v25, %v3773_v8  ;;  %v3846_v58 = vand.u32 31, %v3844_v35 }
 0x3a0   : > { %v5471_v28 = vpop.eup %5470  ;;  %v3767_v20 = vsel %vm3761_vm10, %v3764_v17, %v3766_v32  ;;  %v3775_v49 = vsel %vm3761_vm10, %v3772_v55, %v3774_v6  ;;  %v8010_v46 = vmul.u32.u64.low %v7941_v11, %v3771_v61  ;;  %v8011_v56 = vmul.u32.u64.high %v7941_v11, %v3771_v61, %v8010_v46 }
 0x3a1   : > { %v5473_v23 = vpop.eup %5472  ;;  %v3620_v10 = vxor.u32 2147483648, %v5471_v28  ;;  %v3699_v45 = vor.u32 %v3698_v2, %v3697_v39  ;;  %v3702_v52 = vshll.u32 %v3701_v40, 23  ;;  %v3847_v53 = vsub.s32 32, %v3846_v58 }
 0x3a2   : > { %v3617_v37 = vxor.u32 2147483648, %v5473_v23  ;;  %v3713_v4 = vsel %vm7963_vm8, 0, %v3711_v48  ;;  %v8017_v13 = vmul.u32.u64.low %v7941_v11, %v3775_v49  ;;  %v8018_v38 = vmul.u32.u64.high %v7941_v11, %v3775_v49, %v8017_v13 }
 0x3a3   : > { %v3621_v26 = vsel %vm3619_vm12, %v3620_v10, %v5473_v23  ;;  %v3703_v27 = vor.u32 4788187, %v3702_v52  ;;  %v3783_v25 = vmul.u32 %v7941_v11, %v3767_v20  ;;  %v8023_v14 = vshrl.u32 %v3844_v35, 5 }
 0x3a4   : > { %v3618_v36 = vsel %vm3616_vm11, %v5471_v28, %v3617_v37  ;;  %v3786_v17 = vadd.s32 1, %v8011_v56  ;;  %v3849_v19 = vshll.u32 %v5599_v62, %v3846_v58  ;;  %v3850_v31 = vshrl.u32 %v5600_v5, %v3847_v53 }
 0x3a5   : > { %v3622_v32 = vsel %vm3615_vm14, %v3618_v36, %v3621_v26  ;;  %v3704_v1 = vand.u32 2147483647, %v3703_v27  ;;  %v3706_v24 = vcvt.s32.f32 %v3699_v45  ;;  %v3853_v63 = vshrl.u32 %v5601_v7, %v3847_v53 }
 0x3a6   : > { %v3623_v11 = vsel %vm3612_vm1, nan, %v3622_v32  ;;  %vm3785_vm0 = vc.u32 %v8018_v38, %v8010_v46  ;;  %v3852_v35 = vshll.u32 %v5600_v5, %v3846_v58  ;;  %v3855_v29 = vshll.u32 %v5601_v7, %v3846_v58 }
 0x3a7   : > { %4788 = vst [vmem:[%s6348_s26 + $0xa0] sm:$0xff] %v3623_v11  ;;  %v3707_v55 = vmul.f32 %v3706_v24, %v3704_v1  ;;  %v3787_v39 = vsel %vm3785_vm0, %v3786_v17, %v8011_v56  ;;  %v3851_v3 = vor.u32 %v3850_v31, %v3849_v19  ;;  %v3856_v48 = vshrl.u32 %v5602_v12, %v3847_v53 }
 0x3a8   : > { %v3788_v61 = vadd.s32 %v3787_v39, %v3783_v25  ;;  %v3854_v8 = vor.u32 %v3853_v63, %v3852_v35  ;;  %v3858_v2 = vshll.u32 %v5602_v12, %v3846_v58  ;;  %v3859_v54 = vshrl.u32 %v5603_v21, %v3847_v53 }
 0x3a9   : > { %v3708_v40 = vxor.u32 2147483648, %v3707_v55  ;;  %v3857_v6 = vor.u32 %v3856_v48, %v3855_v29  ;;  %v3861_v28 = vshll.u32 %v5603_v21, %v3846_v58  ;;  %v3862_v20 = vshrl.u32 %v5604_v9, %v3847_v53 }
 0x3aa   : > { %v3717_v49 = vadd.s32 3, %v3713_v4  ;;  %v3789_v23 = vadd.s32 536870912, %v3788_v61  ;;  %v3860_v10 = vor.u32 %v3859_v54, %v3858_v2  ;;  %vm3864_vm2 = vcmp.lt.s32.totalorder %v8023_v14, 1 }
 0x3ab   : > { %v3709_v56 = vsel %vm3626_vm5, %v3708_v40, %v3707_v55  ;;  %v3848_v45 = vshrl.u32 %v5599_v62, %v3847_v53  ;;  %v3863_v52 = vor.u32 %v3862_v20, %v3861_v28  ;;  %vm3865_vm3 = vcmp.lt.s32.totalorder %v8023_v14, 2 }
 0x3ac   : > { %v3712_v37 = vsel %vm7963_vm8, %v7615_v42, %v3709_v56  ;;  %v3790_v58 = vshrl.u32 %v3789_v23, 30  ;;  %vm3867_vm4 = vcmp.lt.s32.totalorder %v8023_v14, 4  ;;  %v3872_v4 = vsel %vm3864_vm2, %v3851_v3, %v3854_v8 }
 0x3ad   : > { %5474 = vcosq.f32 %v3712_v37  ;;  %vm3866_vm6 = vcmp.lt.s32.totalorder %v8023_v14, 3  ;;  %v3869_v13 = vsel %vm3867_vm4, %v3857_v6, 2102212464  ;;  %v3873_v26 = vsel %vm3867_vm4, %v3860_v10, 920167782 }
 0x3ae   : > { %5476 = vsinq.f32 %v3712_v37  ;;  %v3791_v53 = vshll.u32 %v3790_v58, 30  ;;  %v3874_v27 = vsel %vm3866_vm6, %v3857_v6, %v3873_v26  ;;  %v3876_v25 = vsel %vm3864_vm2, %v3854_v8, %v3857_v6  ;;  %v8095_v6 = vpop.f32.mrb[30].mxu1 }
 0x3af   : > { %v3875_v16 = vsel %vm3865_vm3, %v3872_v4, %v3874_v27  ;;  %v3877_v36 = vsel %vm3867_vm4, %v3863_v52, 1326507024  ;;  %v3880_v17 = vshll.u32 %v3840_v59, 8  ;;  %v3814_v31 = vsub.s32 4, %v3790_v58 }
 0x3b0   : > { %v8064_v19 = vsub.s32 %v3788_v61, %v3791_v53  ;;  %v3868_v32 = vsel %vm3864_vm2, %v3848_v45, %v3851_v3  ;;  %v3878_v1 = vsel %vm3866_vm6, %v3860_v10, %v3877_v36  ;;  %v3870_v24 = vsel %vm3866_vm6, %v3854_v8, %v3869_v13  ;;  %v8085_v8 = vpop.f32.mrb[30].mxu0 }
 0x3b1   : > { %v3879_v63 = vsel %vm3865_vm3, %v3876_v25, %v3878_v1  ;;  %v8070_v11 = vmul.u32.u64.low %v3880_v17, %v3875_v16  ;;  %v8071_v35 = vmul.u32.u64.high %v3880_v17, %v3875_v16, %v8070_v11  ;;  %v3718_v29 = vand.u32 3, %v3717_v49 }
 0x3b2   : > { %v3794_v55 = vsub.s32 0, %v8064_v19  ;;  %v8075_v0 = vmul.u32.u64.low %v3880_v17, %v3879_v63  ;;  %v8076_v59 = vmul.u32.u64.high %v3880_v17, %v3879_v63, %v8075_v0  ;;  %vm3730_vm5 = vcmp.lt.s32.totalorder %v7812_v51, 0 }
 0x3b3   : > { %v3939_v39 = vand.u32 2139095040, %v7820_v50  ;;  %v3815_v48 = vsel %vm3730_vm5, %v3814_v31, %v3790_v58  ;;  %v3871_v61 = vsel %vm3865_vm3, %v3868_v32, %v3870_v24  ;;  %vm3716_vm7 = vweird.f32 %v7615_v42 }
 0x3b4   : > { %v4992_v3 = vmin.u32 %v3794_v55, %v8064_v19  ;;  %vm8090_vm8 = vcmp.le.f32.partialorder %v3728_v18, 0.7853982  ;;  %v3890_v54 = vadd.s32 1, %v8071_v35  ;;  %vm3719_vm9 = vcmp.lt.s32.totalorder %v3718_v29, 2 }
 0x3b5   : > { %v3940_v40 = vshrl.u32 %v3939_v39, 23  ;;  %vm3720_vm12 = vcmp.eq.s32.totalorder %v3718_v29, 0  ;;  %vm3723_vm10 = vcmp.eq.s32.totalorder %v3718_v29, 2  ;;  %v3817_v20 = vsel %vm8090_vm8, 0, %v3815_v48 }
 0x3b6   : > { %v3796_v14 = vclz %v4992_v3  ;;  %v3887_v49 = vmul.u32 %v3880_v17, %v3871_v61  ;;  %vm3889_vm13 = vc.u32 %v8076_v59, %v8070_v11  ;;  %v3936_v52 = vand.u32 2147483647, %v7820_v50 }
 0x3b7   : > { %v5475_v28 = vpop.eup %5474  ;;  %v4999_v18 = vadd.s32 4294967169, %v3940_v40  ;;  %v3891_v45 = vsel %vm3889_vm13, %v3890_v54, %v8071_v35  ;;  %v4043_v13 = vand.u32 2139095040, %v7824_v15  ;;  %v3784_v53 = vadd.s32 %v8010_v46, %v8018_v38 }
 0x3b8   : > { %v5477_v23 = vpop.eup %5476  ;;  %v3724_v10 = vxor.u32 2147483648, %v5475_v28  ;;  %v4993_v56 = vadd.s32 4294967294, %v3796_v14  ;;  %v3892_v58 = vadd.s32 %v3891_v45, %v3887_v49  ;;  %v3821_v27 = vadd.s32 3, %v3817_v20 }
 0x3b9   : > { %v3721_v37 = vxor.u32 2147483648, %v5477_v23  ;;  %v3946_v4 = vadd.s32 1, %v4999_v18  ;;  %v3943_v1 = vand.u32 8388607, %v3936_v52  ;;  %v4044_v46 = vshrl.u32 %v4043_v13, 23 }
 0x3ba   : > { %v3725_v26 = vsel %vm3723_vm10, %v3724_v10, %v5477_v23  ;;  %vm4994_vm11 = vcmp.lt.s32.totalorder %v4993_v56, 0  ;;  %v3893_v36 = vadd.s32 536870912, %v3892_v58  ;;  %v8115_v3 = vand.u32 3, %v3821_v27 }
 0x3bb   : > { %v3722_v25 = vsel %vm3720_vm12, %v5475_v28, %v3721_v37  ;;  %v3799_v16 = vsel %vm4994_vm11, 0, %v4993_v56  ;;  %vm3947_vm15 = vcmp.gt.s32.totalorder %v3946_v4, 0  ;;  %vm3834_vm14 = vcmp.lt.s32.totalorder %v7816_v22, 0 }
 0x3bc   : > { %v3726_v17 = vsel %vm3719_vm9, %v3722_v25, %v3725_v26  ;;  %v3800_v31 = vsub.s32 32, %v3799_v16  ;;  %v3804_v32 = vsub.s32 4294967266, %v3799_v16  ;;  %v3894_v63 = vshrl.u32 %v3893_v36, 30 }
 0x3bd   : > { %v3727_v24 = vsel %vm3716_vm7, nan, %v3726_v17  ;;  %v3948_v35 = vsel %vm3947_vm15, %v3946_v4, 0  ;;  %v3801_v38 = vshll.u32 %v8064_v19, %v3799_v16  ;;  %v4040_v48 = vand.u32 2147483647, %v7824_v15 }
 0x3be   : > { %4789 = vst [vmem:[%s6348_s26 + $0xa8] sm:$0xff] %v3727_v24  ;;  %v3802_v55 = vshrl.u32 %v3784_v53, %v3800_v31  ;;  %v3805_v0 = vadd.s32 127, %v3804_v32  ;;  %v3950_v39 = vand.u32 31, %v3948_v35  ;;  %v3895_v29 = vshll.u32 %v3894_v63, 30 }
 0x3bf   : > { %v3944_v42 = vor.u32 8388608, %v3943_v1  ;;  %v3888_v14 = vadd.s32 %v8070_v11, %v8076_v59  ;;  %v8123_v19 = vshrl.u32 %v3948_v35, 5  ;;  %v5003_v20 = vadd.s32 4294967169, %v4044_v46 }
 0x3c0   : > { %v3803_v61 = vor.u32 %v3802_v55, %v3801_v38  ;;  %v3806_v54 = vshll.u32 %v3805_v0, 23  ;;  %v3951_v40 = vsub.s32 32, %v3950_v39  ;;  %v8121_v28 = vsub.s32 %v3892_v58, %v3895_v29 }
 0x3c1   : > { %v3918_v18 = vsub.s32 4, %v3894_v63  ;;  %v3953_v23 = vshll.u32 %v5599_v62, %v3950_v39  ;;  %v3956_v10 = vshll.u32 %v5600_v5, %v3950_v39  ;;  %v3959_v4 = vshll.u32 %v5601_v7, %v3950_v39 }
 0x3c2   : > { %v3807_v49 = vor.u32 4788187, %v3806_v54  ;;  %v3898_v56 = vsub.s32 0, %v8121_v28  ;;  %v3954_v45 = vshrl.u32 %v5600_v5, %v3951_v40  ;;  %v3957_v37 = vshrl.u32 %v5601_v7, %v3951_v40 }
 0x3c3   : > { %v3810_v59 = vcvt.s32.f32 %v3803_v61  ;;  %v3960_v58 = vshrl.u32 %v5602_v12, %v3951_v40  ;;  %v3963_v13 = vshrl.u32 %v5603_v21, %v3951_v40  ;;  %v3962_v27 = vshll.u32 %v5602_v12, %v3950_v39 }
 0x3c4   : > { %v3808_v11 = vand.u32 2147483647, %v3807_v49  ;;  %v4996_v26 = vmin.u32 %v3898_v56, %v8121_v28  ;;  %v3955_v53 = vor.u32 %v3954_v45, %v3953_v23  ;;  %v8135_v25 = vshll.u32 %v3944_v42, 8 }
 0x3c5   : > { %v3958_v36 = vor.u32 %v3957_v37, %v3956_v10  ;;  %v3961_v17 = vor.u32 %v3960_v58, %v3959_v4  ;;  %v4050_v31 = vadd.s32 1, %v5003_v20  ;;  %v8139_v1 = vsel %vm3834_vm14, %v3918_v18, %v3894_v63 }
 0x3c6   : > { %v3811_v16 = vmul.f32 %v3810_v59, %v3808_v11  ;;  %v3900_v32 = vclz %v4996_v26  ;;  %v3952_v24 = vshrl.u32 %v5599_v62, %v3951_v40  ;;  %v3964_v35 = vor.u32 %v3963_v13, %v3962_v27  ;;  %v8180_v11 = vpop.f32.mrb[31].mxu0  ;;  %v8184_v26 = vpop.f32.mrb[31].mxu1 }
 0x3c7   : > { %v3965_v38 = vshll.u32 %v5603_v21, %v3950_v39  ;;  %v3966_v55 = vshrl.u32 %v5604_v9, %v3951_v40  ;;  %vm3968_vm1 = vcmp.lt.s32.totalorder %v8123_v19, 1  ;;  %vm3970_vm0 = vcmp.lt.s32.totalorder %v8123_v19, 3 }
 0x3c8   : > { %v3812_v46 = vxor.u32 2147483648, %v3811_v16  ;;  %v4997_v0 = vadd.s32 4294967294, %v3900_v32  ;;  %vm3971_vm2 = vcmp.lt.s32.totalorder %v8123_v19, 4  ;;  %v3972_v29 = vsel %vm3968_vm1, %v3952_v24, %v3955_v53 }
 0x3c9   : > { %v3967_v61 = vor.u32 %v3966_v55, %v3965_v38  ;;  %v3973_v54 = vsel %vm3971_vm2, %v3961_v17, 2102212464  ;;  %v3976_v39 = vsel %vm3968_vm1, %v3955_v53, %v3958_v36  ;;  %vm8160_vm3 = vcmp.le.f32.partialorder %v3832_v33, 0.7853982 }
 0x3ca   : > { %v3813_v63 = vsel %vm3730_vm5, %v3812_v46, %v3811_v16  ;;  %vm4998_vm4 = vcmp.lt.s32.totalorder %v4997_v0, 0  ;;  %v3974_v20 = vsel %vm3970_vm0, %v3958_v36, %v3973_v54  ;;  %v3977_v49 = vsel %vm3971_vm2, %v3964_v35, 920167782 }
 0x3cb   : > { %v3816_v42 = vsel %vm8090_vm8, %v7812_v51, %v3813_v63  ;;  %v3903_v18 = vsel %vm4998_vm4, 0, %v4997_v0  ;;  %vm3969_vm6 = vcmp.lt.s32.totalorder %v8123_v19, 2  ;;  %v3978_v2 = vsel %vm3970_vm0, %v3961_v17, %v3977_v49 }
 0x3cc   : > { %5478 = vcosq.f32 %v3816_v42  ;;  %v3904_v23 = vsub.s32 32, %v3903_v18  ;;  %v3908_v33 = vsub.s32 4294967266, %v3903_v18  ;;  %v3975_v10 = vsel %vm3969_vm6, %v3972_v29, %v3974_v20 }
 0x3cd   : > { %5480 = vsinq.f32 %v3816_v42  ;;  %v3905_v56 = vshll.u32 %v8121_v28, %v3903_v18  ;;  %v3979_v45 = vsel %vm3969_vm6, %v3976_v39, %v3978_v2  ;;  %v3980_v37 = vsel %vm3968_vm1, %v3958_v36, %v3961_v17 }
 0x3ce   : > { %v3981_v4 = vsel %vm3971_vm2, %v3967_v61, 1326507024  ;;  %v3906_v59 = vshrl.u32 %v3888_v14, %v3904_v23  ;;  %v3909_v58 = vadd.s32 127, %v3908_v33  ;;  %vm4051_vm5 = vcmp.gt.s32.totalorder %v4050_v31, 0 }
 0x3cf   : > { %v3982_v13 = vsel %vm3970_vm0, %v3964_v35, %v3981_v4  ;;  %v8189_v53 = vmul.u32.u64.low %v8135_v25, %v3979_v45  ;;  %v8190_v27 = vmul.u32.u64.high %v8135_v25, %v3979_v45, %v8189_v53  ;;  %v4052_v16 = vsel %vm4051_vm5, %v4050_v31, 0 }
 0x3d0   : > { %v3983_v28 = vsel %vm3969_vm6, %v3980_v37, %v3982_v13  ;;  %v3907_v36 = vor.u32 %v3906_v59, %v3905_v56  ;;  %v3910_v17 = vshll.u32 %v3909_v58, 23  ;;  %vm3823_vm7 = vcmp.lt.s32.totalorder %v8115_v3, 2 }
 0x3d1   : > { %v8194_v14 = vmul.u32.u64.low %v8135_v25, %v3983_v28  ;;  %v8195_v32 = vmul.u32.u64.high %v8135_v25, %v3983_v28, %v8194_v14  ;;  %vm3824_vm8 = vcmp.eq.s32.totalorder %v8115_v3, 0  ;;  %vm3827_vm9 = vcmp.eq.s32.totalorder %v8115_v3, 2 }
 0x3d2   : > { %v4054_v19 = vand.u32 31, %v4052_v16  ;;  %v8202_v24 = vadd.f32 %v7690_v44, %v7698_v57  ;;  %vm3820_vm12 = vweird.f32 %v7812_v51  ;;  %v3911_v31 = vor.u32 4788187, %v3910_v17 }
 0x3d3   : > { %v8207_v35 = vand.u32 8388607, %v4040_v48  ;;  %v8211_v46 = vadd.f32 %v7830_v34, %v7832_v30  ;;  %v8215_v38 = vadd.f32 %v7886_v43, %v7895_v60  ;;  %v3921_v44 = vsel %vm8160_vm3, 0, %v8139_v1 }
 0x3d4   : > { %v3991_v57 = vmul.u32 %v8135_v25, %v3975_v10  ;;  %v3994_v55 = vadd.s32 1, %v8190_v27  ;;  %v4055_v0 = vsub.s32 32, %v4054_v19  ;;  %v3912_v29 = vand.u32 2147483647, %v3911_v31 }
 0x3d5   : > { %v3914_v63 = vcvt.s32.f32 %v3907_v36  ;;  %vm3993_vm10 = vc.u32 %v8195_v32, %v8189_v53  ;;  %v4057_v34 = vshll.u32 %v5599_v62, %v4054_v19  ;;  %v4060_v61 = vshll.u32 %v5600_v5, %v4054_v19 }
 0x3d6   : > { %v5479_v30 = vpop.eup %5478  ;;  %v3995_v43 = vsel %vm3993_vm10, %v3994_v55, %v8190_v27  ;;  %v4058_v60 = vshrl.u32 %v5600_v5, %v4055_v0  ;;  %v4061_v1 = vshrl.u32 %v5601_v7, %v4055_v0  ;;  %v4064_v20 = vshrl.u32 %v5602_v12, %v4055_v0 }
 0x3d7   : > { %v5481_v25 = vpop.eup %5480  ;;  %v3828_v54 = vxor.u32 2147483648, %v5479_v30  ;;  %v3915_v39 = vmul.f32 %v3914_v63, %v3912_v29  ;;  %v3996_v42 = vadd.s32 %v3995_v43, %v3991_v57  ;;  %v4053_v18 = vshrl.u32 %v4052_v16, 5 }
 0x3d8   : > { %v3825_v49 = vxor.u32 2147483648, %v5481_v25  ;;  %v4059_v2 = vor.u32 %v4058_v60, %v4057_v34  ;;  %v4063_v23 = vshll.u32 %v5601_v7, %v4054_v19  ;;  %v4062_v45 = vor.u32 %v4061_v1, %v4060_v61 }
 0x3d9   : > { %v3829_v33 = vsel %vm3827_vm9, %v3828_v54, %v5481_v25  ;;  %v3916_v10 = vxor.u32 2147483648, %v3915_v39  ;;  %v3997_v56 = vadd.s32 536870912, %v3996_v42  ;;  %v4066_v4 = vshll.u32 %v5602_v12, %v4054_v19 }
 0x3da   : > { %v3826_v37 = vsel %vm3824_vm8, %v5479_v30, %v3825_v49  ;;  %v4067_v59 = vshrl.u32 %v5603_v21, %v4055_v0  ;;  %v4070_v58 = vshrl.u32 %v5604_v9, %v4055_v0  ;;  %v4065_v16 = vor.u32 %v4064_v20, %v4063_v23 }
 0x3db   : > { %v3830_v13 = vsel %vm3823_vm7, %v3826_v37, %v3829_v33  ;;  %v3917_v28 = vsel %vm3834_vm14, %v3916_v10, %v3915_v39  ;;  %v3998_v27 = vshrl.u32 %v3997_v56, 30  ;;  %v4069_v31 = vshll.u32 %v5603_v21, %v4054_v19 }
 0x3dc   : > { %v3831_v36 = vsel %vm3820_vm12, nan, %v3830_v13  ;;  %v3920_v17 = vsel %vm8160_vm3, %v7816_v22, %v3917_v28  ;;  %v4068_v14 = vor.u32 %v4067_v59, %v4066_v4  ;;  %v4048_v3 = vor.u32 8388608, %v8207_v35 }
 0x3dd   : > { %4790 = vst [vmem:[%s6348_s26 + $0xb0] sm:$0xff] %v3831_v36  ;;  %5482 = vcosq.f32 %v3920_v17  ;;  %v3999_v57 = vshll.u32 %v3998_v27, 30  ;;  %v3925_v55 = vadd.s32 3, %v3921_v44  ;;  %v4071_v29 = vor.u32 %v4070_v58, %v4069_v31 }
 0x3de   : > { %5484 = vsinq.f32 %v3920_v17  ;;  %vm4072_vm13 = vcmp.lt.s32.totalorder %v4053_v18, 1  ;;  %v4056_v51 = vshrl.u32 %v5599_v62, %v4055_v0  ;;  %vm4075_vm11 = vcmp.lt.s32.totalorder %v4053_v18, 4 }
 0x3df   : > { %v8250_v63 = vsub.s32 %v3996_v42, %v3999_v57  ;;  %v4080_v40 = vsel %vm4072_vm13, %v4059_v2, %v4062_v45  ;;  %v4022_v34 = vsub.s32 4, %v3998_v27  ;;  %vm4074_vm15 = vcmp.lt.s32.totalorder %v4053_v18, 3 }
 0x3e0   : > { %v4077_v30 = vsel %vm4075_vm11, %v4065_v16, 2102212464  ;;  %v4081_v19 = vsel %vm4075_vm11, %v4068_v14, 920167782  ;;  %vm4073_vm14 = vcmp.lt.s32.totalorder %v4053_v18, 2  ;;  %v4084_v35 = vsel %vm4072_vm13, %v4062_v45, %v4065_v16 }
 0x3e1   : > { %v4002_v43 = vsub.s32 0, %v8250_v63  ;;  %v4082_v60 = vsel %vm4074_vm15, %v4065_v16, %v4081_v19  ;;  %v3926_v44 = vand.u32 3, %v3925_v55  ;;  %v4085_v1 = vsel %vm4075_vm11, %v4071_v29, 1326507024 }
 0x3e2   : > { %v4083_v61 = vsel %vm4073_vm14, %v4080_v40, %v4082_v60  ;;  %v4088_v25 = vshll.u32 %v4048_v3, 8  ;;  %v4076_v54 = vsel %vm4072_vm13, %v4056_v51, %v4059_v2  ;;  %v4078_v39 = vsel %vm4074_vm15, %v4062_v45, %v4077_v30 }
 0x3e3   : > { %v5000_v0 = vmin.u32 %v4002_v43, %v8250_v63  ;;  %v4086_v42 = vsel %vm4074_vm15, %v4068_v14, %v4085_v1  ;;  %vm3938_vm1 = vcmp.lt.s32.totalorder %v7820_v50, 0  ;;  %vm3924_vm0 = vweird.f32 %v7816_v22 }
 0x3e4   : > { %v4087_v20 = vsel %vm4073_vm14, %v4084_v35, %v4086_v42  ;;  %v8261_v49 = vmul.u32.u64.low %v4088_v25, %v4083_v61  ;;  %v8262_v23 = vmul.u32.u64.high %v4088_v25, %v4083_v61, %v8261_v49  ;;  %vm8267_vm2 = vcmp.le.f32.partialorder %v3936_v52, 0.7853982 }
 0x3e5   : > { %v4004_v10 = vclz %v5000_v0  ;;  %v4023_v2 = vsel %vm3938_vm1, %v4022_v34, %v3998_v27  ;;  %v4079_v56 = vsel %vm4073_vm14, %v4076_v54, %v4078_v39  ;;  %v4147_v4 = vand.u32 2139095040, %v8202_v24 }
 0x3e6   : > { %v8274_v45 = vmul.u32.u64.low %v4088_v25, %v4087_v20  ;;  %v8275_v37 = vmul.u32.u64.high %v4088_v25, %v4087_v20, %v8274_v45  ;;  %vm3927_vm3 = vcmp.lt.s32.totalorder %v3926_v44, 2  ;;  %vm3928_vm4 = vcmp.eq.s32.totalorder %v3926_v44, 0 }
 0x3e7   : > { %v5483_v59 = vpop.eup %5482  ;;  %vm3931_vm6 = vcmp.eq.s32.totalorder %v3926_v44, 2  ;;  %v5001_v58 = vadd.s32 4294967294, %v4004_v10  ;;  %v3992_v28 = vadd.s32 %v8189_v53, %v8195_v32  ;;  %v4098_v16 = vadd.s32 1, %v8262_v23 }
 0x3e8   : > { %v5485_v52 = vpop.eup %5484  ;;  %v3932_v13 = vxor.u32 2147483648, %v5483_v59  ;;  %v4148_v27 = vshrl.u32 %v4147_v4, 23  ;;  %v4025_v36 = vsel %vm8267_vm2, 0, %v4023_v2  ;;  %v4095_v17 = vmul.u32 %v4088_v25, %v4079_v56 }
 0x3e9   : > { %v3929_v18 = vxor.u32 2147483648, %v5485_v52  ;;  %vm5002_vm5 = vcmp.lt.s32.totalorder %v5001_v58, 0  ;;  %vm4097_vm7 = vc.u32 %v8275_v37, %v8261_v49  ;;  %v4144_v57 = vand.u32 2147483647, %v8202_v24 }
 0x3ea   : > { %v3933_v14 = vsel %vm3931_vm6, %v3932_v13, %v5485_v52  ;;  %v4007_v31 = vsel %vm5002_vm5, 0, %v5001_v58  ;;  %v4251_v32 = vand.u32 2139095040, %v8211_v46  ;;  %v4099_v40 = vsel %vm4097_vm7, %v4098_v16, %v8262_v23 }
 0x3eb   : > { %v3930_v3 = vsel %vm3928_vm4, %v5483_v59, %v3929_v18  ;;  %v4008_v55 = vsub.s32 32, %v4007_v31  ;;  %v4012_v53 = vsub.s32 4294967266, %v4007_v31  ;;  %v4009_v51 = vshll.u32 %v8250_v63, %v4007_v31 }
 0x3ec   : > { %v3934_v29 = vsel %vm3927_vm3, %v3930_v3, %v3933_v14  ;;  %v5007_v34 = vadd.s32 4294967169, %v4148_v27  ;;  %v4100_v60 = vadd.s32 %v4099_v40, %v4095_v17  ;;  %v4029_v25 = vadd.s32 3, %v4025_v36 }
 0x3ed   : > { %v3935_v30 = vsel %vm3924_vm0, nan, %v3934_v29  ;;  %v4010_v19 = vshrl.u32 %v3992_v28, %v4008_v55  ;;  %v4013_v43 = vadd.s32 127, %v4012_v53  ;;  %v4151_v44 = vand.u32 8388607, %v4144_v57 }
 0x3ee   : > { %4791 = vst [vmem:[%s6348_s26 + $0xb8] sm:$0xff] %v3935_v30  ;;  %v4154_v35 = vadd.s32 1, %v5007_v34  ;;  %v4101_v0 = vadd.s32 536870912, %v4100_v60  ;;  %v4252_v42 = vshrl.u32 %v4251_v32, 23  ;;  %v8295_v10 = vand.u32 3, %v4029_v25 }
 0x3ef   : > { %v4011_v61 = vor.u32 %v4010_v19, %v4009_v51  ;;  %v4014_v1 = vshll.u32 %v4013_v43, 23  ;;  %vm4042_vm9 = vcmp.lt.s32.totalorder %v7824_v15, 0  ;;  %v4096_v56 = vadd.s32 %v8261_v49, %v8275_v37 }
 0x3f0   : > { %vm4155_vm8 = vcmp.gt.s32.totalorder %v4154_v35, 0  ;;  %v4102_v54 = vshrl.u32 %v4101_v0, 30  ;;  %v4152_v45 = vor.u32 8388608, %v4151_v44  ;;  %v4248_v59 = vand.u32 2147483647, %v8211_v46 }
 0x3f1   : > { %v4015_v63 = vor.u32 4788187, %v4014_v1  ;;  %v4156_v39 = vsel %vm4155_vm8, %v4154_v35, 0  ;;  %v4018_v23 = vcvt.s32.f32 %v4011_v61  ;;  %v5011_v28 = vadd.s32 4294967169, %v4252_v42 }
 0x3f2   : > { %v4158_v20 = vand.u32 31, %v4156_v39  ;;  %v4103_v2 = vshll.u32 %v4102_v54, 30  ;;  %v4157_v13 = vshrl.u32 %v4156_v39, 5  ;;  %v4126_v16 = vsub.s32 4, %v4102_v54 }
 0x3f3   : > { %v4016_v22 = vand.u32 2147483647, %v4015_v63  ;;  %v8319_v35 = vshll.u32 %v4152_v45, 8  ;;  %v4258_v61 = vadd.s32 1, %v5011_v28  ;;  %vm8326_vm12 = vcmp.le.f32.partialorder %v4040_v48, 0.7853982 }
 0x3f4   : > { %v4159_v4 = vsub.s32 32, %v4158_v20  ;;  %v8300_v52 = vsub.s32 %v4100_v60, %v4103_v2  ;;  %v4161_v27 = vshll.u32 %v5599_v62, %v4158_v20  ;;  %v4164_v49 = vshll.u32 %v5600_v5, %v4158_v20 }
 0x3f5   : > { %v4019_v58 = vmul.f32 %v4018_v23, %v4016_v22  ;;  %v4167_v3 = vshll.u32 %v5601_v7, %v4158_v20  ;;  %v4170_v55 = vshll.u32 %v5602_v12, %v4158_v20  ;;  %v4173_v40 = vshll.u32 %v5603_v21, %v4158_v20 }
 0x3f6   : > { %v4162_v18 = vshrl.u32 %v5600_v5, %v4159_v4  ;;  %v4165_v36 = vshrl.u32 %v5601_v7, %v4159_v4  ;;  %v4106_v14 = vsub.s32 0, %v8300_v52  ;;  %v4168_v37 = vshrl.u32 %v5602_v12, %v4159_v4 }
 0x3f7   : > { %v4020_v17 = vxor.u32 2147483648, %v4019_v58  ;;  %v4171_v53 = vshrl.u32 %v5603_v21, %v4159_v4  ;;  %v4174_v43 = vshrl.u32 %v5604_v9, %v4159_v4  ;;  %v4127_v1 = vsel %vm4042_vm9, %v4126_v16, %v4102_v54 }
 0x3f8   : > { %v4163_v31 = vor.u32 %v4162_v18, %v4161_v27  ;;  %v5004_v29 = vmin.u32 %v4106_v14, %v8300_v52  ;;  %v4166_v51 = vor.u32 %v4165_v36, %v4164_v49  ;;  %v4169_v30 = vor.u32 %v4168_v37, %v4167_v3 }
 0x3f9   : > { %v4021_v32 = vsel %vm3938_vm1, %v4020_v17, %v4019_v58  ;;  %v4172_v19 = vor.u32 %v4171_v53, %v4170_v55  ;;  %v4160_v25 = vshrl.u32 %v5599_v62, %v4159_v4  ;;  %v4175_v0 = vor.u32 %v4174_v43, %v4173_v40 }
 0x3fa   : > { %v4024_v34 = vsel %vm8267_vm2, %v7820_v50, %v4021_v32  ;;  %v4108_v60 = vclz %v5004_v29  ;;  %vm4176_vm10 = vcmp.lt.s32.totalorder %v4157_v13, 1  ;;  %vm4178_vm13 = vcmp.lt.s32.totalorder %v4157_v13, 3 }
 0x3fb   : > { %5486 = vcosq.f32 %v4024_v34  ;;  %vm4179_vm11 = vcmp.lt.s32.totalorder %v4157_v13, 4  ;;  %v4184_v39 = vsel %vm4176_vm10, %v4163_v31, %v4166_v51  ;;  %v4188_v20 = vsel %vm4176_vm10, %v4166_v51, %v4169_v30 }
 0x3fc   : > { %5488 = vsinq.f32 %v4024_v34  ;;  %v5005_v44 = vadd.s32 4294967294, %v4108_v60  ;;  %v4181_v63 = vsel %vm4179_vm11, %v4169_v30, 2102212464  ;;  %v4185_v42 = vsel %vm4179_vm11, %v4172_v19, 920167782 }
 0x3fd   : > { %vm4177_vm14 = vcmp.lt.s32.totalorder %v4157_v13, 2  ;;  %v4186_v54 = vsel %vm4178_vm13, %v4169_v30, %v4185_v42  ;;  %v4189_v22 = vsel %vm4179_vm11, %v4175_v0, 1326507024  ;;  %v4180_v2 = vsel %vm4176_vm10, %v4160_v25, %v4163_v31 }
 0x3fe   : > { %vm5006_vm15 = vcmp.lt.s32.totalorder %v5005_v44, 0  ;;  %v4187_v48 = vsel %vm4177_vm14, %v4184_v39, %v4186_v54  ;;  %v4190_v45 = vsel %vm4178_vm13, %v4172_v19, %v4189_v22  ;;  %vm4031_vm1 = vcmp.lt.s32.totalorder %v8295_v10, 2 }
 0x3ff   : > { %v4111_v23 = vsel %vm5006_vm15, 0, %v5005_v44  ;;  %v4182_v28 = vsel %vm4178_vm13, %v4166_v51, %v4181_v63  ;;  %v4191_v16 = vsel %vm4177_vm14, %v4188_v20, %v4190_v45  ;;  %vm4028_vm0 = vweird.f32 %v7820_v50 }
 0x400   : > { %v4112_v4 = vsub.s32 32, %v4111_v23  ;;  %v4116_v58 = vsub.s32 4294967266, %v4111_v23  ;;  %v8338_v27 = vmul.u32.u64.low %v8319_v35, %v4191_v16  ;;  %v8339_v18 = vmul.u32.u64.high %v8319_v35, %v4191_v16, %v8338_v27 }
 0x401   : > { %v8342_v36 = vmul.u32.u64.low %v8319_v35, %v4187_v48  ;;  %v8343_v17 = vmul.u32.u64.high %v8319_v35, %v4187_v48, %v8342_v36  ;;  %v4113_v14 = vshll.u32 %v8300_v52, %v4111_v23  ;;  %vm4259_vm2 = vcmp.gt.s32.totalorder %v4258_v61, 0 }
 0x402   : > { %v4114_v49 = vshrl.u32 %v4096_v56, %v4112_v4  ;;  %v4117_v37 = vadd.s32 127, %v4116_v58  ;;  %vm4032_vm3 = vcmp.eq.s32.totalorder %v8295_v10, 0  ;;  %v4183_v31 = vsel %vm4177_vm14, %v4180_v2, %v4182_v28 }
 0x403   : > { %v4255_v3 = vand.u32 8388607, %v4248_v59  ;;  %v4260_v55 = vsel %vm4259_vm2, %v4258_v61, 0  ;;  %vm4035_vm4 = vcmp.eq.s32.totalorder %v8295_v10, 2  ;;  %v4129_v56 = vsel %vm8326_vm12, 0, %v4127_v1 }
 0x404   : > { %v4115_v32 = vor.u32 %v4114_v49, %v4113_v14  ;;  %v4118_v29 = vshll.u32 %v4117_v37, 23  ;;  %v4262_v51 = vand.u32 31, %v4260_v55  ;;  %vm4201_vm6 = vc.u32 %v8339_v18, %v8342_v36 }
 0x405   : > { %v5487_v53 = vpop.eup %5486  ;;  %v4202_v52 = vadd.s32 1, %v8343_v17  ;;  %v4199_v19 = vmul.u32 %v8319_v35, %v4183_v31  ;;  %v4256_v25 = vor.u32 8388608, %v4255_v3  ;;  %v4352_v0 = vand.u32 2147483647, %v8215_v38 }
 0x406   : > { %v5489_v40 = vpop.eup %5488  ;;  %v4036_v34 = vxor.u32 2147483648, %v5487_v53  ;;  %v4119_v30 = vor.u32 4788187, %v4118_v29  ;;  %v4263_v43 = vsub.s32 32, %v4262_v51  ;;  %v4122_v63 = vcvt.s32.f32 %v4115_v32 }
 0x407   : > { %v4033_v13 = vxor.u32 2147483648, %v5489_v40  ;;  %v4203_v61 = vsel %vm4201_vm6, %v4202_v52, %v8343_v17  ;;  %v4133_v20 = vadd.s32 3, %v4129_v56  ;;  %v8368_v48 = vshrl.u32 %v4260_v55, 5 }
 0x408   : > { %v4037_v60 = vsel %vm4035_vm4, %v4036_v34, %v5489_v40  ;;  %v4120_v44 = vand.u32 2147483647, %v4119_v30  ;;  %v4204_v39 = vadd.s32 %v4203_v61, %v4199_v19  ;;  %v4266_v35 = vshrl.u32 %v5600_v5, %v4263_v43 }
 0x409   : > { %v4034_v1 = vsel %vm4032_vm3, %v5487_v53, %v4033_v13  ;;  %v4269_v54 = vshrl.u32 %v5601_v7, %v4263_v43  ;;  %v4265_v45 = vshll.u32 %v5599_v62, %v4262_v51  ;;  %v4268_v4 = vshll.u32 %v5600_v5, %v4262_v51 }
 0x40a   : > { %v4038_v42 = vsel %vm4031_vm1, %v4034_v1, %v4037_v60  ;;  %v4123_v23 = vmul.f32 %v4122_v63, %v4120_v44  ;;  %v4205_v2 = vadd.s32 536870912, %v4204_v39  ;;  %v4272_v10 = vshrl.u32 %v5602_v12, %v4263_v43 }
 0x40b   : > { %v4039_v22 = vsel %vm4028_vm0, nan, %v4038_v42  ;;  %v4275_v58 = vshrl.u32 %v5603_v21, %v4263_v43  ;;  %v4271_v27 = vshll.u32 %v5601_v7, %v4262_v51  ;;  %v4274_v50 = vshll.u32 %v5602_v12, %v4262_v51 }
 0x40c   : > { %4792 = vst [vmem:[%s6348_s26 + $0xc0] sm:$0xff] %v4039_v22  ;;  %v4124_v28 = vxor.u32 2147483648, %v4123_v23  ;;  %v4206_v16 = vshrl.u32 %v4205_v2, 30  ;;  %v4267_v17 = vor.u32 %v4266_v35, %v4265_v45  ;;  %v4270_v14 = vor.u32 %v4269_v54, %v4268_v4 }
 0x40d   : > { %v4277_v49 = vshll.u32 %v5603_v21, %v4262_v51  ;;  %v4278_v37 = vshrl.u32 %v5604_v9, %v4263_v43  ;;  %vm4146_vm5 = vcmp.lt.s32.totalorder %v8202_v24, 0  ;;  %v4276_v55 = vor.u32 %v4275_v58, %v4274_v50 }
 0x40e   : > { %v4125_v31 = vsel %vm4042_vm9, %v4124_v28, %v4123_v23  ;;  %v4207_v3 = vshll.u32 %v4206_v16, 30  ;;  %v8382_v53 = vshll.u32 %v4256_v25, 8  ;;  %v8387_v29 = vand.u32 3, %v4133_v20 }
 0x40f   : > { %v4128_v32 = vsel %vm8326_vm12, %v7824_v15, %v4125_v31  ;;  %v4273_v40 = vor.u32 %v4272_v10, %v4271_v27  ;;  %v4279_v34 = vor.u32 %v4278_v37, %v4277_v49  ;;  %vm4280_vm7 = vcmp.lt.s32.totalorder %v8368_v48, 1 }
 0x410   : > { %5490 = vcosq.f32 %v4128_v32  ;;  %v8389_v51 = vsub.s32 %v4204_v39, %v4207_v3  ;;  %v4355_v56 = vand.u32 2139095040, %v8215_v38  ;;  %vm4281_vm8 = vcmp.lt.s32.totalorder %v8368_v48, 2 }
 0x411   : > { %5492 = vsinq.f32 %v4128_v32  ;;  %vm4283_vm9 = vcmp.lt.s32.totalorder %v8368_v48, 4  ;;  %v4288_v33 = vsel %vm4280_vm7, %v4267_v17, %v4270_v14  ;;  %vm8399_vm12 = vcmp.le.f32.partialorder %v4144_v57, 0.7853982 }
 0x412   : > { %v4210_v13 = vsub.s32 0, %v8389_v51  ;;  %v4230_v30 = vsub.s32 4, %v4206_v16  ;;  %vm4282_vm10 = vcmp.lt.s32.totalorder %v8368_v48, 3  ;;  %v4289_v19 = vsel %vm4283_vm9, %v4276_v55, 920167782 }
 0x413   : > { %v4285_v60 = vsel %vm4283_vm9, %v4273_v40, 2102212464  ;;  %v4290_v61 = vsel %vm4282_vm10, %v4273_v40, %v4289_v19  ;;  %v4292_v25 = vsel %vm4280_vm7, %v4270_v14, %v4273_v40  ;;  %v4293_v1 = vsel %vm4283_vm9, %v4279_v34, 1326507024 }
 0x414   : > { %v5008_v44 = vmin.u32 %v4210_v13, %v8389_v51  ;;  %v4264_v57 = vshrl.u32 %v5599_v62, %v4263_v43  ;;  %v4291_v63 = vsel %vm4281_vm8, %v4288_v33, %v4290_v61  ;;  %v4294_v39 = vsel %vm4282_vm10, %v4276_v55, %v4293_v1 }
 0x415   : > { %v4295_v42 = vsel %vm4281_vm8, %v4292_v25, %v4294_v39  ;;  %v8418_v20 = vmul.u32.u64.low %v8382_v53, %v4291_v63  ;;  %v8419_v35 = vmul.u32.u64.high %v8382_v53, %v4291_v63, %v8418_v20  ;;  %v4356_v54 = vshrl.u32 %v4355_v56, 23 }
 0x416   : > { %vm4135_vm13 = vcmp.lt.s32.totalorder %v8387_v29, 2  ;;  %v4212_v22 = vclz %v5008_v44  ;;  %v4284_v43 = vsel %vm4280_vm7, %v4264_v57, %v4267_v17  ;;  %v4286_v23 = vsel %vm4282_vm10, %v4270_v14, %v4285_v60 }
 0x417   : > { %vm4132_vm11 = vweird.f32 %v7824_v15  ;;  %v4231_v2 = vsel %vm4146_vm5, %v4230_v30, %v4206_v16  ;;  %v8431_v45 = vmul.u32.u64.low %v8382_v53, %v4295_v42  ;;  %v8432_v4 = vmul.u32.u64.high %v8382_v53, %v4295_v42, %v8431_v45 }
 0x418   : > { %v5015_v10 = vadd.s32 4294967169, %v4356_v54  ;;  %v5009_v58 = vadd.s32 4294967294, %v4212_v22  ;;  %v8436_v28 = vadd.f32 %v7991_v47, %v8001_v41  ;;  %v8440_v27 = vadd.f32 %v8085_v8, %v8095_v6 }
 0x419   : > { %v8444_v50 = vadd.f32 %v8180_v11, %v8184_v26  ;;  %vm4136_vm15 = vcmp.eq.s32.totalorder %v8387_v29, 0  ;;  %v4287_v16 = vsel %vm4281_vm8, %v4284_v43, %v4286_v23  ;;  %v4306_v17 = vadd.s32 1, %v8419_v35 }
 0x41a   : > { %v4362_v14 = vadd.s32 1, %v5015_v10  ;;  %v5491_v49 = vpop.eup %5490  ;;  %vm4139_vm14 = vcmp.eq.s32.totalorder %v8387_v29, 2  ;;  %v4200_v47 = vadd.s32 %v8342_v36, %v8339_v18  ;;  %vm5010_vm1 = vcmp.lt.s32.totalorder %v5009_v58, 0 }
 0x41b   : > { %v4359_v41 = vand.u32 8388607, %v4352_v0  ;;  %v5493_v8 = vpop.eup %5492  ;;  %v4140_v6 = vxor.u32 2147483648, %v5491_v49  ;;  %v4215_v11 = vsel %vm5010_vm1, 0, %v5009_v58  ;;  %v4233_v26 = vsel %vm8399_vm12, 0, %v4231_v2 }
 0x41c   : > { %vm4305_vm0 = vc.u32 %v8432_v4, %v8418_v20  ;;  %v4137_v48 = vxor.u32 2147483648, %v5493_v8  ;;  %v4216_v37 = vsub.s32 32, %v4215_v11  ;;  %v4220_v31 = vsub.s32 4294967266, %v4215_v11 }
 0x41d   : > { %v4303_v3 = vmul.u32 %v8382_v53, %v4287_v16  ;;  %v4141_v55 = vsel %vm4139_vm14, %v4140_v6, %v5493_v8  ;;  %v4217_v18 = vshll.u32 %v8389_v51, %v4215_v11  ;;  %v4307_v36 = vsel %vm4305_vm0, %v4306_v17, %v8419_v35 }
 0x41e   : > { %vm4363_vm2 = vcmp.gt.s32.totalorder %v4362_v14, 0  ;;  %v4138_v32 = vsel %vm4136_vm15, %v5491_v49, %v4137_v48  ;;  %v4218_v40 = vshrl.u32 %v4200_v47, %v4216_v37  ;;  %v4221_v34 = vadd.s32 127, %v4220_v31 }
 0x41f   : > { %v4308_v56 = vadd.s32 %v4307_v36, %v4303_v3  ;;  %v4142_v33 = vsel %vm4135_vm13, %v4138_v32, %v4141_v55  ;;  %v4237_v13 = vadd.s32 3, %v4233_v26  ;;  %v4360_v30 = vor.u32 8388608, %v4359_v41 }
 0x420   : > { %v4364_v19 = vsel %vm4363_vm2, %v4362_v14, 0  ;;  %v4143_v53 = vsel %vm4132_vm11, nan, %v4142_v33  ;;  %v4219_v60 = vor.u32 %v4218_v40, %v4217_v18  ;;  %v4222_v51 = vshll.u32 %v4221_v34, 23 }
 0x421   : > { %v4309_v61 = vadd.s32 536870912, %v4308_v56  ;;  %4793 = vst [vmem:[%s6348_s26 + $0xc8] sm:$0xff] %v4143_v53  ;;  %v4366_v25 = vand.u32 31, %v4364_v19  ;;  %v4459_v1 = vand.u32 2139095040, %v8436_v28  ;;  %v8470_v63 = vand.u32 3, %v4237_v13 }
 0x422   : > { %v4223_v44 = vor.u32 4788187, %v4222_v51  ;;  %v4226_v42 = vcvt.s32.f32 %v4219_v60  ;;  %v8472_v54 = vshll.u32 %v4360_v30, 8  ;;  %v4304_v16 = vadd.s32 %v8418_v20, %v8432_v4 }
 0x423   : > { %v4310_v57 = vshrl.u32 %v4309_v61, 30  ;;  %v4367_v39 = vsub.s32 32, %v4366_v25  ;;  %v4460_v23 = vshrl.u32 %v4459_v1, 23  ;;  %v4369_v10 = vshll.u32 %v5599_v62, %v4366_v25 }
 0x424   : > { %v4224_v29 = vand.u32 2147483647, %v4223_v44  ;;  %v4365_v17 = vshrl.u32 %v4364_v19, 5  ;;  %v4372_v14 = vshll.u32 %v5600_v5, %v4366_v25  ;;  %v4375_v49 = vshll.u32 %v5601_v7, %v4366_v25 }
 0x425   : > { %v4311_v35 = vshll.u32 %v4310_v57, 30  ;;  %v4370_v15 = vshrl.u32 %v5600_v5, %v4367_v39  ;;  %v4373_v22 = vshrl.u32 %v5601_v7, %v4367_v39  ;;  %v4376_v43 = vshrl.u32 %v5602_v12, %v4367_v39 }
 0x426   : > { %v4227_v2 = vmul.f32 %v4226_v42, %v4224_v29  ;;  %v4379_v58 = vshrl.u32 %v5603_v21, %v4367_v39  ;;  %v4378_v6 = vshll.u32 %v5602_v12, %v4366_v25  ;;  %vm4250_vm3 = vcmp.lt.s32.totalorder %v8211_v46, 0 }
 0x427   : > { %v8477_v45 = vsub.s32 %v4308_v56, %v4311_v35  ;;  %v4371_v8 = vor.u32 %v4370_v15, %v4369_v10  ;;  %v4374_v11 = vor.u32 %v4373_v22, %v4372_v14  ;;  %v4377_v26 = vor.u32 %v4376_v43, %v4375_v49 }
 0x428   : > { %v4228_v47 = vxor.u32 2147483648, %v4227_v2  ;;  %v4381_v48 = vshll.u32 %v5603_v21, %v4366_v25  ;;  %v4382_v37 = vshrl.u32 %v5604_v9, %v4367_v39  ;;  %v4380_v31 = vor.u32 %v4379_v58, %v4378_v6 }
 0x429   : > { %v4314_v41 = vsub.s32 0, %v8477_v45  ;;  %v5019_v3 = vadd.s32 4294967169, %v4460_v23  ;;  %v4334_v18 = vsub.s32 4, %v4310_v57  ;;  %v4368_v36 = vshrl.u32 %v5599_v62, %v4367_v39 }
 0x42a   : > { %v4229_v20 = vsel %vm4146_vm5, %v4228_v47, %v4227_v2  ;;  %v4383_v32 = vor.u32 %v4382_v37, %v4381_v48  ;;  %vm4384_vm4 = vcmp.lt.s32.totalorder %v4365_v17, 1  ;;  %vm4387_vm6 = vcmp.lt.s32.totalorder %v4365_v17, 4 }
 0x42b   : > { %v5012_v4 = vmin.u32 %v4314_v41, %v8477_v45  ;;  %v4232_v55 = vsel %vm8399_vm12, %v8202_v24, %v4229_v20  ;;  %vm4385_vm7 = vcmp.lt.s32.totalorder %v4365_v17, 2  ;;  %v4389_v34 = vsel %vm4387_vm6, %v4377_v26, 2102212464 }
 0x42c   : > { %5494 = vcosq.f32 %v4232_v55  ;;  %v4392_v56 = vsel %vm4384_vm4, %v4371_v8, %v4374_v11  ;;  %vm4386_vm5 = vcmp.lt.s32.totalorder %v4365_v17, 3  ;;  %v4393_v13 = vsel %vm4387_vm6, %v4380_v31, 920167782 }
 0x42d   : > { %v4316_v40 = vclz %v5012_v4  ;;  %5496 = vsinq.f32 %v4232_v55  ;;  %v4396_v30 = vsel %vm4384_vm4, %v4374_v11, %v4377_v26  ;;  %v4388_v19 = vsel %vm4384_vm4, %v4368_v36, %v4371_v8 }
 0x42e   : > { %v4394_v53 = vsel %vm4386_vm5, %v4377_v26, %v4393_v13  ;;  %v4397_v52 = vsel %vm4387_vm6, %v4383_v32, 1326507024  ;;  %v4466_v60 = vadd.s32 1, %v5019_v3  ;;  %v4390_v51 = vsel %vm4386_vm5, %v4374_v11, %v4389_v34 }
 0x42f   : > { %v5013_v33 = vadd.s32 4294967294, %v4316_v40  ;;  %v4395_v61 = vsel %vm4385_vm7, %v4392_v56, %v4394_v53  ;;  %v4398_v25 = vsel %vm4386_vm5, %v4380_v31, %v4397_v52  ;;  %v4335_v15 = vsel %vm4250_vm3, %v4334_v18, %v4310_v57 }
 0x430   : > { %v4399_v44 = vsel %vm4385_vm7, %v4396_v30, %v4398_v25  ;;  %v8500_v39 = vmul.u32.u64.low %v8472_v54, %v4395_v61  ;;  %v8501_v29 = vmul.u32.u64.high %v8472_v54, %v4395_v61, %v8500_v39  ;;  %vm4467_vm9 = vcmp.gt.s32.totalorder %v4466_v60, 0 }
 0x431   : > { %vm5014_vm8 = vcmp.lt.s32.totalorder %v5013_v33, 0  ;;  %vm4236_vm12 = vweird.f32 %v8202_v24  ;;  %v4391_v22 = vsel %vm4385_vm7, %v4388_v19, %v4390_v51  ;;  %v4468_v2 = vsel %vm4467_vm9, %v4466_v60, 0 }
 0x432   : > { %v4319_v1 = vsel %vm5014_vm8, 0, %v5013_v33  ;;  %v8509_v43 = vmul.u32.u64.low %v8472_v54, %v4399_v44  ;;  %v8510_v23 = vmul.u32.u64.high %v8472_v54, %v4399_v44, %v8509_v43  ;;  %v4470_v49 = vand.u32 31, %v4468_v2 }
 0x433   : > { %v4320_v42 = vsub.s32 32, %v4319_v1  ;;  %v4324_v35 = vsub.s32 4294967266, %v4319_v1  ;;  %v4321_v10 = vshll.u32 %v8477_v45, %v4319_v1  ;;  %vm4239_vm10 = vcmp.lt.s32.totalorder %v8470_v63, 2 }
 0x434   : > { %vm8516_vm13 = vcmp.le.f32.partialorder %v4248_v59, 0.7853982  ;;  %v4410_v17 = vadd.s32 1, %v8501_v29  ;;  %v4456_v47 = vand.u32 2147483647, %v8436_v28  ;;  %vm4240_vm11 = vcmp.eq.s32.totalorder %v8470_v63, 0 }
 0x435   : > { %v4322_v58 = vshrl.u32 %v4304_v16, %v4320_v42  ;;  %v4325_v14 = vadd.s32 127, %v4324_v35  ;;  %v4337_v16 = vsel %vm8516_vm13, 0, %v4335_v15  ;;  %v4407_v26 = vmul.u32 %v8472_v54, %v4391_v22 }
 0x436   : > { %v5495_v41 = vpop.eup %5494  ;;  %vm4409_vm15 = vc.u32 %v8510_v23, %v8500_v39  ;;  %v4471_v59 = vsub.s32 32, %v4470_v49  ;;  %vm4243_vm14 = vcmp.eq.s32.totalorder %v8470_v63, 2  ;;  %v4341_v31 = vadd.s32 3, %v4337_v16 }
 0x437   : > { %v4323_v8 = vor.u32 %v4322_v58, %v4321_v10  ;;  %v4326_v45 = vshll.u32 %v4325_v14, 23  ;;  %v5497_v6 = vpop.eup %5496  ;;  %v4244_v11 = vxor.u32 2147483648, %v5495_v41  ;;  %v4411_v20 = vsel %vm4409_vm15, %v4410_v17, %v8501_v29 }
 0x438   : > { %v4241_v48 = vxor.u32 2147483648, %v5497_v6  ;;  %v4412_v3 = vadd.s32 %v4411_v20, %v4407_v26  ;;  %v4463_v55 = vand.u32 8388607, %v4456_v47  ;;  %v8534_v32 = vshrl.u32 %v4468_v2, 5 }
 0x439   : > { %v4327_v37 = vor.u32 4788187, %v4326_v45  ;;  %v4245_v4 = vsel %vm4243_vm14, %v4244_v11, %v5497_v6  ;;  %v4330_v36 = vcvt.s32.f32 %v4323_v8  ;;  %v4474_v56 = vshrl.u32 %v5600_v5, %v4471_v59 }
 0x43a   : > { %v4242_v54 = vsel %vm4240_vm11, %v5495_v41, %v4241_v48  ;;  %v4413_v34 = vadd.s32 536870912, %v4412_v3  ;;  %v4477_v33 = vshrl.u32 %v5601_v7, %v4471_v59  ;;  %v4473_v19 = vshll.u32 %v5599_v62, %v4470_v49 }
 0x43b   : > { %v4328_v18 = vand.u32 2147483647, %v4327_v37  ;;  %v4246_v40 = vsel %vm4239_vm10, %v4242_v54, %v4245_v4  ;;  %v4480_v53 = vshrl.u32 %v5602_v12, %v4471_v59  ;;  %v4476_v60 = vshll.u32 %v5600_v5, %v4470_v49 }
 0x43c   : > { %v4247_v13 = vsel %vm4236_vm12, nan, %v4246_v40  ;;  %v4414_v52 = vshrl.u32 %v4413_v34, 30  ;;  %v4479_v63 = vshll.u32 %v5601_v7, %v4470_v49  ;;  %v4483_v51 = vshrl.u32 %v5603_v21, %v4471_v59 }
 0x43d   : > { %v4331_v30 = vmul.f32 %v4330_v36, %v4328_v18  ;;  %4794 = vst [vmem:[%s6348_s26 + $0xd0] sm:$0xff] %v4247_v13  ;;  %v4482_v25 = vshll.u32 %v5602_v12, %v4470_v49  ;;  %v4485_v1 = vshll.u32 %v5603_v21, %v4470_v49  ;;  %v4486_v24 = vshrl.u32 %v5604_v9, %v4471_v59 }
 0x43e   : > { %v4415_v44 = vshll.u32 %v4414_v52, 30  ;;  %v4464_v29 = vor.u32 8388608, %v4463_v55  ;;  %v4475_v42 = vor.u32 %v4474_v56, %v4473_v19  ;;  %v4478_v35 = vor.u32 %v4477_v33, %v4476_v60 }
 0x43f   : > { %v4332_v61 = vxor.u32 2147483648, %v4331_v30  ;;  %v4481_v22 = vor.u32 %v4480_v53, %v4479_v63  ;;  %v4484_v43 = vor.u32 %v4483_v51, %v4482_v25  ;;  %v4487_v2 = vor.u32 %v4486_v24, %v4485_v1 }
 0x440   : > { %v8556_v58 = vand.u32 3, %v4341_v31  ;;  %v8558_v14 = vsub.s32 %v4412_v3, %v4415_v44  ;;  %v4563_v49 = vand.u32 2139095040, %v8440_v27  ;;  %v4472_v17 = vshrl.u32 %v5599_v62, %v4471_v59 }
 0x441   : > { %v4333_v15 = vsel %vm4250_vm3, %v4332_v61, %v4331_v30  ;;  %vm4488_vm1 = vcmp.lt.s32.totalorder %v8534_v32, 1  ;;  %vm4490_vm0 = vcmp.lt.s32.totalorder %v8534_v32, 3  ;;  %vm4491_vm2 = vcmp.lt.s32.totalorder %v8534_v32, 4 }
 0x442   : > { %v4336_v10 = vsel %vm8516_vm13, %v8211_v46, %v4333_v15  ;;  %v4418_v41 = vsub.s32 0, %v8558_v14  ;;  %v4496_v57 = vsel %vm4488_vm1, %v4475_v42, %v4478_v35  ;;  %v4493_v8 = vsel %vm4491_vm2, %v4481_v22, 2102212464 }
 0x443   : > { %5498 = vcosq.f32 %v4336_v10  ;;  %v4497_v45 = vsel %vm4491_vm2, %v4484_v43, 920167782  ;;  %v4500_v16 = vsel %vm4488_vm1, %v4478_v35, %v4481_v22  ;;  %v4501_v6 = vsel %vm4491_vm2, %v4487_v2, 1326507024 }
 0x444   : > { %5500 = vsinq.f32 %v4336_v10  ;;  %v5016_v11 = vmin.u32 %v4418_v41, %v8558_v14  ;;  %vm4489_vm3 = vcmp.lt.s32.totalorder %v8534_v32, 2  ;;  %v4498_v26 = vsel %vm4490_vm0, %v4481_v22, %v4497_v45 }
 0x445   : > { %v4502_v59 = vsel %vm4490_vm0, %v4484_v43, %v4501_v6  ;;  %v4499_v48 = vsel %vm4489_vm3, %v4496_v57, %v4498_v26  ;;  %v4504_v20 = vshll.u32 %v4464_v29, 8  ;;  %v4564_v4 = vshrl.u32 %v4563_v49, 23 }
 0x446   : > { %v4503_v37 = vsel %vm4489_vm3, %v4500_v16, %v4502_v59  ;;  %v4420_v31 = vclz %v5016_v11  ;;  %v4438_v3 = vsub.s32 4, %v4414_v52  ;;  %v4492_v55 = vsel %vm4488_vm1, %v4472_v17, %v4475_v42 }
 0x447   : > { %v4494_v54 = vsel %vm4490_vm0, %v4478_v35, %v4493_v8  ;;  %v8584_v18 = vmul.u32.u64.low %v4504_v20, %v4503_v37  ;;  %v8585_v36 = vmul.u32.u64.high %v4504_v20, %v4503_v37, %v8584_v18  ;;  %vm4340_vm4 = vweird.f32 %v8211_v46 }
 0x448   : > { %v8587_v40 = vmul.u32.u64.low %v4504_v20, %v4499_v48  ;;  %v8588_v34 = vmul.u32.u64.high %v4504_v20, %v4499_v48, %v8587_v40  ;;  %v5017_v56 = vadd.s32 4294967294, %v4420_v31  ;;  %v5023_v33 = vadd.s32 4294967169, %v4564_v4 }
 0x449   : > { %vm4344_vm6 = vcmp.eq.s32.totalorder %v8556_v58, 0  ;;  %vm4347_vm7 = vcmp.eq.s32.totalorder %v8556_v58, 2  ;;  %vm4354_vm5 = vcmp.lt.s32.totalorder %v8215_v38, 0  ;;  %v4495_v13 = vsel %vm4489_vm3, %v4492_v55, %v4494_v54 }
 0x44a   : > { %v4408_v30 = vadd.s32 %v8500_v39, %v8510_v23  ;;  %vm5018_vm8 = vcmp.lt.s32.totalorder %v5017_v56, 0  ;;  %v4560_v19 = vand.u32 2147483647, %v8440_v27  ;;  %v4570_v53 = vadd.s32 1, %v5023_v33 }
 0x44b   : > { %v4423_v63 = vsel %vm5018_vm8, 0, %v5017_v56  ;;  %v4439_v51 = vsel %vm4354_vm5, %v4438_v3, %v4414_v52  ;;  %vm4513_vm9 = vc.u32 %v8585_v36, %v8587_v40  ;;  %v4514_v61 = vadd.s32 1, %v8588_v34 }
 0x44c   : > { %v4424_v1 = vsub.s32 32, %v4423_v63  ;;  %v4428_v24 = vsub.s32 4294967266, %v4423_v63  ;;  %v4511_v44 = vmul.u32 %v4504_v20, %v4495_v13  ;;  %v4425_v23 = vshll.u32 %v8558_v14, %v4423_v63 }
 0x44d   : > { %v5499_v60 = vpop.eup %5498  ;;  %v4515_v29 = vsel %vm4513_vm9, %v4514_v61, %v8588_v34  ;;  %vm4571_vm12 = vcmp.gt.s32.totalorder %v4570_v53, 0  ;;  %vm4343_vm10 = vcmp.lt.s32.totalorder %v8556_v58, 2  ;;  %vm8614_vm13 = vcmp.le.f32.partialorder %v4352_v0, 0.7853982 }
 0x44e   : > { %v5501_v25 = vpop.eup %5500  ;;  %v4348_v32 = vxor.u32 2147483648, %v5499_v60  ;;  %v4426_v52 = vshrl.u32 %v4408_v30, %v4424_v1  ;;  %v4429_v35 = vadd.s32 127, %v4428_v24  ;;  %v4516_v15 = vadd.s32 %v4515_v29, %v4511_v44 }
 0x44f   : > { %v4345_v39 = vxor.u32 2147483648, %v5501_v25  ;;  %v4572_v2 = vsel %vm4571_vm12, %v4570_v53, 0  ;;  %v4441_v57 = vsel %vm8614_vm13, 0, %v4439_v51  ;;  %v4567_v58 = vand.u32 8388607, %v4560_v19 }
 0x450   : > { %v4349_v42 = vsel %vm4347_vm7, %v4348_v32, %v5501_v25  ;;  %v4427_v14 = vor.u32 %v4426_v52, %v4425_v23  ;;  %v4430_v49 = vshll.u32 %v4429_v35, 23  ;;  %v4517_v17 = vadd.s32 536870912, %v4516_v15 }
 0x451   : > { %v4346_v22 = vsel %vm4344_vm6, %v5499_v60, %v4345_v39  ;;  %v4574_v8 = vand.u32 31, %v4572_v2  ;;  %v4667_v6 = vand.u32 2139095040, %v8444_v50  ;;  %v4445_v59 = vadd.s32 3, %v4441_v57 }
 0x452   : > { %v4350_v10 = vsel %vm4343_vm10, %v4346_v22, %v4349_v42  ;;  %v4431_v0 = vor.u32 4788187, %v4430_v49  ;;  %v8625_v45 = vshrl.u32 %v4517_v17, 30  ;;  %v4434_v26 = vcvt.s32.f32 %v4427_v14 }
 0x453   : > { %v4351_v41 = vsel %vm4340_vm4, nan, %v4350_v10  ;;  %v4575_v16 = vsub.s32 32, %v4574_v8  ;;  %v4568_v48 = vor.u32 8388608, %v4567_v58  ;;  %v4577_v55 = vshll.u32 %v5599_v62, %v4574_v8 }
 0x454   : > { %4795 = vst [vmem:[%s6348_s26 + $0xd8] sm:$0xff] %v4351_v41  ;;  %v4432_v11 = vand.u32 2147483647, %v4431_v0  ;;  %v4519_v46 = vshll.u32 %v8625_v45, 30  ;;  %v4573_v18 = vshrl.u32 %v4572_v2, 5  ;;  %v4580_v34 = vshll.u32 %v5600_v5, %v4574_v8 }
 0x455   : > { %v4578_v37 = vshrl.u32 %v5600_v5, %v4575_v16  ;;  %v4581_v20 = vshrl.u32 %v5601_v7, %v4575_v16  ;;  %v4584_v4 = vshrl.u32 %v5602_v12, %v4575_v16  ;;  %v4587_v54 = vshrl.u32 %v5603_v21, %v4575_v16 }
 0x456   : > { %v4435_v31 = vmul.f32 %v4434_v26, %v4432_v11  ;;  %v8632_v3 = vsub.s32 %v4516_v15, %v4519_v46  ;;  %v4583_v56 = vshll.u32 %v5601_v7, %v4574_v8  ;;  %v4668_v33 = vshrl.u32 %v4667_v6, 23 }
 0x457   : > { %v4579_v53 = vor.u32 %v4578_v37, %v4577_v55  ;;  %v4586_v60 = vshll.u32 %v5602_v12, %v4574_v8  ;;  %v4582_v63 = vor.u32 %v4581_v20, %v4580_v34  ;;  %v4589_v61 = vshll.u32 %v5603_v21, %v4574_v8 }
 0x458   : > { %v4436_v13 = vxor.u32 2147483648, %v4435_v31  ;;  %v4522_v30 = vsub.s32 0, %v8632_v3  ;;  %v4585_v51 = vor.u32 %v4584_v4, %v4583_v56  ;;  %v4590_v25 = vshrl.u32 %v5604_v9, %v4575_v16 }
 0x459   : > { %v8644_v1 = vand.u32 3, %v4445_v59  ;;  %v4588_v44 = vor.u32 %v4587_v54, %v4586_v60  ;;  %v4608_v29 = vshll.u32 %v4568_v48, 8  ;;  %v5027_v42 = vadd.s32 4294967169, %v4668_v33 }
 0x45a   : > { %v4437_v32 = vsel %vm4354_vm5, %v4436_v13, %v4435_v31  ;;  %v5020_v24 = vmin.u32 %v4522_v30, %v8632_v3  ;;  %v4591_v23 = vor.u32 %v4590_v25, %v4589_v61  ;;  %vm4592_vm11 = vcmp.lt.s32.totalorder %v4573_v18, 1 }
 0x45b   : > { %v4440_v39 = vsel %vm8614_vm13, %v8215_v38, %v4437_v32  ;;  %vm4595_vm15 = vcmp.lt.s32.totalorder %v4573_v18, 4  ;;  %v4576_v35 = vshrl.u32 %v5599_v62, %v4575_v16  ;;  %v4600_v22 = vsel %vm4592_vm11, %v4579_v53, %v4582_v63 }
 0x45c   : > { %5502 = vcosq.f32 %v4440_v39  ;;  %v4524_v52 = vclz %v5020_v24  ;;  %v4597_v15 = vsel %vm4595_vm15, %v4585_v51, 2102212464  ;;  %vm4594_vm14 = vcmp.lt.s32.totalorder %v4573_v18, 3 }
 0x45d   : > { %5504 = vsinq.f32 %v4440_v39  ;;  %v4601_v10 = vsel %vm4595_vm15, %v4588_v44, 920167782  ;;  %v4604_v14 = vsel %vm4592_vm11, %v4582_v63, %v4585_v51  ;;  %vm4593_vm1 = vcmp.lt.s32.totalorder %v4573_v18, 2 }
 0x45e   : > { %v5021_v2 = vadd.s32 4294967294, %v4524_v52  ;;  %v4596_v49 = vsel %vm4592_vm11, %v4576_v35, %v4579_v53  ;;  %v4602_v43 = vsel %vm4594_vm14, %v4585_v51, %v4601_v10  ;;  %v4605_v17 = vsel %vm4595_vm15, %v4591_v23, 1326507024 }
 0x45f   : > { %v4598_v41 = vsel %vm4594_vm14, %v4582_v63, %v4597_v15  ;;  %v4603_v57 = vsel %vm4593_vm1, %v4600_v22, %v4602_v43  ;;  %v4606_v58 = vsel %vm4594_vm14, %v4588_v44, %v4605_v17  ;;  %v4512_v11 = vadd.s32 %v8587_v40, %v8585_v36 }
 0x460   : > { %vm5022_vm0 = vcmp.lt.s32.totalorder %v5021_v2, 0  ;;  %v4607_v0 = vsel %vm4593_vm1, %v4604_v14, %v4606_v58  ;;  %v8653_v6 = vmul.u32.u64.low %v4608_v29, %v4603_v57  ;;  %v8654_v16 = vmul.u32.u64.high %v4608_v29, %v4603_v57, %v8653_v6 }
 0x461   : > { %v4527_v8 = vsel %vm5022_vm0, 0, %v5021_v2  ;;  %v4674_v46 = vadd.s32 1, %v5027_v42  ;;  %vm4444_vm2 = vweird.f32 %v8215_v38  ;;  %vm4458_vm3 = vcmp.lt.s32.totalorder %v8436_v28, 0 }
 0x462   : > { %v4528_v26 = vsub.s32 32, %v4527_v8  ;;  %v4532_v59 = vsub.s32 4294967266, %v4527_v8  ;;  %v4599_v48 = vsel %vm4593_vm1, %v4596_v49, %v4598_v41  ;;  %v4529_v4 = vshll.u32 %v8632_v3, %v4527_v8 }
 0x463   : > { %v8662_v37 = vmul.u32.u64.low %v4608_v29, %v4607_v0  ;;  %v8663_v20 = vmul.u32.u64.high %v4608_v29, %v4607_v0, %v8662_v37  ;;  %vm4675_vm4 = vcmp.gt.s32.totalorder %v4674_v46, 0  ;;  %vm8668_vm6 = vcmp.le.f32.partialorder %v4456_v47, 0.7853982 }
 0x464   : > { %v4530_v31 = vshrl.u32 %v4512_v11, %v4528_v26  ;;  %v4533_v55 = vadd.s32 127, %v4532_v59  ;;  %v4542_v40 = vsub.s32 4, %v8625_v45  ;;  %v4618_v54 = vadd.s32 1, %v8654_v16 }
 0x465   : > { %v4676_v18 = vsel %vm4675_vm4, %v4674_v46, 0  ;;  %vm4448_vm7 = vcmp.eq.s32.totalorder %v8644_v1, 0  ;;  %v4615_v53 = vmul.u32 %v4608_v29, %v4599_v48  ;;  %vm4617_vm5 = vc.u32 %v8663_v20, %v8653_v6 }
 0x466   : > { %v5503_v34 = vpop.eup %5502  ;;  %v4531_v56 = vor.u32 %v4530_v31, %v4529_v4  ;;  %v4534_v33 = vshll.u32 %v4533_v55, 23  ;;  %v4678_v3 = vand.u32 31, %v4676_v18  ;;  %v4664_v47 = vand.u32 2147483647, %v8444_v50 }
 0x467   : > { %v5505_v13 = vpop.eup %5504  ;;  %v4452_v30 = vxor.u32 2147483648, %v5503_v34  ;;  %vm4451_vm8 = vcmp.eq.s32.totalorder %v8644_v1, 2  ;;  %v4619_v51 = vsel %vm4617_vm5, %v4618_v54, %v8654_v16  ;;  %v4543_v25 = vsel %vm4458_vm3, %v4542_v40, %v8625_v45 }
 0x468   : > { %v4449_v60 = vxor.u32 2147483648, %v5505_v13  ;;  %v4535_v63 = vor.u32 4788187, %v4534_v33  ;;  %v4620_v32 = vadd.s32 %v4619_v51, %v4615_v53  ;;  %v4679_v24 = vsub.s32 32, %v4678_v3 }
 0x469   : > { %v4453_v61 = vsel %vm4451_vm8, %v4452_v30, %v5505_v13  ;;  %vm4447_vm9 = vcmp.lt.s32.totalorder %v8644_v1, 2  ;;  %v4538_v23 = vcvt.s32.f32 %v4531_v56  ;;  %v4671_v52 = vand.u32 8388607, %v4664_v47 }
 0x46a   : > { %v4450_v44 = vsel %vm4448_vm7, %v5503_v34, %v4449_v60  ;;  %v4536_v39 = vand.u32 2147483647, %v4535_v63  ;;  %v4621_v42 = vadd.s32 536870912, %v4620_v32  ;;  %v4682_v35 = vshrl.u32 %v5600_v5, %v4679_v24 }
 0x46b   : > { %v4454_v29 = vsel %vm4447_vm9, %v4450_v44, %v4453_v61  ;;  %v4545_v22 = vsel %vm8668_vm6, 0, %v4543_v25  ;;  %v4685_v2 = vshrl.u32 %v5601_v7, %v4679_v24  ;;  %v4681_v10 = vshll.u32 %v5599_v62, %v4678_v3 }
 0x46c   : > { %v4455_v15 = vsel %vm4444_vm2, nan, %v4454_v29  ;;  %v4539_v45 = vmul.f32 %v4538_v23, %v4536_v39  ;;  %v8695_v1 = vshrl.u32 %v4621_v42, 30  ;;  %v4688_v14 = vshrl.u32 %v5602_v12, %v4679_v24 }
 0x46d   : > { %4796 = vst [vmem:[%s6348_s26 + $0xe0] sm:$0xff] %v4455_v15  ;;  %v4691_v49 = vshrl.u32 %v5603_v21, %v4679_v24  ;;  %v4677_v17 = vshrl.u32 %v4676_v18, 5  ;;  %v4684_v38 = vshll.u32 %v5600_v5, %v4678_v3  ;;  %v4690_v41 = vshll.u32 %v5602_v12, %v4678_v3 }
 0x46e   : > { %v4540_v43 = vxor.u32 2147483648, %v4539_v45  ;;  %v4623_v57 = vshll.u32 %v8695_v1, 30  ;;  %v4683_v58 = vor.u32 %v4682_v35, %v4681_v10  ;;  %v4687_v8 = vshll.u32 %v5601_v7, %v4678_v3 }
 0x46f   : > { %v4694_v0 = vshrl.u32 %v5604_v9, %v4679_v24  ;;  %v4686_v11 = vor.u32 %v4685_v2, %v4684_v38  ;;  %v4692_v26 = vor.u32 %v4691_v49, %v4690_v41  ;;  %v4693_v59 = vshll.u32 %v5603_v21, %v4678_v3 }
 0x470   : > { %v4541_v16 = vsel %vm4458_vm3, %v4540_v43, %v4539_v45  ;;  %v4624_v46 = vsub.s32 %v4620_v32, %v4623_v57  ;;  %v4689_v12 = vor.u32 %v4688_v14, %v4687_v8  ;;  %v4549_v48 = vadd.s32 3, %v4545_v22 }
 0x471   : > { %v4544_v5 = vsel %vm8668_vm6, %v8436_v28, %v4541_v16  ;;  %v4672_v37 = vor.u32 8388608, %v4671_v52  ;;  %v4695_v4 = vor.u32 %v4694_v0, %v4693_v59  ;;  %vm4696_vm12 = vcmp.lt.s32.totalorder %v4677_v17, 1 }
 0x472   : > { %5506 = vcosq.f32 %v4544_v5  ;;  %v4626_v7 = vsub.s32 0, %v4624_v46  ;;  %vm4699_vm10 = vcmp.lt.s32.totalorder %v4677_v17, 4  ;;  %v4680_v9 = vshrl.u32 %v5599_v62, %v4679_v24 }
 0x473   : > { %5508 = vsinq.f32 %v4544_v5  ;;  %vm4698_vm13 = vcmp.lt.s32.totalorder %v4677_v17, 3  ;;  %v4704_v31 = vsel %vm4696_vm12, %v4683_v58, %v4686_v11  ;;  %v4705_v21 = vsel %vm4699_vm10, %v4692_v26, 920167782 }
 0x474   : > { %v5024_v55 = vmin.u32 %v4626_v7, %v4624_v46  ;;  %vm4697_vm11 = vcmp.lt.s32.totalorder %v4677_v17, 2  ;;  %v4701_v36 = vsel %vm4699_vm10, %v4689_v12, 2102212464  ;;  %v4706_v40 = vsel %vm4698_vm13, %v4689_v12, %v4705_v21 }
 0x475   : > { %v4707_v54 = vsel %vm4697_vm11, %v4704_v31, %v4706_v40  ;;  %v4708_v18 = vsel %vm4696_vm12, %v4686_v11, %v4689_v12  ;;  %v4709_v34 = vsel %vm4699_vm10, %v4695_v4, 1326507024  ;;  %v4712_v56 = vshll.u32 %v4672_v37, 8 }
 0x476   : > { %v4550_v33 = vand.u32 3, %v4549_v48  ;;  %v4628_v3 = vclz %v5024_v55  ;;  %v4700_v13 = vsel %vm4696_vm12, %v4680_v9, %v4683_v58  ;;  %v4702_v30 = vsel %vm4698_vm13, %v4686_v11, %v4701_v36 }
 0x477   : > { %v4710_v62 = vsel %vm4698_vm13, %v4692_v26, %v4709_v34  ;;  %v8716_v53 = vmul.u32.u64.low %v4712_v56, %v4707_v54  ;;  %v8717_v60 = vmul.u32.u64.high %v4712_v56, %v4707_v54, %v8716_v53  ;;  %v4703_v32 = vsel %vm4697_vm11, %v4700_v13, %v4702_v30 }
 0x478   : > { %v5025_v63 = vadd.s32 4294967294, %v4628_v3  ;;  %v4711_v51 = vsel %vm4697_vm11, %v4708_v18, %v4710_v62  ;;  %vm4552_vm14 = vcmp.eq.s32.totalorder %v4550_v33, 0  ;;  %vm4555_vm1 = vcmp.eq.s32.totalorder %v4550_v33, 2 }
 0x479   : > { %v8720_v61 = vmul.u32.u64.low %v4712_v56, %v4711_v51  ;;  %v8721_v25 = vmul.u32.u64.high %v4712_v56, %v4711_v51, %v8720_v61  ;;  %v4722_v39 = vadd.s32 1, %v8717_v60  ;;  %v4616_v42 = vadd.s32 %v8653_v6, %v8663_v20 }
 0x47a   : > { %vm5026_vm15 = vcmp.lt.s32.totalorder %v5025_v63, 0  ;;  %v4719_v22 = vmul.u32 %v4712_v56, %v4703_v32  ;;  %vm4551_vm2 = vcmp.lt.s32.totalorder %v4550_v33, 2  ;;  %vm4548_vm3 = vweird.f32 %v8436_v28 }
 0x47b   : > { %v4631_v44 = vsel %vm5026_vm15, 0, %v5025_v63  ;;  %vm4721_vm0 = vc.u32 %v8721_v25, %v8716_v53  ;;  %v4646_v59 = vsub.s32 4, %v8695_v1  ;;  %vm4562_vm4 = vcmp.lt.s32.totalorder %v8440_v27, 0 }
 0x47c   : > { %v5507_v24 = vpop.eup %5506  ;;  %v4632_v52 = vsub.s32 32, %v4631_v44  ;;  %v4636_v35 = vsub.s32 4294967266, %v4631_v44  ;;  %v4633_v45 = vshll.u32 %v4624_v46, %v4631_v44  ;;  %v4723_v49 = vsel %vm4721_vm0, %v4722_v39, %v8717_v60 }
 0x47d   : > { %v5509_v23 = vpop.eup %5508  ;;  %v4556_v29 = vxor.u32 2147483648, %v5507_v24  ;;  %v4724_v17 = vadd.s32 %v4723_v49, %v4719_v22  ;;  %vm4561_vm6 = vcmp.le.f32.partialorder %v4560_v19, 0.7853982  ;;  %v4647_v48 = vsel %vm4562_vm4, %v4646_v59, %v8695_v1 }
 0x47e   : > { %v4553_v15 = vxor.u32 2147483648, %v5509_v23  ;;  %v4634_v10 = vshrl.u32 %v4616_v42, %v4632_v52  ;;  %v4637_v14 = vadd.s32 127, %v4636_v35  ;;  %v4649_v7 = vsel %vm4561_vm6, 0, %v4647_v48 }
 0x47f   : > { %v4557_v2 = vsel %vm4555_vm1, %v4556_v29, %v5509_v23  ;;  %v4725_v57 = vadd.s32 536870912, %v4724_v17  ;;  %v4653_v21 = vadd.s32 3, %v4649_v7  ;;  %v4720_v36 = vadd.s32 %v8716_v53, %v8721_v25 }
 0x480   : > { %v4554_v43 = vsel %vm4552_vm14, %v5507_v24, %v4553_v15  ;;  %v4635_v20 = vor.u32 %v4634_v10, %v4633_v45  ;;  %v4638_v38 = vshll.u32 %v4637_v14, 23  ;;  %vm4652_vm12 = vweird.f32 %v8440_v27 }
 0x481   : > { %v4558_v6 = vsel %vm4551_vm2, %v4554_v43, %v4557_v2  ;;  %v4726_v8 = vshrl.u32 %v4725_v57, 30  ;;  %v4654_v18 = vand.u32 3, %v4653_v21  ;;  %vm4666_vm10 = vcmp.lt.s32.totalorder %v8444_v50, 0 }
 0x482   : > { %v4559_v41 = vsel %vm4548_vm3, nan, %v4558_v6  ;;  %v4639_v58 = vor.u32 4788187, %v4638_v38  ;;  %v4642_v16 = vcvt.s32.f32 %v4635_v20  ;;  %vm4665_vm13 = vcmp.le.f32.partialorder %v4664_v47, 0.7853982 }
 0x483   : > { %4797 = vst [vmem:[%s6348_s26 + $0xe8] sm:$0xff] %v4559_v41  ;;  %v4727_v11 = vshll.u32 %v4726_v8, 30  ;;  %vm4659_vm5 = vcmp.eq.s32.totalorder %v4654_v18, 2  ;;  %vm4656_vm8 = vcmp.eq.s32.totalorder %v4654_v18, 0  ;;  %vm4655_vm9 = vcmp.lt.s32.totalorder %v4654_v18, 2 }
 0x484   : > { %v4640_v0 = vand.u32 2147483647, %v4639_v58  ;;  %v4750_v44 = vsub.s32 4, %v4726_v8  ;;  %vm4756_vm1 = vweird.f32 %v8444_v50 }
 0x485   : > { %v4728_v5 = vsub.s32 %v4724_v17, %v4727_v11 }
 0x486   : > { %v4643_v26 = vmul.f32 %v4642_v16, %v4640_v0  ;;  %v4751_v29 = vsel %vm4666_vm10, %v4750_v44, %v4726_v8 }
 0x487   : > { %v4730_v12 = vsub.s32 0, %v4728_v5 }
 0x488   : > { %v4644_v46 = vxor.u32 2147483648, %v4643_v26 }
 0x489   : > { %v5028_v4 = vmin.u32 %v4730_v12, %v4728_v5 }
 0x48a   : > { %v4645_v28 = vsel %vm4562_vm4, %v4644_v46, %v4643_v26 }
 0x48b   : > { %v4648_v37 = vsel %vm4561_vm6, %v8440_v27, %v4645_v28  ;;  %v4732_v9 = vclz %v5028_v4  ;;  %v4753_v27 = vsel %vm4665_vm13, 0, %v4751_v29 }
 0x48c   : > { %5510 = vcosq.f32 %v4648_v37  ;;  %v4757_v52 = vadd.s32 3, %v4753_v27 }
 0x48d   : > { %5512 = vsinq.f32 %v4648_v37  ;;  %v5029_v31 = vadd.s32 4294967294, %v4732_v9 }
 0x48e   : > { %v4758_v35 = vand.u32 3, %v4757_v52 }
 0x48f   : > { %vm5030_vm7 = vcmp.lt.s32.totalorder %v5029_v31, 0 }
 0x490   : > { %v4735_v55 = vsel %vm5030_vm7, 0, %v5029_v31  ;;  %vm4763_vm11 = vcmp.eq.s32.totalorder %v4758_v35, 2  ;;  %vm4760_vm15 = vcmp.eq.s32.totalorder %v4758_v35, 0  ;;  %vm4759_vm14 = vcmp.lt.s32.totalorder %v4758_v35, 2 }
 0x491   : > { %v4736_v40 = vsub.s32 32, %v4735_v55  ;;  %v4740_v54 = vsub.s32 4294967266, %v4735_v55  ;;  %v4737_v19 = vshll.u32 %v4728_v5, %v4735_v55 }
 0x493   : > { %v4738_v34 = vshrl.u32 %v4720_v36, %v4736_v40  ;;  %v4741_v56 = vadd.s32 127, %v4740_v54 }
 0x495   : > { %v4739_v13 = vor.u32 %v4738_v34, %v4737_v19  ;;  %v4742_v30 = vshll.u32 %v4741_v56, 23 }
 0x496   : > { %v5511_v1 = vpop.eup %5510 }
 0x497   : > { %v5513_v33 = vpop.eup %5512  ;;  %v4660_v3 = vxor.u32 2147483648, %v5511_v1  ;;  %v4743_v63 = vor.u32 4788187, %v4742_v30  ;;  %v4746_v25 = vcvt.s32.f32 %v4739_v13 }
 0x498   : > { %v4657_v62 = vxor.u32 2147483648, %v5513_v33 }
 0x499   : > { %v4661_v60 = vsel %vm4659_vm5, %v4660_v3, %v5513_v33  ;;  %v4744_v61 = vand.u32 2147483647, %v4743_v63 }
 0x49a   : > { %v4658_v51 = vsel %vm4656_vm8, %v5511_v1, %v4657_v62 }
 0x49b   : > { %v4662_v53 = vsel %vm4655_vm9, %v4658_v51, %v4661_v60  ;;  %v4747_v24 = vmul.f32 %v4746_v25, %v4744_v61 }
 0x49c   : > { %v4663_v32 = vsel %vm4652_vm12, nan, %v4662_v53 }
 0x49d   : > { %4798 = vst [vmem:[%s6348_s26 + $0xf0] sm:$0xff] %v4663_v32  ;;  %v4748_v39 = vxor.u32 2147483648, %v4747_v24 }
 0x49f   : > { %v4749_v23 = vsel %vm4666_vm10, %v4748_v39, %v4747_v24 }
 0x4a0   : > { %v4752_v42 = vsel %vm4665_vm13, %v8444_v50, %v4749_v23 }
 0x4a1   : > { %5514 = vcosq.f32 %v4752_v42 }
 0x4a2   : > { %5516 = vsinq.f32 %v4752_v42 }
 0x4ab   : > { %v5515_v15 = vpop.eup %5514 }
 0x4ac   : > { %v5517_v45 = vpop.eup %5516  ;;  %v4764_v22 = vxor.u32 2147483648, %v5515_v15 }
 0x4ad   : > { %v4761_v2 = vxor.u32 2147483648, %v5517_v45 }
 0x4ae   : > { %v4765_v47 = vsel %vm4763_vm11, %v4764_v22, %v5517_v45 }
 0x4af   : > { %v4762_v10 = vsel %vm4760_vm15, %v5515_v15, %v4761_v2 }
 0x4b0   : > { %v4766_v14 = vsel %vm4759_vm14, %v4762_v10, %v4765_v47 }
 0x4b1   : > { %v4767_v49 = vsel %vm4756_vm1, nan, %v4766_v14 }
 0x4b2   : > { %4799 = vst [vmem:[%s6348_s26 + $0xf8] sm:$0xff] %v4767_v49 }
 0x4b3   : > { %5531 = shalt.err (!%p5528_p5)
}
 0x4b4   : > { %s5532_s8 = scalar_lea.hbm %s8750_s3, 4096  ;;  %s5536_s18 = scalar_lea.hbm %s8806_s2, 8192 }
 0x4b5   : > { %p5533_p6 = scmp.ne.s32.totalorder %s8750_s3, %s5532_s8  ;;  %p5537_p10 = scmp.lt.u32.totalorder %s8750_s3, %s8806_s2 }
 0x4b6   : > { %p5538_p11 = scmp.lt.u32.totalorder %s5536_s18, %s5532_s8  ;;  %p5540_p13 = scmp.lt.u32.totalorder %s5532_s8, %s8750_s3 }
 0x4b7   : > { %p5534_p7 = pnand %p5533_p6, %p5663_p4 }
 0x4b8   : > { %p5539_p12 = por %p5538_p11, %p5537_p10 }
 0x4b9   : > { %p5535_p9 = pneg %p5534_p7 }
 0x4ba   : > { %p5541_p0 = por %p5540_p13, %p5539_p12 }
 0x4bc   : > { %p5542_p1 = pnand %p5541_p0, %p5535_p9 }
 0x4be   : > { %5545 = shalt.err (!%p5542_p1)
}
 0x4bf   : > { %s5606_s24 = smov 256   ;;  %s5607_s25 = smov 16  }
 0x4c0   : > { %5326 = dma.vmem_to_hbm [thread:$0]  (%p5663_p4), %s8752_s28, 4096, %s8750_s3, %s8758_s12, %s5606_s24, %s5606_s24, %s5607_s25  }
 0x4c1 PF: > { %p5332_p2 = scmp.ge.s32.totalorder %s5596_s14, 2  ;;  %s4831_s26 = sand.u32 1, %s5576_s9  }
 0x4c2   : > { %s4832_s27 = scalar_lea.sflag [#allocation3], %s4831_s26 }
 0x4c3   : > { %p5329_p3 = pnand %p5332_p2, %p5670_p8 }
 0x4c5   : > { %5571 = dma.done.wait (!%p5329_p3), %s4832_s27, 4096  }
 0x4c6   : > { %5573 = vsyncadd (!%p5329_p3), %s4832_s27, 4294963200  ;;  %s15_s14 = sadd.s32 1, %s5596_s14   ;;  %s8869_s9 = smov %s5580_s10 }
 0x4c7   : > { %p12_p5 = scmp.ge.s32.totalorder %s15_s14, 4   ;;  %s8870_s10 = smov %s5584_s11 }
 0x4c8   : > { %s8871_s11 = smov %s5676_s22  ;;  %s8872_s12 = smov %s5592_s13 }
 0x4c9   : > { %s8873_s13 = smov %s8875_s17  ;;  %14 = sbr.rel (!%p12_p5) target bundleno = 4 (0x4), region = 63 }
 0x4d0   :  { %4837 = vsyncpa [#allocation3], 1 }
 0x4d1   :  { %4839 = vsyncpa [#allocation3 + $0x1], 1 }

</bundles_post_ra>
